<compile_context>
chip_gen: v6e
topology: v6e:2x2x1
jax: 0.10.0
libtpu: 0.0.40
codegen_flags: <defaults>
</compile_context>

<pallas_src>
import functools

import numpy as np
import jax
import jax.numpy as jnp
from jax.experimental import pallas as pl
from jax.experimental.pallas import tpu as pltpu


# ------------------------- per-generation hardware hints ---------------------

def _vmem_budget_bytes():
    """Scoped-VMEM limit with headroom, derived from the running chip."""
    phys = 128 * 1024 * 1024
    try:
        info = pltpu.get_tpu_info()
        phys = int(getattr(info, "vmem_capacity_bytes", 0)) or phys
    except Exception:
        pass
    # ~25% headroom, never more than 100 MiB of scoped VMEM
    return int(min(phys * 3 // 4, 100 * 1024 * 1024))


def _two_tensorcores():
    """Heuristic: v7x has 2 TensorCores per chip; v5e/v6e have 1."""
    try:
        kind = jax.devices()[0].device_kind.lower()
    except Exception:
        kind = ""
    return ("v7" in kind) or ("7x" in kind)


# ----------------------------- Pallas kernel --------------------------------

def _window_attn_kernel(x_ref, wqkv_ref, bqkv_ref, bias_ref, wp_ref, bp_ref,
                        o_ref, *, num_heads, head_dim):
    # x_ref:    (1, WB*N, C)      flattened slab of WB windows (compute dtype)
    # wqkv_ref: (C, 3C)           qkv weight, scale folded into the Q columns
    # bqkv_ref: (1, 3C)   f32     qkv bias, scale folded into the Q entries
    # bias_ref: (H, nW, N, N)     rel-pos bias + per-window mask, VMEM-resident
    # wp_ref:   (C, C)            output projection weight
    # bp_ref:   (1, C)    f32     output projection bias
    # o_ref:    (1, WB*N, C)
    H, nW, N, _ = bias_ref.shape
    hd = head_dim
    x2d = x_ref[0]                               # (WB*N, C)
    C = x2d.shape[-1]
    cdt = x2d.dtype
    WB = x2d.shape[0] // N
    G = WB // nW

    # Fused QKV projection on the flattened slab (one big MXU matmul, f32 acc),
    # then a single cast to the compute dtype (no per-head casts later).
    qkv = jnp.dot(x2d, wqkv_ref[...], preferred_element_type=jnp.float32)
    qkv = (qkv + bqkv_ref[0]).astype(cdt)        # (WB*N, 3C)

    # TODO(synk): the (WB*N, C) <-> (WB, N, C) reshapes are only free when
    # N % 8 == 0; pad tokens in the wrapper for N=98-style (2,7,7) windows.
    q3 = qkv[:, 0:C].reshape(WB, N, C)
    k3 = qkv[:, C:2 * C].reshape(WB, N, C)
    v3 = qkv[:, 2 * C:3 * C].reshape(WB, N, C)

    acc = None
    # TODO(synk): for H >= ~12 switch the static unroll to lax.fori_loop to
    # bound per-head live ranges (vreg pressure); shipped configs have H <= 8.
    for h in range(num_heads):
        lo, hi = h * hd, (h + 1) * hd
        # window-batched scores for this head, f32 accumulation on the MXU
        s = jnp.einsum('wnd,wmd->wnm', q3[:, :, lo:hi], k3[:, :, lo:hi],
                       preferred_element_type=jnp.float32)      # (WB, N, N)
        # de-duplicated bias: (nW, N, N), broadcast over the WB//nW repeat axis
        s = (s.reshape(G, nW, N, N)
             + bias_ref[h].astype(jnp.float32)).reshape(WB, N, N)

        # softmax along keys, all in f32; denominator via the EUP reciprocal
        m = jnp.max(s, axis=-1, keepdims=True)
        e = jnp.exp(s - m)
        p = e * pl.reciprocal(jnp.sum(e, axis=-1, keepdims=True), approx=True)
        # attn_drop: identity (p = 0.0, eval mode)

        ctx = jnp.einsum('wnm,wmd->wnd', p.astype(cdt), v3[:, :, lo:hi],
                         preferred_element_type=jnp.float32)    # (WB, N, hd)
        # Accumulate this head's slice of the output projection directly:
        #   concat_h(ctx_h) @ Wp == sum_h ctx_h @ Wp[h*hd:(h+1)*hd, :]
        # (avoids hd-wide masked stores into a ctx scratch + a full reload).
        contrib = jnp.dot(ctx.reshape(WB * N, hd).astype(cdt),
                          wp_ref[lo:hi, :],
                          preferred_element_type=jnp.float32)   # (WB*N, C)
        acc = contrib if acc is None else acc + contrib

    # proj_drop: identity (p = 0.0, eval mode)
    o_ref[0] = (acc + bp_ref[0]).astype(o_ref.dtype)


# ------------------------------- wrapper -------------------------------------

def window_attention_3d(x, w_qkv, b_qkv, rel_bias, mask, w_proj, b_proj,
                        *, num_heads, windows_per_block=None, pack_windows=None,
                        compute_dtype=jnp.bfloat16):
    """WindowAttention3D_D forward (eval mode).

    x:        (B_, N, C)  windows*batch, tokens/window, channels
    w_qkv:    (C, 3C)     qkv weight (out = x @ W), b_qkv: (3C,)
    rel_bias: (H, N, N)   gathered relative-position bias
    mask:     (nW, N, N)  additive attention mask or None
    w_proj:   (C, C), b_proj: (C,)
    """
    B_, N, C = x.shape
    H = num_heads
    hd = C // H
    scale = float(hd) ** -0.5
    nW = 1 if mask is None else mask.shape[0]

    vmem_limit = _vmem_budget_bytes()
    two_cores = _two_tensorcores()

    # ---- (1) small-N windows: pack P windows into one lane-dense super-window
    #      with a block-diagonal additive bias (finite -1e9 off-block) so the
    #      key/softmax axis fills up to 128 lanes. Numerically exact: off-block
    #      exp underflows to 0.0 in f32.
    if pack_windows is None:
        cap = max(1, 128 // N)
        cands = [p for p in range(2, cap + 1) if B_ % p == 0 and p % nW == 0]
        if two_cores:
            cands = [p for p in cands if (B_ // p) >= 2] or cands
        pack = max(cands) if cands else 1
    else:
        pack = int(pack_windows)

    if pack > 1:
        assert B_ % pack == 0 and pack % nW == 0
        Np = pack * N
        neg = jnp.float32(-1e9)                   # finite: avoids inf-inf NaNs
        bias_full = jnp.full((H, Np, Np), neg, jnp.float32)
        for w in range(pack):
            blk = rel_bias.astype(jnp.float32)
            if mask is not None:
                blk = blk + mask[w % nW][None].astype(jnp.float32)
            bias_full = bias_full.at[:, w * N:(w + 1) * N,
                                     w * N:(w + 1) * N].set(blk)
        bias_win = bias_full[:, None]                            # (H, 1, Np, Np)
        x_k = x.reshape(B_ // pack, Np, C)
        Bk, Nk, nWk = B_ // pack, Np, 1
    else:
        if mask is not None:
            bias_win = (rel_bias[:, None].astype(jnp.float32)
                        + mask[None].astype(jnp.float32))        # (H, nW, N, N)
        else:
            bias_win = rel_bias[:, None].astype(jnp.float32)     # (H, 1, N, N)
        x_k, Bk, Nk, nWk = x, B_, N, nW

    # ---- (2) fold the attention scale into the Q third of the qkv params.
    col_scale = jnp.concatenate(
        [jnp.full((C,), scale, jnp.float32), jnp.ones((2 * C,), jnp.float32)])
    w_qkv_s = w_qkv.astype(jnp.float32) * col_scale[None, :]
    b_qkv_s = b_qkv.astype(jnp.float32) * col_scale

    cbytes = jnp.dtype(compute_dtype).itemsize
    obytes = jnp.dtype(x.dtype).itemsize
    bias_bytes = H * nWk * Nk * Nk * cbytes       # single-buffered resident

    def vmem_estimate(wb):
        x_slab = 2 * wb * Nk * C * cbytes         # double-buffered input slab
        o_slab = 2 * wb * Nk * C * obytes         # double-buffered output slab
        weights = (3 * C * C + C * C) * cbytes + (4 * C) * 4
        interm = wb * Nk * 3 * C * 4 + 2 * wb * Nk * Nk * 4 + wb * Nk * C * 4
        return x_slab + o_slab + weights + bias_bytes + interm

    # ---- (3) per-generation windows-per-block: largest that fits the VMEM
    #      budget; >= 2 (even) grid steps preferred only on 2-TensorCore chips.
    if windows_per_block is None:
        cands = [wb for wb in range(nWk, Bk + 1, nWk) if Bk % wb == 0]
        feas = [wb for wb in cands if vmem_estimate(wb) <= vmem_limit] or [cands[0]]
        if two_cores:
            pref = [wb for wb in feas if (Bk // wb) >= 2 and (Bk // wb) % 2 == 0]
            windows_per_block = max(pref) if pref else max(feas)
        else:
            windows_per_block = max(feas)
    WB = int(windows_per_block)
    assert Bk % WB == 0 and WB % nWk == 0
    nblk = Bk // WB

    xr = x_k.astype(compute_dtype).reshape(nblk, WB * Nk, C)
    wqkv_c = w_qkv_s.astype(compute_dtype)
    wp_c = w_proj.astype(compute_dtype)
    bq = b_qkv_s.reshape(1, 3 * C)                               # f32
    bp = b_proj.astype(jnp.float32).reshape(1, C)                # f32
    bias_c = bias_win.astype(compute_dtype)                      # bf16 fast path

    kernel = functools.partial(_window_attn_kernel, num_heads=H, head_dim=hd)

    def build(single_buffer):
        def const_spec(shape):
            idx = lambda b: (0,) * len(shape)
            if single_buffer:
                return pl.BlockSpec(shape, idx, pipeline_mode=pl.Buffered(1))
            return pl.BlockSpec(shape, idx)
        return pl.pallas_call(
            kernel,
            out_shape=jax.ShapeDtypeStruct((nblk, WB * Nk, C), x.dtype),
            grid_spec=pltpu.PrefetchScalarGridSpec(
                num_scalar_prefetch=0,
                grid=(nblk,),
                in_specs=[
                    pl.BlockSpec((1, WB * Nk, C), lambda b: (b, 0, 0)),  # x
                    const_spec((C, 3 * C)),                              # w_qkv
                    const_spec((1, 3 * C)),                              # b_qkv
                    const_spec((H, nWk, Nk, Nk)),                        # bias
                    const_spec((C, C)),                                  # w_proj
                    const_spec((1, C)),                                  # b_proj
                ],
                out_specs=pl.BlockSpec((1, WB * Nk, C), lambda b: (b, 0, 0)),
            ),
            compiler_params=pltpu.CompilerParams(
                dimension_semantics=("parallel",),
                vmem_limit_bytes=vmem_limit),
        )

    out = None
    for single_buffer in (True, False):
        try:
            out = build(single_buffer)(xr, wqkv_c, bq, bias_c, wp_c, bp)
            break
        except Exception:
            # Single-buffering constants (pl.Buffered(1)) is an optimization;
            # fall back to default double-buffering if this Pallas rejects it.
            if not single_buffer:
                raise
    return out.reshape(B_, N, C)                  # free row-major view back


# ------------------------- glue / reference / setup --------------------------

def make_relative_position_index(window_size):
    wd, wh, ww = window_size
    coords = np.stack(np.meshgrid(np.arange(wd), np.arange(wh), np.arange(ww),
                                  indexing="ij"))                    # 3,wd,wh,ww
    coords_flatten = coords.reshape(3, -1)                           # 3, N
    rel = coords_flatten[:, :, None] - coords_flatten[:, None, :]    # 3, N, N
    rel = rel.transpose(1, 2, 0).astype(np.int64)                    # N, N, 3
    rel[:, :, 0] += wd - 1
    rel[:, :, 1] += wh - 1
    rel[:, :, 2] += ww - 1
    rel[:, :, 0] *= (2 * wh - 1) * (2 * ww - 1)
    rel[:, :, 1] *= (2 * ww - 1)
    return rel.sum(-1)                                               # N, N


def reference_forward(x, w_qkv, b_qkv, rel_bias, mask, w_proj, b_proj,
                      *, num_heads):
    """Pure-JAX f32 reference matching the PyTorch forward exactly (eval)."""
    B_, N, C = x.shape
    hd = C // num_heads
    scale = float(hd) ** -0.5
    qkv = x @ w_qkv + b_qkv                                       # (B_, N, 3C)
    qkv = qkv.reshape(B_, N, 3, num_heads, hd).transpose(2, 0, 3, 1, 4)
    q, k, v = qkv[0] * scale, qkv[1], qkv[2]                      # (B_, H, N, hd)
    attn = jnp.einsum("bhnd,bhmd->bhnm", q, k)                    # (B_, H, N, N)
    attn = attn + rel_bias[None]                                  # (H, N, N)
    if mask is not None:
        nW = mask.shape[0]
        attn = attn.reshape(B_ // nW, nW, num_heads, N, N) + mask[None, :, None]
        attn = attn.reshape(B_, num_heads, N, N)
    attn = jax.nn.softmax(attn, axis=-1)
    out = jnp.einsum("bhnm,bhmd->bhnd", attn, v)                  # (B_, H, N, hd)
    out = out.transpose(0, 2, 1, 3).reshape(B_, N, C)
    return out @ w_proj + b_proj


if __name__ == "__main__":
    # small config consistent with the module
    dim = 32
    num_heads = 4
    window_size = (2, 2, 2)
    N = window_size[0] * window_size[1] * window_size[2]          # 8 tokens
    nW = 2                                                         # mask windows
    B_ = 8                                                         # B_ % nW == 0

    key = jax.random.PRNGKey(0)
    keys = jax.random.split(key, 8)

    x = jax.random.normal(keys[0], (B_, N, dim), dtype=jnp.float32)

    # parameters (deterministic init; trunc_normal ~ normal*0.02 here)
    table_size = (2 * window_size[0] - 1) * (2 * window_size[1] - 1) * \
                 (2 * window_size[2] - 1)
    rpb_table = 0.02 * jax.random.normal(keys[1], (table_size, num_heads),
                                         dtype=jnp.float32)
    w_qkv = 0.1 * jax.random.normal(keys[2], (dim, 3 * dim), dtype=jnp.float32)
    b_qkv = 0.1 * jax.random.normal(keys[3], (3 * dim,), dtype=jnp.float32)
    w_proj = 0.1 * jax.random.normal(keys[4], (dim, dim), dtype=jnp.float32)
    b_proj = 0.1 * jax.random.normal(keys[5], (dim,), dtype=jnp.float32)

    # attention mask: values in {0, -100}, shape (nW, N, N)
    mask_bits = jax.random.bernoulli(keys[6], 0.2, (nW, N, N))
    mask = jnp.where(mask_bits, -100.0, 0.0).astype(jnp.float32)

    # relative position index + gathered bias (glue, plain JAX)
    rpi = jnp.asarray(make_relative_position_index(window_size))   # (N, N)
    rel_bias = rpb_table[rpi.reshape(-1)].reshape(N, N, num_heads)
    rel_bias = jnp.transpose(rel_bias, (2, 0, 1))                  # (H, N, N)

    with jax.default_matmul_precision("highest"):
        ref = reference_forward(x, w_qkv, b_qkv, rel_bias, mask, w_proj, b_proj,
                                num_heads=num_heads)
    ref = jax.block_until_ready(ref)

    # --- f32 compute path, auto super-window packing (tight-ish check) -------
    out_f32 = window_attention_3d(
        x, w_qkv, b_qkv, rel_bias, mask, w_proj, b_proj,
        num_heads=num_heads, compute_dtype=jnp.float32)
    out_f32 = jax.block_until_ready(out_f32)
    np.testing.assert_allclose(np.asarray(out_f32), np.asarray(ref),
                               rtol=5e-3, atol=5e-3)

    # --- f32 compute path, packing disabled (exercises (H, nW, N, N) bias) ---
    out_nopack = window_attention_3d(
        x, w_qkv, b_qkv, rel_bias, mask, w_proj, b_proj,
        num_heads=num_heads, pack_windows=1, compute_dtype=jnp.float32)
    out_nopack = jax.block_until_ready(out_nopack)
    np.testing.assert_allclose(np.asarray(out_nopack), np.asarray(ref),
                               rtol=5e-3, atol=5e-3)

    # --- bf16 matmul fast path (f32 softmax & accumulation) ------------------
    out_bf16 = window_attention_3d(
        x, w_qkv, b_qkv, rel_bias, mask, w_proj, b_proj,
        num_heads=num_heads, compute_dtype=jnp.bfloat16)
    out_bf16 = jax.block_until_ready(out_bf16)
    np.testing.assert_allclose(np.asarray(out_bf16), np.asarray(ref),
                               rtol=5e-2, atol=5e-2)

    print("KERNEL_OK")
</pallas_src>

<mosaic_0001>
module attributes {stable_mosaic.version = 11 : i64} {
  func.func @_window_attn_kernel(%arg0: i32, %arg1: memref<1x64x32xf32, #tpu.memory_space<vmem>>, %arg2: memref<32x96xf32, #tpu.memory_space<vmem>>, %arg3: memref<1x96xf32, #tpu.memory_space<vmem>>, %arg4: memref<4x1x64x64xf32, #tpu.memory_space<vmem>>, %arg5: memref<32x32xf32, #tpu.memory_space<vmem>>, %arg6: memref<1x32xf32, #tpu.memory_space<vmem>>, %arg7: memref<1x64x32xf32, #tpu.memory_space<vmem>>) attributes {dimension_semantics = [#tpu.dimension_semantics<parallel>], iteration_bounds = array<i64: 1>, scalar_prefetch = 0 : i64, scratch_operands = 0 : i64, tpu.core_type = #tpu.core_type<tc>, window_params = [{transform_indices = @transform_0, window_bounds = array<i64: 1, 64, 32>}, {pipeline_mode = #tpu.pipeline_mode<synchronous>, transform_indices = @transform_1, window_bounds = array<i64: 32, 96>}, {pipeline_mode = #tpu.pipeline_mode<synchronous>, transform_indices = @transform_2, window_bounds = array<i64: 1, 96>}, {pipeline_mode = #tpu.pipeline_mode<synchronous>, transform_indices = @transform_3, window_bounds = array<i64: 4, 1, 64, 64>}, {pipeline_mode = #tpu.pipeline_mode<synchronous>, transform_indices = @transform_4, window_bounds = array<i64: 32, 32>}, {pipeline_mode = #tpu.pipeline_mode<synchronous>, transform_indices = @transform_5, window_bounds = array<i64: 1, 32>}, {transform_indices = @transform_6, window_bounds = array<i64: 1, 64, 32>}]} {
    %c0 = arith.constant 0 : index
    %c0_0 = arith.constant 0 : index
    %c0_1 = arith.constant 0 : index
    %0 = vector.load %arg1[%c0, %c0_0, %c0_1] : memref<1x64x32xf32, #tpu.memory_space<vmem>>, vector<1x64x32xf32>
    %1 = vector.shape_cast %0 : vector<1x64x32xf32> to vector<64x32xf32>
    %c0_2 = arith.constant 0 : index
    %c0_3 = arith.constant 0 : index
    %2 = vector.load %arg2[%c0_2, %c0_3] : memref<32x96xf32, #tpu.memory_space<vmem>>, vector<32x96xf32>
    %cst = arith.constant dense<0.000000e+00> : vector<64x96xf32>
    %3 = tpu.matmul %1, %2, %cst {dimension_numbers = #tpu.dot_dimension_numbers<[1], [0], [0], [1], [0, 0, 1, 1], [], []>} : vector<64x32xf32>, vector<32x96xf32>, vector<64x96xf32> -> vector<64x96xf32>
    %c0_4 = arith.constant 0 : index
    %c0_5 = arith.constant 0 : index
    %4 = vector.load %arg3[%c0_4, %c0_5] : memref<1x96xf32, #tpu.memory_space<vmem>>, vector<1x96xf32>
    %5 = vector.shape_cast %4 : vector<1x96xf32> to vector<96xf32>
    %6 = vector.shape_cast %5 : vector<96xf32> to vector<1x96xf32>
    %7 = vector.broadcast %6 : vector<1x96xf32> to vector<64x96xf32>
    %8 = arith.addf %3, %7 : vector<64x96xf32>
    %9 = vector.extract_strided_slice %8 {offsets = [0, 0], sizes = [64, 32], strides = [1, 1]} : vector<64x96xf32> to vector<64x32xf32>
    %10 = vector.shape_cast %9 : vector<64x32xf32> to vector<1x64x32xf32>
    %11 = vector.extract_strided_slice %8 {offsets = [0, 32], sizes = [64, 32], strides = [1, 1]} : vector<64x96xf32> to vector<64x32xf32>
    %12 = vector.shape_cast %11 : vector<64x32xf32> to vector<1x64x32xf32>
    %13 = vector.extract_strided_slice %8 {offsets = [0, 64], sizes = [64, 32], strides = [1, 1]} : vector<64x96xf32> to vector<64x32xf32>
    %14 = vector.shape_cast %13 : vector<64x32xf32> to vector<1x64x32xf32>
    %15 = vector.extract_strided_slice %10 {offsets = [0, 0, 0], sizes = [1, 64, 8], strides = [1, 1, 1]} : vector<1x64x32xf32> to vector<1x64x8xf32>
    %16 = vector.extract_strided_slice %12 {offsets = [0, 0, 0], sizes = [1, 64, 8], strides = [1, 1, 1]} : vector<1x64x32xf32> to vector<1x64x8xf32>
    "tpu.trace_start"() <{level = 10 : i32, message = "wnd,wmd->wnm"}> : () -> ()
    %cst_6 = arith.constant dense<0.000000e+00> : vector<1x64x64xf32>
    %17 = tpu.matmul %15, %16, %cst_6 {dimension_numbers = #tpu.dot_dimension_numbers<[2], [2], [1], [1], [0, 0, 0, 1, 1, 1], [0], [0]>} : vector<1x64x8xf32>, vector<1x64x8xf32>, vector<1x64x64xf32> -> vector<1x64x64xf32>
    "tpu.trace_stop"() : () -> ()
    %18 = vector.shape_cast %17 : vector<1x64x64xf32> to vector<1x1x64x64xf32>
    %c0_7 = arith.constant 0 : index
    %c0_8 = arith.constant 0 : index
    %c0_9 = arith.constant 0 : index
    %c0_10 = arith.constant 0 : index
    %19 = vector.load %arg4[%c0_7, %c0_8, %c0_9, %c0_10] : memref<4x1x64x64xf32, #tpu.memory_space<vmem>>, vector<1x1x64x64xf32>
    %20 = vector.shape_cast %19 : vector<1x1x64x64xf32> to vector<1x64x64xf32>
    %21 = vector.shape_cast %20 : vector<1x64x64xf32> to vector<1x1x64x64xf32>
    %22 = arith.addf %18, %21 : vector<1x1x64x64xf32>
    %23 = vector.shape_cast %22 : vector<1x1x64x64xf32> to vector<1x64x64xf32>
    %cst_11 = arith.constant dense<0xFF800000> : vector<1x64xf32>
    %24 = vector.multi_reduction <maximumf>, %23, %cst_11 [2] : vector<1x64x64xf32> to vector<1x64xf32>
    %25 = vector.shape_cast %24 : vector<1x64xf32> to vector<1x64x1xf32>
    %26 = vector.broadcast %25 : vector<1x64x1xf32> to vector<1x64x64xf32>
    %27 = arith.subf %23, %26 : vector<1x64x64xf32>
    %28 = math.exp %27 : vector<1x64x64xf32>
    %cst_12 = arith.constant dense<0.000000e+00> : vector<1x64xf32>
    %29 = vector.multi_reduction <add>, %28, %cst_12 [2] : vector<1x64x64xf32> to vector<1x64xf32>
    %30 = vector.shape_cast %29 : vector<1x64xf32> to vector<1x64x1xf32>
    %31 = tpu.reciprocal %30 {approx = true} : vector<1x64x1xf32> -> vector<1x64x1xf32>
    %32 = vector.broadcast %31 : vector<1x64x1xf32> to vector<1x64x64xf32>
    %33 = arith.mulf %28, %32 : vector<1x64x64xf32>
    %34 = vector.extract_strided_slice %14 {offsets = [0, 0, 0], sizes = [1, 64, 8], strides = [1, 1, 1]} : vector<1x64x32xf32> to vector<1x64x8xf32>
    "tpu.trace_start"() <{level = 10 : i32, message = "wnm,wmd->wnd"}> : () -> ()
    %cst_13 = arith.constant dense<0.000000e+00> : vector<1x64x8xf32>
    %35 = tpu.matmul %33, %34, %cst_13 {dimension_numbers = #tpu.dot_dimension_numbers<[2], [1], [1], [2], [0, 0, 0, 1, 1, 2], [0], [0]>} : vector<1x64x64xf32>, vector<1x64x8xf32>, vector<1x64x8xf32> -> vector<1x64x8xf32>
    "tpu.trace_stop"() : () -> ()
    %36 = vector.shape_cast %35 : vector<1x64x8xf32> to vector<64x8xf32>
    %c0_14 = arith.constant 0 : index
    %c0_15 = arith.constant 0 : index
    %37 = vector.load %arg5[%c0_14, %c0_15] : memref<32x32xf32, #tpu.memory_space<vmem>>, vector<8x32xf32>
    %cst_16 = arith.constant dense<0.000000e+00> : vector<64x32xf32>
    %38 = tpu.matmul %36, %37, %cst_16 {dimension_numbers = #tpu.dot_dimension_numbers<[1], [0], [0], [1], [0, 0, 1, 1], [], []>} : vector<64x8xf32>, vector<8x32xf32>, vector<64x32xf32> -> vector<64x32xf32>
    %39 = vector.extract_strided_slice %10 {offsets = [0, 0, 8], sizes = [1, 64, 8], strides = [1, 1, 1]} : vector<1x64x32xf32> to vector<1x64x8xf32>
    %40 = vector.extract_strided_slice %12 {offsets = [0, 0, 8], sizes = [1, 64, 8], strides = [1, 1, 1]} : vector<1x64x32xf32> to vector<1x64x8xf32>
    "tpu.trace_start"() <{level = 10 : i32, message = "wnd,wmd->wnm"}> : () -> ()
    %cst_17 = arith.constant dense<0.000000e+00> : vector<1x64x64xf32>
    %41 = tpu.matmul %39, %40, %cst_17 {dimension_numbers = #tpu.dot_dimension_numbers<[2], [2], [1], [1], [0, 0, 0, 1, 1, 1], [0], [0]>} : vector<1x64x8xf32>, vector<1x64x8xf32>, vector<1x64x64xf32> -> vector<1x64x64xf32>
    "tpu.trace_stop"() : () -> ()
    %42 = vector.shape_cast %41 : vector<1x64x64xf32> to vector<1x1x64x64xf32>
    %c1 = arith.constant 1 : index
    %c0_18 = arith.constant 0 : index
    %c0_19 = arith.constant 0 : index
    %c0_20 = arith.constant 0 : index
    %43 = vector.load %arg4[%c1, %c0_18, %c0_19, %c0_20] : memref<4x1x64x64xf32, #tpu.memory_space<vmem>>, vector<1x1x64x64xf32>
    %44 = vector.shape_cast %43 : vector<1x1x64x64xf32> to vector<1x64x64xf32>
    %45 = vector.shape_cast %44 : vector<1x64x64xf32> to vector<1x1x64x64xf32>
    %46 = arith.addf %42, %45 : vector<1x1x64x64xf32>
    %47 = vector.shape_cast %46 : vector<1x1x64x64xf32> to vector<1x64x64xf32>
    %cst_21 = arith.constant dense<0xFF800000> : vector<1x64xf32>
    %48 = vector.multi_reduction <maximumf>, %47, %cst_21 [2] : vector<1x64x64xf32> to vector<1x64xf32>
    %49 = vector.shape_cast %48 : vector<1x64xf32> to vector<1x64x1xf32>
    %50 = vector.broadcast %49 : vector<1x64x1xf32> to vector<1x64x64xf32>
    %51 = arith.subf %47, %50 : vector<1x64x64xf32>
    %52 = math.exp %51 : vector<1x64x64xf32>
    %cst_22 = arith.constant dense<0.000000e+00> : vector<1x64xf32>
    %53 = vector.multi_reduction <add>, %52, %cst_22 [2] : vector<1x64x64xf32> to vector<1x64xf32>
    %54 = vector.shape_cast %53 : vector<1x64xf32> to vector<1x64x1xf32>
    %55 = tpu.reciprocal %54 {approx = true} : vector<1x64x1xf32> -> vector<1x64x1xf32>
    %56 = vector.broadcast %55 : vector<1x64x1xf32> to vector<1x64x64xf32>
    %57 = arith.mulf %52, %56 : vector<1x64x64xf32>
    %58 = vector.extract_strided_slice %14 {offsets = [0, 0, 8], sizes = [1, 64, 8], strides = [1, 1, 1]} : vector<1x64x32xf32> to vector<1x64x8xf32>
    "tpu.trace_start"() <{level = 10 : i32, message = "wnm,wmd->wnd"}> : () -> ()
    %cst_23 = arith.constant dense<0.000000e+00> : vector<1x64x8xf32>
    %59 = tpu.matmul %57, %58, %cst_23 {dimension_numbers = #tpu.dot_dimension_numbers<[2], [1], [1], [2], [0, 0, 0, 1, 1, 2], [0], [0]>} : vector<1x64x64xf32>, vector<1x64x8xf32>, vector<1x64x8xf32> -> vector<1x64x8xf32>
    "tpu.trace_stop"() : () -> ()
    %60 = vector.shape_cast %59 : vector<1x64x8xf32> to vector<64x8xf32>
    %c8 = arith.constant 8 : index
    %c0_24 = arith.constant 0 : index
    %61 = vector.load %arg5[%c8, %c0_24] : memref<32x32xf32, #tpu.memory_space<vmem>>, vector<8x32xf32>
    %cst_25 = arith.constant dense<0.000000e+00> : vector<64x32xf32>
    %62 = tpu.matmul %60, %61, %cst_25 {dimension_numbers = #tpu.dot_dimension_numbers<[1], [0], [0], [1], [0, 0, 1, 1], [], []>} : vector<64x8xf32>, vector<8x32xf32>, vector<64x32xf32> -> vector<64x32xf32>
    %63 = arith.addf %38, %62 : vector<64x32xf32>
    %64 = vector.extract_strided_slice %10 {offsets = [0, 0, 16], sizes = [1, 64, 8], strides = [1, 1, 1]} : vector<1x64x32xf32> to vector<1x64x8xf32>
    %65 = vector.extract_strided_slice %12 {offsets = [0, 0, 16], sizes = [1, 64, 8], strides = [1, 1, 1]} : vector<1x64x32xf32> to vector<1x64x8xf32>
    "tpu.trace_start"() <{level = 10 : i32, message = "wnd,wmd->wnm"}> : () -> ()
    %cst_26 = arith.constant dense<0.000000e+00> : vector<1x64x64xf32>
    %66 = tpu.matmul %64, %65, %cst_26 {dimension_numbers = #tpu.dot_dimension_numbers<[2], [2], [1], [1], [0, 0, 0, 1, 1, 1], [0], [0]>} : vector<1x64x8xf32>, vector<1x64x8xf32>, vector<1x64x64xf32> -> vector<1x64x64xf32>
    "tpu.trace_stop"() : () -> ()
    %67 = vector.shape_cast %66 : vector<1x64x64xf32> to vector<1x1x64x64xf32>
    %c2 = arith.constant 2 : index
    %c0_27 = arith.constant 0 : index
    %c0_28 = arith.constant 0 : index
    %c0_29 = arith.constant 0 : index
    %68 = vector.load %arg4[%c2, %c0_27, %c0_28, %c0_29] : memref<4x1x64x64xf32, #tpu.memory_space<vmem>>, vector<1x1x64x64xf32>
    %69 = vector.shape_cast %68 : vector<1x1x64x64xf32> to vector<1x64x64xf32>
    %70 = vector.shape_cast %69 : vector<1x64x64xf32> to vector<1x1x64x64xf32>
    %71 = arith.addf %67, %70 : vector<1x1x64x64xf32>
    %72 = vector.shape_cast %71 : vector<1x1x64x64xf32> to vector<1x64x64xf32>
    %cst_30 = arith.constant dense<0xFF800000> : vector<1x64xf32>
    %73 = vector.multi_reduction <maximumf>, %72, %cst_30 [2] : vector<1x64x64xf32> to vector<1x64xf32>
    %74 = vector.shape_cast %73 : vector<1x64xf32> to vector<1x64x1xf32>
    %75 = vector.broadcast %74 : vector<1x64x1xf32> to vector<1x64x64xf32>
    %76 = arith.subf %72, %75 : vector<1x64x64xf32>
    %77 = math.exp %76 : vector<1x64x64xf32>
    %cst_31 = arith.constant dense<0.000000e+00> : vector<1x64xf32>
    %78 = vector.multi_reduction <add>, %77, %cst_31 [2] : vector<1x64x64xf32> to vector<1x64xf32>
    %79 = vector.shape_cast %78 : vector<1x64xf32> to vector<1x64x1xf32>
    %80 = tpu.reciprocal %79 {approx = true} : vector<1x64x1xf32> -> vector<1x64x1xf32>
    %81 = vector.broadcast %80 : vector<1x64x1xf32> to vector<1x64x64xf32>
    %82 = arith.mulf %77, %81 : vector<1x64x64xf32>
    %83 = vector.extract_strided_slice %14 {offsets = [0, 0, 16], sizes = [1, 64, 8], strides = [1, 1, 1]} : vector<1x64x32xf32> to vector<1x64x8xf32>
    "tpu.trace_start"() <{level = 10 : i32, message = "wnm,wmd->wnd"}> : () -> ()
    %cst_32 = arith.constant dense<0.000000e+00> : vector<1x64x8xf32>
    %84 = tpu.matmul %82, %83, %cst_32 {dimension_numbers = #tpu.dot_dimension_numbers<[2], [1], [1], [2], [0, 0, 0, 1, 1, 2], [0], [0]>} : vector<1x64x64xf32>, vector<1x64x8xf32>, vector<1x64x8xf32> -> vector<1x64x8xf32>
    "tpu.trace_stop"() : () -> ()
    %85 = vector.shape_cast %84 : vector<1x64x8xf32> to vector<64x8xf32>
    %c16 = arith.constant 16 : index
    %c0_33 = arith.constant 0 : index
    %86 = vector.load %arg5[%c16, %c0_33] : memref<32x32xf32, #tpu.memory_space<vmem>>, vector<8x32xf32>
    %cst_34 = arith.constant dense<0.000000e+00> : vector<64x32xf32>
    %87 = tpu.matmul %85, %86, %cst_34 {dimension_numbers = #tpu.dot_dimension_numbers<[1], [0], [0], [1], [0, 0, 1, 1], [], []>} : vector<64x8xf32>, vector<8x32xf32>, vector<64x32xf32> -> vector<64x32xf32>
    %88 = arith.addf %63, %87 : vector<64x32xf32>
    %89 = vector.extract_strided_slice %10 {offsets = [0, 0, 24], sizes = [1, 64, 8], strides = [1, 1, 1]} : vector<1x64x32xf32> to vector<1x64x8xf32>
    %90 = vector.extract_strided_slice %12 {offsets = [0, 0, 24], sizes = [1, 64, 8], strides = [1, 1, 1]} : vector<1x64x32xf32> to vector<1x64x8xf32>
    "tpu.trace_start"() <{level = 10 : i32, message = "wnd,wmd->wnm"}> : () -> ()
    %cst_35 = arith.constant dense<0.000000e+00> : vector<1x64x64xf32>
    %91 = tpu.matmul %89, %90, %cst_35 {dimension_numbers = #tpu.dot_dimension_numbers<[2], [2], [1], [1], [0, 0, 0, 1, 1, 1], [0], [0]>} : vector<1x64x8xf32>, vector<1x64x8xf32>, vector<1x64x64xf32> -> vector<1x64x64xf32>
    "tpu.trace_stop"() : () -> ()
    %92 = vector.shape_cast %91 : vector<1x64x64xf32> to vector<1x1x64x64xf32>
    %c3 = arith.constant 3 : index
    %c0_36 = arith.constant 0 : index
    %c0_37 = arith.constant 0 : index
    %c0_38 = arith.constant 0 : index
    %93 = vector.load %arg4[%c3, %c0_36, %c0_37, %c0_38] : memref<4x1x64x64xf32, #tpu.memory_space<vmem>>, vector<1x1x64x64xf32>
    %94 = vector.shape_cast %93 : vector<1x1x64x64xf32> to vector<1x64x64xf32>
    %95 = vector.shape_cast %94 : vector<1x64x64xf32> to vector<1x1x64x64xf32>
    %96 = arith.addf %92, %95 : vector<1x1x64x64xf32>
    %97 = vector.shape_cast %96 : vector<1x1x64x64xf32> to vector<1x64x64xf32>
    %cst_39 = arith.constant dense<0xFF800000> : vector<1x64xf32>
    %98 = vector.multi_reduction <maximumf>, %97, %cst_39 [2] : vector<1x64x64xf32> to vector<1x64xf32>
    %99 = vector.shape_cast %98 : vector<1x64xf32> to vector<1x64x1xf32>
    %100 = vector.broadcast %99 : vector<1x64x1xf32> to vector<1x64x64xf32>
    %101 = arith.subf %97, %100 : vector<1x64x64xf32>
    %102 = math.exp %101 : vector<1x64x64xf32>
    %cst_40 = arith.constant dense<0.000000e+00> : vector<1x64xf32>
    %103 = vector.multi_reduction <add>, %102, %cst_40 [2] : vector<1x64x64xf32> to vector<1x64xf32>
    %104 = vector.shape_cast %103 : vector<1x64xf32> to vector<1x64x1xf32>
    %105 = tpu.reciprocal %104 {approx = true} : vector<1x64x1xf32> -> vector<1x64x1xf32>
    %106 = vector.broadcast %105 : vector<1x64x1xf32> to vector<1x64x64xf32>
    %107 = arith.mulf %102, %106 : vector<1x64x64xf32>
    %108 = vector.extract_strided_slice %14 {offsets = [0, 0, 24], sizes = [1, 64, 8], strides = [1, 1, 1]} : vector<1x64x32xf32> to vector<1x64x8xf32>
    "tpu.trace_start"() <{level = 10 : i32, message = "wnm,wmd->wnd"}> : () -> ()
    %cst_41 = arith.constant dense<0.000000e+00> : vector<1x64x8xf32>
    %109 = tpu.matmul %107, %108, %cst_41 {dimension_numbers = #tpu.dot_dimension_numbers<[2], [1], [1], [2], [0, 0, 0, 1, 1, 2], [0], [0]>} : vector<1x64x64xf32>, vector<1x64x8xf32>, vector<1x64x8xf32> -> vector<1x64x8xf32>
    "tpu.trace_stop"() : () -> ()
    %110 = vector.shape_cast %109 : vector<1x64x8xf32> to vector<64x8xf32>
    %c24 = arith.constant 24 : index
    %c0_42 = arith.constant 0 : index
    %111 = vector.load %arg5[%c24, %c0_42] : memref<32x32xf32, #tpu.memory_space<vmem>>, vector<8x32xf32>
    %cst_43 = arith.constant dense<0.000000e+00> : vector<64x32xf32>
    %112 = tpu.matmul %110, %111, %cst_43 {dimension_numbers = #tpu.dot_dimension_numbers<[1], [0], [0], [1], [0, 0, 1, 1], [], []>} : vector<64x8xf32>, vector<8x32xf32>, vector<64x32xf32> -> vector<64x32xf32>
    %113 = arith.addf %88, %112 : vector<64x32xf32>
    %c0_44 = arith.constant 0 : index
    %c0_45 = arith.constant 0 : index
    %114 = vector.load %arg6[%c0_44, %c0_45] : memref<1x32xf32, #tpu.memory_space<vmem>>, vector<1x32xf32>
    %115 = vector.shape_cast %114 : vector<1x32xf32> to vector<32xf32>
    %116 = vector.shape_cast %115 : vector<32xf32> to vector<1x32xf32>
    %117 = vector.broadcast %116 : vector<1x32xf32> to vector<64x32xf32>
    %118 = arith.addf %113, %117 : vector<64x32xf32>
    %c0_46 = arith.constant 0 : index
    %c0_47 = arith.constant 0 : index
    %c0_48 = arith.constant 0 : index
    %119 = vector.load %arg7[%c0_46, %c0_47, %c0_48] : memref<1x64x32xf32, #tpu.memory_space<vmem>>, vector<1x64x32xf32>
    %120 = vector.shape_cast %119 : vector<1x64x32xf32> to vector<64x32xf32>
    %121 = vector.shape_cast %118 : vector<64x32xf32> to vector<1x64x32xf32>
    tpu.vector_store %arg7[%c0_46, %c0_47, %c0_48], %121 {strides = array<i32>} : memref<1x64x32xf32, #tpu.memory_space<vmem>>, vector<1x64x32xf32>,
    return
  }
  func.func @transform_0(%arg0: i32) -> (i32, i32, i32) {
    %c0_i32 = arith.constant 0 : i32
    %c0_i32_0 = arith.constant 0 : i32
    %c0_i32_1 = arith.constant 0 : i32
    return %arg0, %c0_i32, %c0_i32_0 : i32, i32, i32
  }
  func.func @transform_1(%arg0: i32) -> (i32, i32) {
    %c0_i32 = arith.constant 0 : i32
    %c0_i32_0 = arith.constant 0 : i32
    %c0_i32_1 = arith.constant 0 : i32
    return %c0_i32, %c0_i32_0 : i32, i32
  }
  func.func @transform_2(%arg0: i32) -> (i32, i32) {
    %c0_i32 = arith.constant 0 : i32
    %c0_i32_0 = arith.constant 0 : i32
    %c0_i32_1 = arith.constant 0 : i32
    return %c0_i32, %c0_i32_0 : i32, i32
  }
  func.func @transform_3(%arg0: i32) -> (i32, i32, i32, i32) {
    %c0_i32 = arith.constant 0 : i32
    %c0_i32_0 = arith.constant 0 : i32
    %c0_i32_1 = arith.constant 0 : i32
    %c0_i32_2 = arith.constant 0 : i32
    %c0_i32_3 = arith.constant 0 : i32
    return %c0_i32, %c0_i32_0, %c0_i32_1, %c0_i32_2 : i32, i32, i32, i32
  }
  func.func @transform_4(%arg0: i32) -> (i32, i32) {
    %c0_i32 = arith.constant 0 : i32
    %c0_i32_0 = arith.constant 0 : i32
    %c0_i32_1 = arith.constant 0 : i32
    return %c0_i32, %c0_i32_0 : i32, i32
  }
  func.func @transform_5(%arg0: i32) -> (i32, i32) {
    %c0_i32 = arith.constant 0 : i32
    %c0_i32_0 = arith.constant 0 : i32
    %c0_i32_1 = arith.constant 0 : i32
    return %c0_i32, %c0_i32_0 : i32, i32
  }
  func.func @transform_6(%arg0: i32) -> (i32, i32, i32) {
    %c0_i32 = arith.constant 0 : i32
    %c0_i32_0 = arith.constant 0 : i32
    %c0_i32_1 = arith.constant 0 : i32
    return %arg0, %c0_i32, %c0_i32_0 : i32, i32, i32
  }
}

module attributes {stable_mosaic.version = 11 : i64} {
  func.func @_window_attn_kernel(%arg0: i32, %arg1: memref<1x64x32xf32, #tpu.memory_space<vmem>>, %arg2: memref<32x96xf32, #tpu.memory_space<vmem>>, %arg3: memref<1x96xf32, #tpu.memory_space<vmem>>, %arg4: memref<4x1x64x64xf32, #tpu.memory_space<vmem>>, %arg5: memref<32x32xf32, #tpu.memory_space<vmem>>, %arg6: memref<1x32xf32, #tpu.memory_space<vmem>>, %arg7: memref<1x64x32xf32, #tpu.memory_space<vmem>>) attributes {dimension_semantics = [#tpu.dimension_semantics<parallel>], iteration_bounds = array<i64: 1>, scalar_prefetch = 0 : i64, scratch_operands = 0 : i64, tpu.core_type = #tpu.core_type<tc>, window_params = [{transform_indices = @transform_0, window_bounds = array<i64: 1, 64, 32>}, {pipeline_mode = #tpu.pipeline_mode<synchronous>, transform_indices = @transform_1, window_bounds = array<i64: 32, 96>}, {pipeline_mode = #tpu.pipeline_mode<synchronous>, transform_indices = @transform_2, window_bounds = array<i64: 1, 96>}, {pipeline_mode = #tpu.pipeline_mode<synchronous>, transform_indices = @transform_3, window_bounds = array<i64: 4, 1, 64, 64>}, {pipeline_mode = #tpu.pipeline_mode<synchronous>, transform_indices = @transform_4, window_bounds = array<i64: 32, 32>}, {pipeline_mode = #tpu.pipeline_mode<synchronous>, transform_indices = @transform_5, window_bounds = array<i64: 1, 32>}, {transform_indices = @transform_6, window_bounds = array<i64: 1, 64, 32>}]} {
    %c0 = arith.constant 0 : index
    %c0_0 = arith.constant 0 : index
    %c0_1 = arith.constant 0 : index
    %0 = vector.load %arg1[%c0, %c0_0, %c0_1] : memref<1x64x32xf32, #tpu.memory_space<vmem>>, vector<1x64x32xf32>
    %1 = vector.shape_cast %0 : vector<1x64x32xf32> to vector<64x32xf32>
    %c0_2 = arith.constant 0 : index
    %c0_3 = arith.constant 0 : index
    %2 = vector.load %arg2[%c0_2, %c0_3] : memref<32x96xf32, #tpu.memory_space<vmem>>, vector<32x96xf32>
    %cst = arith.constant dense<0.000000e+00> : vector<64x96xf32>
    %3 = tpu.matmul %1, %2, %cst {dimension_numbers = #tpu.dot_dimension_numbers<[1], [0], [0], [1], [0, 0, 1, 1], [], []>} : vector<64x32xf32>, vector<32x96xf32>, vector<64x96xf32> -> vector<64x96xf32>
    %c0_4 = arith.constant 0 : index
    %c0_5 = arith.constant 0 : index
    %4 = vector.load %arg3[%c0_4, %c0_5] : memref<1x96xf32, #tpu.memory_space<vmem>>, vector<1x96xf32>
    %5 = vector.shape_cast %4 : vector<1x96xf32> to vector<96xf32>
    %6 = vector.shape_cast %5 : vector<96xf32> to vector<1x96xf32>
    %7 = vector.broadcast %6 : vector<1x96xf32> to vector<64x96xf32>
    %8 = arith.addf %3, %7 : vector<64x96xf32>
    %9 = vector.extract_strided_slice %8 {offsets = [0, 0], sizes = [64, 32], strides = [1, 1]} : vector<64x96xf32> to vector<64x32xf32>
    %10 = vector.shape_cast %9 : vector<64x32xf32> to vector<1x64x32xf32>
    %11 = vector.extract_strided_slice %8 {offsets = [0, 32], sizes = [64, 32], strides = [1, 1]} : vector<64x96xf32> to vector<64x32xf32>
    %12 = vector.shape_cast %11 : vector<64x32xf32> to vector<1x64x32xf32>
    %13 = vector.extract_strided_slice %8 {offsets = [0, 64], sizes = [64, 32], strides = [1, 1]} : vector<64x96xf32> to vector<64x32xf32>
    %14 = vector.shape_cast %13 : vector<64x32xf32> to vector<1x64x32xf32>
    %15 = vector.extract_strided_slice %10 {offsets = [0, 0, 0], sizes = [1, 64, 8], strides = [1, 1, 1]} : vector<1x64x32xf32> to vector<1x64x8xf32>
    %16 = vector.extract_strided_slice %12 {offsets = [0, 0, 0], sizes = [1, 64, 8], strides = [1, 1, 1]} : vector<1x64x32xf32> to vector<1x64x8xf32>
    "tpu.trace_start"() <{level = 10 : i32, message = "wnd,wmd->wnm"}> : () -> ()
    %cst_6 = arith.constant dense<0.000000e+00> : vector<1x64x64xf32>
    %17 = tpu.matmul %15, %16, %cst_6 {dimension_numbers = #tpu.dot_dimension_numbers<[2], [2], [1], [1], [0, 0, 0, 1, 1, 1], [0], [0]>} : vector<1x64x8xf32>, vector<1x64x8xf32>, vector<1x64x64xf32> -> vector<1x64x64xf32>
    "tpu.trace_stop"() : () -> ()
    %18 = vector.shape_cast %17 : vector<1x64x64xf32> to vector<1x1x64x64xf32>
    %c0_7 = arith.constant 0 : index
    %c0_8 = arith.constant 0 : index
    %c0_9 = arith.constant 0 : index
    %c0_10 = arith.constant 0 : index
    %19 = vector.load %arg4[%c0_7, %c0_8, %c0_9, %c0_10] : memref<4x1x64x64xf32, #tpu.memory_space<vmem>>, vector<1x1x64x64xf32>
    %20 = vector.shape_cast %19 : vector<1x1x64x64xf32> to vector<1x64x64xf32>
    %21 = vector.shape_cast %20 : vector<1x64x64xf32> to vector<1x1x64x64xf32>
    %22 = arith.addf %18, %21 : vector<1x1x64x64xf32>
    %23 = vector.shape_cast %22 : vector<1x1x64x64xf32> to vector<1x64x64xf32>
    %cst_11 = arith.constant dense<0xFF800000> : vector<1x64xf32>
    %24 = vector.multi_reduction <maximumf>, %23, %cst_11 [2] : vector<1x64x64xf32> to vector<1x64xf32>
    %25 = vector.shape_cast %24 : vector<1x64xf32> to vector<1x64x1xf32>
    %26 = vector.broadcast %25 : vector<1x64x1xf32> to vector<1x64x64xf32>
    %27 = arith.subf %23, %26 : vector<1x64x64xf32>
    %28 = math.exp %27 : vector<1x64x64xf32>
    %cst_12 = arith.constant dense<0.000000e+00> : vector<1x64xf32>
    %29 = vector.multi_reduction <add>, %28, %cst_12 [2] : vector<1x64x64xf32> to vector<1x64xf32>
    %30 = vector.shape_cast %29 : vector<1x64xf32> to vector<1x64x1xf32>
    %31 = tpu.reciprocal %30 {approx = true} : vector<1x64x1xf32> -> vector<1x64x1xf32>
    %32 = vector.broadcast %31 : vector<1x64x1xf32> to vector<1x64x64xf32>
    %33 = arith.mulf %28, %32 : vector<1x64x64xf32>
    %34 = vector.extract_strided_slice %14 {offsets = [0, 0, 0], sizes = [1, 64, 8], strides = [1, 1, 1]} : vector<1x64x32xf32> to vector<1x64x8xf32>
    "tpu.trace_start"() <{level = 10 : i32, message = "wnm,wmd->wnd"}> : () -> ()
    %cst_13 = arith.constant dense<0.000000e+00> : vector<1x64x8xf32>
    %35 = tpu.matmul %33, %34, %cst_13 {dimension_numbers = #tpu.dot_dimension_numbers<[2], [1], [1], [2], [0, 0, 0, 1, 1, 2], [0], [0]>} : vector<1x64x64xf32>, vector<1x64x8xf32>, vector<1x64x8xf32> -> vector<1x64x8xf32>
    "tpu.trace_stop"() : () -> ()
    %36 = vector.shape_cast %35 : vector<1x64x8xf32> to vector<64x8xf32>
    %c0_14 = arith.constant 0 : index
    %c0_15 = arith.constant 0 : index
    %37 = vector.load %arg5[%c0_14, %c0_15] : memref<32x32xf32, #tpu.memory_space<vmem>>, vector<8x32xf32>
    %cst_16 = arith.constant dense<0.000000e+00> : vector<64x32xf32>
    %38 = tpu.matmul %36, %37, %cst_16 {dimension_numbers = #tpu.dot_dimension_numbers<[1], [0], [0], [1], [0, 0, 1, 1], [], []>} : vector<64x8xf32>, vector<8x32xf32>, vector<64x32xf32> -> vector<64x32xf32>
    %39 = vector.extract_strided_slice %10 {offsets = [0, 0, 8], sizes = [1, 64, 8], strides = [1, 1, 1]} : vector<1x64x32xf32> to vector<1x64x8xf32>
    %40 = vector.extract_strided_slice %12 {offsets = [0, 0, 8], sizes = [1, 64, 8], strides = [1, 1, 1]} : vector<1x64x32xf32> to vector<1x64x8xf32>
    "tpu.trace_start"() <{level = 10 : i32, message = "wnd,wmd->wnm"}> : () -> ()
    %cst_17 = arith.constant dense<0.000000e+00> : vector<1x64x64xf32>
    %41 = tpu.matmul %39, %40, %cst_17 {dimension_numbers = #tpu.dot_dimension_numbers<[2], [2], [1], [1], [0, 0, 0, 1, 1, 1], [0], [0]>} : vector<1x64x8xf32>, vector<1x64x8xf32>, vector<1x64x64xf32> -> vector<1x64x64xf32>
    "tpu.trace_stop"() : () -> ()
    %42 = vector.shape_cast %41 : vector<1x64x64xf32> to vector<1x1x64x64xf32>
    %c1 = arith.constant 1 : index
    %c0_18 = arith.constant 0 : index
    %c0_19 = arith.constant 0 : index
    %c0_20 = arith.constant 0 : index
    %43 = vector.load %arg4[%c1, %c0_18, %c0_19, %c0_20] : memref<4x1x64x64xf32, #tpu.memory_space<vmem>>, vector<1x1x64x64xf32>
    %44 = vector.shape_cast %43 : vector<1x1x64x64xf32> to vector<1x64x64xf32>
    %45 = vector.shape_cast %44 : vector<1x64x64xf32> to vector<1x1x64x64xf32>
    %46 = arith.addf %42, %45 : vector<1x1x64x64xf32>
    %47 = vector.shape_cast %46 : vector<1x1x64x64xf32> to vector<1x64x64xf32>
    %cst_21 = arith.constant dense<0xFF800000> : vector<1x64xf32>
    %48 = vector.multi_reduction <maximumf>, %47, %cst_21 [2] : vector<1x64x64xf32> to vector<1x64xf32>
    %49 = vector.shape_cast %48 : vector<1x64xf32> to vector<1x64x1xf32>
    %50 = vector.broadcast %49 : vector<1x64x1xf32> to vector<1x64x64xf32>
    %51 = arith.subf %47, %50 : vector<1x64x64xf32>
    %52 = math.exp %51 : vector<1x64x64xf32>
    %cst_22 = arith.constant dense<0.000000e+00> : vector<1x64xf32>
    %53 = vector.multi_reduction <add>, %52, %cst_22 [2] : vector<1x64x64xf32> to vector<1x64xf32>
    %54 = vector.shape_cast %53 : vector<1x64xf32> to vector<1x64x1xf32>
    %55 = tpu.reciprocal %54 {approx = true} : vector<1x64x1xf32> -> vector<1x64x1xf32>
    %56 = vector.broadcast %55 : vector<1x64x1xf32> to vector<1x64x64xf32>
    %57 = arith.mulf %52, %56 : vector<1x64x64xf32>
    %58 = vector.extract_strided_slice %14 {offsets = [0, 0, 8], sizes = [1, 64, 8], strides = [1, 1, 1]} : vector<1x64x32xf32> to vector<1x64x8xf32>
    "tpu.trace_start"() <{level = 10 : i32, message = "wnm,wmd->wnd"}> : () -> ()
    %cst_23 = arith.constant dense<0.000000e+00> : vector<1x64x8xf32>
    %59 = tpu.matmul %57, %58, %cst_23 {dimension_numbers = #tpu.dot_dimension_numbers<[2], [1], [1], [2], [0, 0, 0, 1, 1, 2], [0], [0]>} : vector<1x64x64xf32>, vector<1x64x8xf32>, vector<1x64x8xf32> -> vector<1x64x8xf32>
    "tpu.trace_stop"() : () -> ()
    %60 = vector.shape_cast %59 : vector<1x64x8xf32> to vector<64x8xf32>
    %c8 = arith.constant 8 : index
    %c0_24 = arith.constant 0 : index
    %61 = vector.load %arg5[%c8, %c0_24] : memref<32x32xf32, #tpu.memory_space<vmem>>, vector<8x32xf32>
    %cst_25 = arith.constant dense<0.000000e+00> : vector<64x32xf32>
    %62 = tpu.matmul %60, %61, %cst_25 {dimension_numbers = #tpu.dot_dimension_numbers<[1], [0], [0], [1], [0, 0, 1, 1], [], []>} : vector<64x8xf32>, vector<8x32xf32>, vector<64x32xf32> -> vector<64x32xf32>
    %63 = arith.addf %38, %62 : vector<64x32xf32>
    %64 = vector.extract_strided_slice %10 {offsets = [0, 0, 16], sizes = [1, 64, 8], strides = [1, 1, 1]} : vector<1x64x32xf32> to vector<1x64x8xf32>
    %65 = vector.extract_strided_slice %12 {offsets = [0, 0, 16], sizes = [1, 64, 8], strides = [1, 1, 1]} : vector<1x64x32xf32> to vector<1x64x8xf32>
    "tpu.trace_start"() <{level = 10 : i32, message = "wnd,wmd->wnm"}> : () -> ()
    %cst_26 = arith.constant dense<0.000000e+00> : vector<1x64x64xf32>
    %66 = tpu.matmul %64, %65, %cst_26 {dimension_numbers = #tpu.dot_dimension_numbers<[2], [2], [1], [1], [0, 0, 0, 1, 1, 1], [0], [0]>} : vector<1x64x8xf32>, vector<1x64x8xf32>, vector<1x64x64xf32> -> vector<1x64x64xf32>
    "tpu.trace_stop"() : () -> ()
    %67 = vector.shape_cast %66 : vector<1x64x64xf32> to vector<1x1x64x64xf32>
    %c2 = arith.constant 2 : index
    %c0_27 = arith.constant 0 : index
    %c0_28 = arith.constant 0 : index
    %c0_29 = arith.constant 0 : index
    %68 = vector.load %arg4[%c2, %c0_27, %c0_28, %c0_29] : memref<4x1x64x64xf32, #tpu.memory_space<vmem>>, vector<1x1x64x64xf32>
    %69 = vector.shape_cast %68 : vector<1x1x64x64xf32> to vector<1x64x64xf32>
    %70 = vector.shape_cast %69 : vector<1x64x64xf32> to vector<1x1x64x64xf32>
    %71 = arith.addf %67, %70 : vector<1x1x64x64xf32>
    %72 = vector.shape_cast %71 : vector<1x1x64x64xf32> to vector<1x64x64xf32>
    %cst_30 = arith.constant dense<0xFF800000> : vector<1x64xf32>
    %73 = vector.multi_reduction <maximumf>, %72, %cst_30 [2] : vector<1x64x64xf32> to vector<1x64xf32>
    %74 = vector.shape_cast %73 : vector<1x64xf32> to vector<1x64x1xf32>
    %75 = vector.broadcast %74 : vector<1x64x1xf32> to vector<1x64x64xf32>
    %76 = arith.subf %72, %75 : vector<1x64x64xf32>
    %77 = math.exp %76 : vector<1x64x64xf32>
    %cst_31 = arith.constant dense<0.000000e+00> : vector<1x64xf32>
    %78 = vector.multi_reduction <add>, %77, %cst_31 [2] : vector<1x64x64xf32> to vector<1x64xf32>
    %79 = vector.shape_cast %78 : vector<1x64xf32> to vector<1x64x1xf32>
    %80 = tpu.reciprocal %79 {approx = true} : vector<1x64x1xf32> -> vector<1x64x1xf32>
    %81 = vector.broadcast %80 : vector<1x64x1xf32> to vector<1x64x64xf32>
    %82 = arith.mulf %77, %81 : vector<1x64x64xf32>
    %83 = vector.extract_strided_slice %14 {offsets = [0, 0, 16], sizes = [1, 64, 8], strides = [1, 1, 1]} : vector<1x64x32xf32> to vector<1x64x8xf32>
    "tpu.trace_start"() <{level = 10 : i32, message = "wnm,wmd->wnd"}> : () -> ()
    %cst_32 = arith.constant dense<0.000000e+00> : vector<1x64x8xf32>
    %84 = tpu.matmul %82, %83, %cst_32 {dimension_numbers = #tpu.dot_dimension_numbers<[2], [1], [1], [2], [0, 0, 0, 1, 1, 2], [0], [0]>} : vector<1x64x64xf32>, vector<1x64x8xf32>, vector<1x64x8xf32> -> vector<1x64x8xf32>
    "tpu.trace_stop"() : () -> ()
    %85 = vector.shape_cast %84 : vector<1x64x8xf32> to vector<64x8xf32>
    %c16 = arith.constant 16 : index
    %c0_33 = arith.constant 0 : index
    %86 = vector.load %arg5[%c16, %c0_33] : memref<32x32xf32, #tpu.memory_space<vmem>>, vector<8x32xf32>
    %cst_34 = arith.constant dense<0.000000e+00> : vector<64x32xf32>
    %87 = tpu.matmul %85, %86, %cst_34 {dimension_numbers = #tpu.dot_dimension_numbers<[1], [0], [0], [1], [0, 0, 1, 1], [], []>} : vector<64x8xf32>, vector<8x32xf32>, vector<64x32xf32> -> vector<64x32xf32>
    %88 = arith.addf %63, %87 : vector<64x32xf32>
    %89 = vector.extract_strided_slice %10 {offsets = [0, 0, 24], sizes = [1, 64, 8], strides = [1, 1, 1]} : vector<1x64x32xf32> to vector<1x64x8xf32>
    %90 = vector.extract_strided_slice %12 {offsets = [0, 0, 24], sizes = [1, 64, 8], strides = [1, 1, 1]} : vector<1x64x32xf32> to vector<1x64x8xf32>
    "tpu.trace_start"() <{level = 10 : i32, message = "wnd,wmd->wnm"}> : () -> ()
    %cst_35 = arith.constant dense<0.000000e+00> : vector<1x64x64xf32>
    %91 = tpu.matmul %89, %90, %cst_35 {dimension_numbers = #tpu.dot_dimension_numbers<[2], [2], [1], [1], [0, 0, 0, 1, 1, 1], [0], [0]>} : vector<1x64x8xf32>, vector<1x64x8xf32>, vector<1x64x64xf32> -> vector<1x64x64xf32>
    "tpu.trace_stop"() : () -> ()
    %92 = vector.shape_cast %91 : vector<1x64x64xf32> to vector<1x1x64x64xf32>
    %c3 = arith.constant 3 : index
    %c0_36 = arith.constant 0 : index
    %c0_37 = arith.constant 0 : index
    %c0_38 = arith.constant 0 : index
    %93 = vector.load %arg4[%c3, %c0_36, %c0_37, %c0_38] : memref<4x1x64x64xf32, #tpu.memory_space<vmem>>, vector<1x1x64x64xf32>
    %94 = vector.shape_cast %93 : vector<1x1x64x64xf32> to vector<1x64x64xf32>
    %95 = vector.shape_cast %94 : vector<1x64x64xf32> to vector<1x1x64x64xf32>
    %96 = arith.addf %92, %95 : vector<1x1x64x64xf32>
    %97 = vector.shape_cast %96 : vector<1x1x64x64xf32> to vector<1x64x64xf32>
    %cst_39 = arith.constant dense<0xFF800000> : vector<1x64xf32>
    %98 = vector.multi_reduction <maximumf>, %97, %cst_39 [2] : vector<1x64x64xf32> to vector<1x64xf32>
    %99 = vector.shape_cast %98 : vector<1x64xf32> to vector<1x64x1xf32>
    %100 = vector.broadcast %99 : vector<1x64x1xf32> to vector<1x64x64xf32>
    %101 = arith.subf %97, %100 : vector<1x64x64xf32>
    %102 = math.exp %101 : vector<1x64x64xf32>
    %cst_40 = arith.constant dense<0.000000e+00> : vector<1x64xf32>
    %103 = vector.multi_reduction <add>, %102, %cst_40 [2] : vector<1x64x64xf32> to vector<1x64xf32>
    %104 = vector.shape_cast %103 : vector<1x64xf32> to vector<1x64x1xf32>
    %105 = tpu.reciprocal %104 {approx = true} : vector<1x64x1xf32> -> vector<1x64x1xf32>
    %106 = vector.broadcast %105 : vector<1x64x1xf32> to vector<1x64x64xf32>
    %107 = arith.mulf %102, %106 : vector<1x64x64xf32>
    %108 = vector.extract_strided_slice %14 {offsets = [0, 0, 24], sizes = [1, 64, 8], strides = [1, 1, 1]} : vector<1x64x32xf32> to vector<1x64x8xf32>
    "tpu.trace_start"() <{level = 10 : i32, message = "wnm,wmd->wnd"}> : () -> ()
    %cst_41 = arith.constant dense<0.000000e+00> : vector<1x64x8xf32>
    %109 = tpu.matmul %107, %108, %cst_41 {dimension_numbers = #tpu.dot_dimension_numbers<[2], [1], [1], [2], [0, 0, 0, 1, 1, 2], [0], [0]>} : vector<1x64x64xf32>, vector<1x64x8xf32>, vector<1x64x8xf32> -> vector<1x64x8xf32>
    "tpu.trace_stop"() : () -> ()
    %110 = vector.shape_cast %109 : vector<1x64x8xf32> to vector<64x8xf32>
    %c24 = arith.constant 24 : index
    %c0_42 = arith.constant 0 : index
    %111 = vector.load %arg5[%c24, %c0_42] : memref<32x32xf32, #tpu.memory_space<vmem>>, vector<8x32xf32>
    %cst_43 = arith.constant dense<0.000000e+00> : vector<64x32xf32>
    %112 = tpu.matmul %110, %111, %cst_43 {dimension_numbers = #tpu.dot_dimension_numbers<[1], [0], [0], [1], [0, 0, 1, 1], [], []>} : vector<64x8xf32>, vector<8x32xf32>, vector<64x32xf32> -> vector<64x32xf32>
    %113 = arith.addf %88, %112 : vector<64x32xf32>
    %c0_44 = arith.constant 0 : index
    %c0_45 = arith.constant 0 : index
    %114 = vector.load %arg6[%c0_44, %c0_45] : memref<1x32xf32, #tpu.memory_space<vmem>>, vector<1x32xf32>
    %115 = vector.shape_cast %114 : vector<1x32xf32> to vector<32xf32>
    %116 = vector.shape_cast %115 : vector<32xf32> to vector<1x32xf32>
    %117 = vector.broadcast %116 : vector<1x32xf32> to vector<64x32xf32>
    %118 = arith.addf %113, %117 : vector<64x32xf32>
    %c0_46 = arith.constant 0 : index
    %c0_47 = arith.constant 0 : index
    %c0_48 = arith.constant 0 : index
    %119 = vector.load %arg7[%c0_46, %c0_47, %c0_48] : memref<1x64x32xf32, #tpu.memory_space<vmem>>, vector<1x64x32xf32>
    %120 = vector.shape_cast %119 : vector<1x64x32xf32> to vector<64x32xf32>
    %121 = vector.shape_cast %118 : vector<64x32xf32> to vector<1x64x32xf32>
    tpu.vector_store %arg7[%c0_46, %c0_47, %c0_48], %121 {strides = array<i32>} : memref<1x64x32xf32, #tpu.memory_space<vmem>>, vector<1x64x32xf32>,
    return
  }
  func.func @transform_0(%arg0: i32) -> (i32, i32, i32) {
    %c0_i32 = arith.constant 0 : i32
    %c0_i32_0 = arith.constant 0 : i32
    %c0_i32_1 = arith.constant 0 : i32
    return %arg0, %c0_i32, %c0_i32_0 : i32, i32, i32
  }
  func.func @transform_1(%arg0: i32) -> (i32, i32) {
    %c0_i32 = arith.constant 0 : i32
    %c0_i32_0 = arith.constant 0 : i32
    %c0_i32_1 = arith.constant 0 : i32
    return %c0_i32, %c0_i32_0 : i32, i32
  }
  func.func @transform_2(%arg0: i32) -> (i32, i32) {
    %c0_i32 = arith.constant 0 : i32
    %c0_i32_0 = arith.constant 0 : i32
    %c0_i32_1 = arith.constant 0 : i32
    return %c0_i32, %c0_i32_0 : i32, i32
  }
  func.func @transform_3(%arg0: i32) -> (i32, i32, i32, i32) {
    %c0_i32 = arith.constant 0 : i32
    %c0_i32_0 = arith.constant 0 : i32
    %c0_i32_1 = arith.constant 0 : i32
    %c0_i32_2 = arith.constant 0 : i32
    %c0_i32_3 = arith.constant 0 : i32
    return %c0_i32, %c0_i32_0, %c0_i32_1, %c0_i32_2 : i32, i32, i32, i32
  }
  func.func @transform_4(%arg0: i32) -> (i32, i32) {
    %c0_i32 = arith.constant 0 : i32
    %c0_i32_0 = arith.constant 0 : i32
    %c0_i32_1 = arith.constant 0 : i32
    return %c0_i32, %c0_i32_0 : i32, i32
  }
  func.func @transform_5(%arg0: i32) -> (i32, i32) {
    %c0_i32 = arith.constant 0 : i32
    %c0_i32_0 = arith.constant 0 : i32
    %c0_i32_1 = arith.constant 0 : i32
    return %c0_i32, %c0_i32_0 : i32, i32
  }
  func.func @transform_6(%arg0: i32) -> (i32, i32, i32) {
    %c0_i32 = arith.constant 0 : i32
    %c0_i32_0 = arith.constant 0 : i32
    %c0_i32_1 = arith.constant 0 : i32
    return %arg0, %c0_i32, %c0_i32_0 : i32, i32, i32
  }
}

</mosaic_0001>

<bundles_post_ra>
// kernel: tpu_custom_call.1
= control target key start
LH: loop header
LB: loop body
LE: loop exit
PB: predicated region body
PF: predicated region fallthrough
CT: control target
= control target key end

     0   :  { %11 = vsyncpa [#allocation3], 0  ;;  %s3245_s21 = smov [#allocation2]   ;;  %s3995_s0 = inlined_call_operand.vmem [shape: f32[1,64,32], index: 0, kind: input, shape index: {}]   ;;  %s3996_s1 = inlined_call_operand.vmem [shape: f32[32,96], index: 1, kind: input, shape index: {}]   ;;  %s3997_s2 = inlined_call_operand.vmem [shape: f32[1,96], index: 2, kind: input, shape index: {}]   ;;  %s3998_s3 = inlined_call_operand.hbm [shape: f32[4,1,64,64], index: 3, kind: input, shape index: {}]   ;;  %s3999_s4 = inlined_call_operand.vmem [shape: f32[32,32], index: 4, kind: input, shape index: {}]   ;;  %s4000_s5 = inlined_call_operand.vmem [shape: f32[1,32], index: 5, kind: input, shape index: {}]   ;;  %s4001_s6 = inlined_call_operand.vmem [shape: f32[1,64,32], index: 6, kind: output, shape index: {}]  }
   0x1   :  { %s23_s22 = sshll.u32 %s3245_s21, 4  ;;  %s24_s22 = int_to_ptr.vmem [resolvable:$true] %s23_s22 }
   0x2   :  { %s3231_s23 = scalar_lea.vmem %s24_s22, 4096  ;;  %p3236_p1 = scmp.lt.s32.totalorder %s24_s22, %s24_s22 }
   0x3   :  { %p3232_p0 = scmp.ne.s32.totalorder %s24_s22, %s3231_s23  ;;  %p3237_p2 = scmp.lt.s32.totalorder %s3231_s23, %s3231_s23 }
   0x5   :  { %p3238_p3 = por %p3237_p2, %p3236_p1 }
   0x7   :  { %p3239_p4 = pnand %p3238_p3, %p3232_p0 }
   0x9   :  { %3242 = shalt.err (!%p3239_p4)
}
   0xa   :  { %s3246_s24 = smov 128   ;;  %s3247_s25 = smov 8  }
   0xb   :  { %29 = dma.hbm_to_vmem [thread:$0]  %s3998_s3, 4096, %s24_s22, [#allocation3], %s3246_s24, %s3246_s24, %s3247_s25  }
   0xc   :  { %3243 = dma.done.wait [#allocation3], 4096  }
   0xd   :  { %3244 = vsyncadd [#allocation3], 4294963200  ;;  %vm56_vm0 = vcmask 261120   ;;  %v48_v0 = vld [vmem:[%s3996_s1 + $0x18] sm:$0xff]  ;;  %v47_v1 = vld [vmem:[%s3996_s1 + $0x10] sm:$0xff]  ;;  %vm210_vm1 = vcmask 64512  }
   0xe   :  { %2765 = vmatprep.subr.mxu0 %v48_v0  ;;  %v37_v2 = vld [vmem:[%s3995_s0] sm:$0xff]  ;;  %v46_v3 = vld [vmem:[%s3996_s1 + $0x8] sm:$0xff]  ;;  %v39_v6 = vld [vmem:[%s3995_s0 + $0x10] sm:$0xff]  ;;  %s3250_s28 = smov 88   ;;  %vm364_vm2 = vcmask 523264   ;;  %s3251_s29 = smov 120  }
   0xf   :  { %2766 = vmatpush3.msra.mxu0 %v48_v0  ;;  %2773 = vmatprep.mubr.msk.f32.mxu0 %vm56_vm0, %v37_v2  ;;  %v45_v4 = vld [vmem:[%s3996_s1] sm:$0xff]  ;;  %v38_v5 = vld [vmem:[%s3995_s0 + $0x8] sm:$0xff]  ;;  %v40_v7 = vld [vmem:[%s3995_s0 + $0x18] sm:$0xff]  ;;  %s3252_s30 = smov 56   ;;  %s3253_s9 = smov 80  }
  0x10   :  { %2767 = vmatprep.subr.mxu0 %v47_v1  ;;  %v41_v8 = vld [vmem:[%s3995_s0 + $0x20] sm:$0xff]  ;;  %v42_v9 = vld [vmem:[%s3995_s0 + $0x28] sm:$0xff]  ;;  %v43_v10 = vld [vmem:[%s3995_s0 + $0x30] sm:$0xff]  ;;  %s3254_s10 = smov 112   ;;  %s3255_s11 = smov 72  }
  0x11   :  { %2768 = vmatpush3.msra.mxu0 %v47_v1  ;;  %v44_v11 = vld [vmem:[%s3995_s0 + $0x38] sm:$0xff]  ;;  %v2451_v13 = vld [vmem:[%s3997_s2] ss:$0 sm:$0xff]  ;;  %s3248_s0 = smov 96   ;;  %s3249_s2 = smov 64   ;;  %v349_v46 = vld [vmem:[#allocation2 + $0x8] sm:$0xff] }
  0x12   :  { %2769 = vmatprep.subr.mxu0 %v46_v3  ;;  %v348_v48 = vld [vmem:[#allocation2] sm:$0xff]  ;;  %v351_v51 = vld [vmem:[#allocation2 + $0x18] sm:$0xff]  ;;  %v350_v58 = vld [vmem:[#allocation2 + $0x10] sm:$0xff]  ;;  %s3256_s3 = smov 104   ;;  %s3257_s14 = smov 48  }
  0x13   :  { %2770 = vmatpush3.msra.mxu0 %v46_v3  ;;  %v352_v60 = vld [vmem:[#allocation2 + $0x20] sm:$0xff]  ;;  %v353_v63 = vld [vmem:[#allocation2 + $0x28] sm:$0xff]  ;;  %v354_v3 = vld [vmem:[#allocation2 + $0x30] sm:$0xff]  ;;  %s3258_s15 = smov 40  }
  0x14   :  { %2771 = vmatprep.subr.mxu0 %v45_v4 }
  0x15   :  { %2772 = vmatpush3.msra.mxu0 %v45_v4 }
  0x16   :  { %2774 = vmatmul.mubr.msk.f32.vlgmr.msra.gmra.mxu0 %vm56_vm0, %v38_v5 }
  0x17   :  { %2776 = vmatprep.mubr.msk.f32.mxu0 %vm56_vm0, %v39_v6 }
  0x1a   :  { %2777 = vmatmul.mubr.msk.f32.gmra.mxu0 %vm56_vm0, %v40_v7  ;;  %v355_v7 = vld [vmem:[#allocation2 + $0x38] sm:$0xff] }
  0x1b   :  { %2779 = vmatprep.mubr.msk.f32.mxu0 %vm56_vm0, %v41_v8 }
  0x1e   :  { %2780 = vmatmul.mubr.msk.f32.gmra.mxu0 %vm56_vm0, %v42_v9 }
  0x1f   :  { %2782 = vmatprep.mubr.msk.f32.mxu0 %vm56_vm0, %v43_v10 }
  0x22   :  { %2783 = vmatmul.mubr.msk.f32.gmra.mxu0 %vm56_vm0, %v44_v11 }
  0xd6   :  { %v2775_v12 = vpop.f32.mrf.mxu0 }
  0xd7   :  { %v3367_v28 = vadd.f32 %v2775_v12, %v2451_v13 }
  0xd8   :  { %v147_v14 = vpop.f32.mrf.mxu0 }
  0xd9   :  { %v3344_v15 = vadd.f32 %v2451_v13, %v147_v14 }
  0xda   :  { %v2778_v16 = vpop.f32.mrf.mxu0 }
  0xdb   :  { %2801 = vmatprep.mubr.msk.f32.mxu1 %vm210_vm1, %v3344_v15  ;;  %v3363_v27 = vadd.f32 %v2778_v16, %v2451_v13 }
  0xdc   :  { %v157_v17 = vpop.f32.mrf.mxu0 }
  0xdd   :  { %v3357_v25 = vadd.f32 %v2451_v13, %v157_v17 }
  0xde   :  { %v2781_v18 = vpop.f32.mrf.mxu0 }
  0xdf   :  { %v3348_v19 = vadd.f32 %v2781_v18, %v2451_v13 }
  0xe0   :  { %v167_v20 = vpop.f32.mrf.mxu0 }
  0xe1   :  { %204 = vrot.lane.b32.xlu1 %v3348_v19, %s3248_s0  ;;  %v3351_v22 = vadd.f32 %v2451_v13, %v167_v20 }
  0xe2   :  { %v2784_v21 = vpop.f32.mrf.mxu0 }
  0xe3   :  { %v3353_v23 = vadd.f32 %v2784_v21, %v2451_v13 }
  0xe4   :  { %v177_v24 = vpop.f32.mrf.mxu0 }
  0xe5   :  { %208 = vrot.lane.b32.xlu0 %v3353_v23, %s3248_s0  ;;  %202 = vrot.lane.b32.xlu1 %v3351_v22, %s3248_s0  ;;  %v3359_v26 = vadd.f32 %v2451_v13, %v177_v24 }
  0xe9   :  { %206 = vrot.lane.b32.xlu0 %v3359_v26, %s3248_s0  ;;  %198 = vrot.lane.b32.xlu1 %v3357_v25, %s3248_s0 }
  0xed   :  { %200 = vrot.lane.b32.xlu0 %v3363_v27, %s3248_s0  ;;  %194 = vrot.lane.b32.xlu1 %v3344_v15, %s3248_s0 }
  0xf1   :  { %196 = vrot.lane.b32.xlu0 %v3367_v28, %s3248_s0  ;;  %467 = vrot.lane.b32.xlu1 %v3353_v23, %s3249_s2 }
  0xf5   :  { %459 = vrot.lane.b32.xlu0 %v3363_v27, %s3249_s2  ;;  %463 = vrot.lane.b32.xlu1 %v3348_v19, %s3249_s2 }
  0xf9   :  { %455 = vrot.lane.b32.xlu0 %v3367_v28, %s3249_s2  ;;  %461 = vrot.lane.b32.xlu1 %v3351_v22, %s3249_s2 }
  0xfd   :  { %637 = vrot.lane.b32.xlu0 %v3353_v23, %s3250_s28  ;;  %457 = vrot.lane.b32.xlu1 %v3357_v25, %s3249_s2 }
 0x101   :  { %465 = vrot.lane.b32.xlu0 %v3359_v26, %s3249_s2  ;;  %453 = vrot.lane.b32.xlu1 %v3344_v15, %s3249_s2 }
 0x105   :  { %635 = vrot.lane.b32.xlu1 %v3359_v26, %s3250_s28 }
 0x153   :  { %v205_v29 = vpop.permute.xlu1 %204 }
 0x157   :  { %v209_v30 = vpop.permute.xlu0 %208  ;;  %v203_v31 = vpop.permute.xlu1 %202 }
 0x158   :  { %2785 = vmatprep.subr.msk.mxu1 %vm210_vm1, %v209_v30 }
 0x159   :  { %2786 = vmatpush3.xpose.msk.msra.mxu1 %vm210_vm1, %v209_v30 }
 0x15b   :  { %v207_v32 = vpop.permute.xlu0 %206  ;;  %v199_v33 = vpop.permute.xlu1 %198 }
 0x15c   :  { %2787 = vmatprep.subr.msk.mxu1 %vm210_vm1, %v207_v32 }
 0x15d   :  { %2788 = vmatpush3.xpose.msk.msra.mxu1 %vm210_vm1, %v207_v32 }
 0x15e   :  { %2789 = vmatprep.subr.msk.mxu1 %vm210_vm1, %v205_v29 }
 0x15f   :  { %v201_v34 = vpop.permute.xlu0 %200  ;;  %v195_v35 = vpop.permute.xlu1 %194 }
 0x161   :  { %2790 = vmatpush3.xpose.msk.msra.mxu1 %vm210_vm1, %v205_v29 }
 0x162   :  { %2791 = vmatprep.subr.msk.mxu1 %vm210_vm1, %v203_v31 }
 0x163   :  { %v197_v36 = vpop.permute.xlu0 %196  ;;  %v468_v37 = vpop.permute.xlu1 %467 }
 0x164   :  { %2813 = vmatprep.subr.mxu0 %v468_v37 }
 0x165   :  { %2792 = vmatpush3.xpose.msk.msra.mxu1 %vm210_vm1, %v203_v31  ;;  %2814 = vmatpush3.msra.mxu0 %v468_v37 }
 0x166   :  { %2793 = vmatprep.subr.msk.mxu1 %vm210_vm1, %v201_v34 }
 0x167   :  { %v460_v38 = vpop.permute.xlu0 %459  ;;  %v464_v40 = vpop.permute.xlu1 %463 }
 0x169   :  { %2794 = vmatpush3.xpose.msk.msra.mxu1 %vm210_vm1, %v201_v34 }
 0x16a   :  { %2795 = vmatprep.subr.msk.mxu1 %vm210_vm1, %v199_v33 }
 0x16b   :  { %v456_v39 = vpop.permute.xlu0 %455  ;;  %v462_v42 = vpop.permute.xlu1 %461 }
 0x16d   :  { %2796 = vmatpush3.xpose.msk.msra.mxu1 %vm210_vm1, %v199_v33 }
 0x16e   :  { %2797 = vmatprep.subr.msk.mxu1 %vm210_vm1, %v197_v36 }
 0x16f   :  { %v3395_v41 = vpop.permute.xlu0 %637  ;;  %v458_v44 = vpop.permute.xlu1 %457 }
 0x171   :  { %2798 = vmatpush3.xpose.msk.msra.mxu1 %vm210_vm1, %v197_v36 }
 0x172   :  { %2799 = vmatprep.subr.msk.mxu1 %vm210_vm1, %v195_v35 }
 0x173   :  { %v466_v43 = vpop.permute.xlu0 %465  ;;  %v454_v45 = vpop.permute.xlu1 %453 }
 0x174   :  { %2815 = vmatprep.subr.mxu0 %v466_v43 }
 0x175   :  { %2800 = vmatpush3.xpose.msk.msra.mxu1 %vm210_vm1, %v195_v35  ;;  %2816 = vmatpush3.msra.mxu0 %v466_v43 }
 0x176   :  { %2817 = vmatprep.subr.mxu0 %v464_v40 }
 0x177   :  { %2818 = vmatpush3.msra.mxu0 %v464_v40  ;;  %v3428_v14 = vpop.permute.xlu1 %635 }
 0x178   :  { %2802 = vmatmul.mubr.msk.f32.vlgmr.msra.gmra.mxu1 %vm210_vm1, %v3367_v28  ;;  %2819 = vmatprep.subr.mxu0 %v462_v42 }
 0x179   :  { %2804 = vmatprep.mubr.msk.f32.mxu1 %vm210_vm1, %v3357_v25  ;;  %2820 = vmatpush3.msra.mxu0 %v462_v42 }
 0x17a   :  { %2821 = vmatprep.subr.mxu0 %v460_v38 }
 0x17b   :  { %2822 = vmatpush3.msra.mxu0 %v460_v38 }
 0x17c   :  { %2805 = vmatmul.mubr.msk.f32.gmra.mxu1 %vm210_vm1, %v3363_v27  ;;  %2823 = vmatprep.subr.mxu0 %v458_v44 }
 0x17d   :  { %2807 = vmatprep.mubr.msk.f32.mxu1 %vm210_vm1, %v3351_v22  ;;  %2824 = vmatpush3.msra.mxu0 %v458_v44 }
 0x17e   :  { %2825 = vmatprep.subr.mxu0 %v456_v39 }
 0x17f   :  { %2826 = vmatpush3.msra.mxu0 %v456_v39 }
 0x180   :  { %2808 = vmatmul.mubr.msk.f32.gmra.mxu1 %vm210_vm1, %v3348_v19  ;;  %2827 = vmatprep.subr.mxu0 %v454_v45 }
 0x181   :  { %2810 = vmatprep.mubr.msk.f32.mxu1 %vm210_vm1, %v3359_v26  ;;  %2828 = vmatpush3.msra.mxu0 %v454_v45 }
 0x182   :  { %2841 = vmatprep.subr.msk.mxu0 %vm210_vm1, %v3395_v41 }
 0x184   :  { %2811 = vmatmul.mubr.msk.f32.gmra.mxu1 %vm210_vm1, %v3353_v23 }
 0x238   :  { %v2803_v47 = vpop.f32.mrf.mxu1 }
 0x239   :  { %v357_v49 = vadd.f32 %v2803_v47, %v349_v46 }
 0x23a   :  { %v309_v50 = vpop.f32.mrf.mxu1 }
 0x23b   :  { %v356_v52 = vadd.f32 %v348_v48, %v309_v50  ;;  %v368_v53 = vsel %vm364_vm2, %v357_v49, -inf }
 0x23c   :  { %369 = vmax.xlane.f32.xlu1 %v368_v53  ;;  %v2806_v54 = vpop.f32.mrf.mxu1 }
 0x23d   :  { %v359_v55 = vadd.f32 %v2806_v54, %v351_v51  ;;  %v365_v56 = vsel %vm364_vm2, %v356_v52, -inf }
 0x23e   :  { %366 = vmax.xlane.f32.xlu0 %v365_v56  ;;  %v319_v57 = vpop.f32.mrf.mxu1 }
 0x23f   :  { %v358_v61 = vadd.f32 %v350_v58, %v319_v57  ;;  %v374_v62 = vsel %vm364_vm2, %v359_v55, -inf }
 0x240   :  { %v2809_v59 = vpop.f32.mrf.mxu1 }
 0x241   :  { %v361_v4 = vadd.f32 %v2809_v59, %v353_v63  ;;  %v371_v5 = vsel %vm364_vm2, %v358_v61, -inf }
 0x242   :  { %375 = vmax.xlane.f32.xlu0 %v374_v62  ;;  %v329_v0 = vpop.f32.mrf.mxu1 }
 0x243   :  { %v360_v1 = vadd.f32 %v352_v60, %v329_v0  ;;  %v380_v11 = vsel %vm364_vm2, %v361_v4, -inf }
 0x244   :  { %v2812_v2 = vpop.f32.mrf.mxu1 }
 0x245   :  { %v377_v6 = vsel %vm364_vm2, %v360_v1, -inf  ;;  %v363_v10 = vadd.f32 %v2812_v2, %v355_v7 }
 0x246   :  { %372 = vmax.xlane.f32.xlu0 %v371_v5  ;;  %378 = vmax.xlane.f32.xlu1 %v377_v6  ;;  %v339_v8 = vpop.f32.mrf.mxu1 }
 0x247   :  { %v362_v9 = vadd.f32 %v354_v3, %v339_v8  ;;  %v386_v13 = vsel %vm364_vm2, %v363_v10, -inf }
 0x249   :  { %v383_v12 = vsel %vm364_vm2, %v362_v9, -inf }
 0x24a   :  { %381 = vmax.xlane.f32.xlu0 %v380_v11  ;;  %384 = vmax.xlane.f32.xlu1 %v383_v12 }
 0x24e   :  { %387 = vmax.xlane.f32.xlu0 %v386_v13 }
 0x25b   :  { %631 = vrot.lane.b32.xlu1 %v3351_v22, %s3250_s28 }
 0x264   :  { %633 = vrot.lane.b32.xlu0 %v3348_v19, %s3250_s28 }
 0x2c5   :  { %v370_v16 = vpop.xlane.xlu1 %369 }
 0x2c6   :  { %v390_v17 = vsub.f32 %v357_v49, %v370_v16 }
 0x2c7   :  { %v367_v18 = vpop.xlane.xlu0 %366 }
 0x2c8   :  { %v399_v20 = vmul.f32 1.442695, %v390_v17  ;;  %v389_v21 = vsub.f32 %v356_v52, %v367_v18 }
 0x2ca   :  { %3095 = vpow2.f32 %v399_v20  ;;  %v397_v24 = vmul.f32 1.442695, %v389_v21 }
 0x2cb   :  { %v376_v33 = vpop.xlane.xlu0 %375 }
 0x2cc   :  { %3097 = vpow2.f32 %v397_v24  ;;  %v392_v38 = vsub.f32 %v359_v55, %v376_v33 }
 0x2ce   :  { %v403_v43 = vmul.f32 1.442695, %v392_v38 }
 0x2cf   :  { %v373_v34 = vpop.xlane.xlu0 %372  ;;  %v379_v35 = vpop.xlane.xlu1 %378 }
 0x2d0   :  { %v391_v36 = vsub.f32 %v358_v61, %v373_v34  ;;  %v393_v40 = vsub.f32 %v360_v1, %v379_v35 }
 0x2d2   :  { %v401_v39 = vmul.f32 1.442695, %v391_v36  ;;  %v405_v46 = vmul.f32 1.442695, %v393_v40 }
 0x2d3   :  { %v382_v37 = vpop.xlane.xlu0 %381  ;;  %v385_v42 = vpop.xlane.xlu1 %384 }
 0x2d4   :  { %v394_v44 = vsub.f32 %v361_v4, %v382_v37  ;;  %3099 = vpow2.f32 %v401_v39  ;;  %v395_v47 = vsub.f32 %v362_v9, %v385_v42 }
 0x2d5   :  { %3101 = vpow2.f32 %v403_v43 }
 0x2d6   :  { %v407_v48 = vmul.f32 1.442695, %v394_v44  ;;  %3103 = vpow2.f32 %v405_v46  ;;  %v409_v50 = vmul.f32 1.442695, %v395_v47  ;;  %v606_v46 = vld [vmem:[%s3999_s4] sm:$0xff] }
 0x2d7   :  { %v3430_v29 = vpop.eup %3095  ;;  %v388_v45 = vpop.xlane.xlu0 %387 }
 0x2d8   :  { %v416_v30 = vsel %vm364_vm2, %v3430_v29, 0.0  ;;  %v396_v49 = vsub.f32 %v363_v10, %v388_v45  ;;  %3105 = vpow2.f32 %v407_v48  ;;  %v632_v1 = vpop.permute.xlu1 %631 }
 0x2d9   :  { %v3434_v31 = vpop.eup %3097  ;;  %417 = vadd.xlane.f32.xlu0 %v416_v30  ;;  %3107 = vpow2.f32 %v409_v50 }
 0x2da   :  { %v413_v32 = vsel %vm364_vm2, %v3434_v31, 0.0  ;;  %v411_v51 = vmul.f32 1.442695, %v396_v49 }
 0x2db   :  { %414 = vadd.xlane.f32.xlu1 %v413_v32  ;;  %v634_v0 = vpop.permute.xlu0 %633 }
 0x2dc   :  { %3109 = vpow2.f32 %v411_v51 }
 0x2e1   :  { %v3442_v52 = vpop.eup %3099 }
 0x2e2   :  { %v3444_v53 = vpop.eup %3101  ;;  %v419_v54 = vsel %vm364_vm2, %v3442_v52, 0.0 }
 0x2e3   :  { %v3448_v55 = vpop.eup %3103  ;;  %v422_v56 = vsel %vm364_vm2, %v3444_v53, 0.0 }
 0x2e4   :  { %v425_v58 = vsel %vm364_vm2, %v3448_v55, 0.0 }
 0x2e5   :  { %v3452_v57 = vpop.eup %3105 }
 0x2e6   :  { %v3456_v59 = vpop.eup %3107  ;;  %v428_v60 = vsel %vm364_vm2, %v3452_v57, 0.0 }
 0x2e7   :  { %v431_v62 = vsel %vm364_vm2, %v3456_v59, 0.0 }
 0x2e9   :  { %v3460_v61 = vpop.eup %3109 }
 0x2ea   :  { %v434_v63 = vsel %vm364_vm2, %v3460_v61, 0.0 }
 0x2ec   :  { %627 = vrot.lane.b32.xlu1 %v3357_v25, %s3250_s28 }
 0x2ef   :  { %629 = vrot.lane.b32.xlu0 %v3363_v27, %s3250_s28 }
 0x30e   :  { %420 = vadd.xlane.f32.xlu0 %v419_v54 }
 0x310   :  { %423 = vadd.xlane.f32.xlu1 %v422_v56 }
 0x312   :  { %426 = vadd.xlane.f32.xlu0 %v425_v58 }
 0x314   :  { %429 = vadd.xlane.f32.xlu1 %v428_v60 }
 0x316   :  { %432 = vadd.xlane.f32.xlu0 %v431_v62  ;;  %v780_v62 = vld [vmem:[#allocation2 + $0x58] sm:$0xff] }
 0x318   :  { %435 = vadd.xlane.f32.xlu1 %v434_v63 }
 0x329   :  { %623 = vrot.lane.b32.xlu1 %v3344_v15, %s3250_s28 }
 0x32c   :  { %625 = vrot.lane.b32.xlu0 %v3367_v28, %s3250_s28 }
 0x32d   :  { %609 = vrot.lane.b32.xlu1 %v3367_v28, %s3251_s29 }
 0x330   :  { %607 = vrot.lane.b32.xlu0 %v3344_v15, %s3251_s29 }
 0x331   :  { %613 = vrot.lane.b32.xlu1 %v3363_v27, %s3251_s29 }
 0x334   :  { %611 = vrot.lane.b32.xlu0 %v3357_v25, %s3251_s29 }
 0x335   :  { %617 = vrot.lane.b32.xlu1 %v3348_v19, %s3251_s29 }
 0x338   :  { %615 = vrot.lane.b32.xlu0 %v3351_v22, %s3251_s29 }
 0x339   :  { %621 = vrot.lane.b32.xlu1 %v3353_v23, %s3251_s29 }
 0x33c   :  { %619 = vrot.lane.b32.xlu0 %v3359_v26, %s3251_s29 }
 0x33d   :  { %895 = vrot.lane.b32.xlu1 %v3353_v23, %s3252_s30 }
 0x340   :  { %893 = vrot.lane.b32.xlu0 %v3359_v26, %s3252_s30 }
 0x344   :  { %889 = vrot.lane.b32.xlu0 %v3351_v22, %s3252_s30 }
 0x362   :  { %v418_v2 = vpop.xlane.xlu0 %417 }
 0x363   :  { %3111 = vrcp.f32 %v418_v2 }
 0x364   :  { %v415_v3 = vpop.xlane.xlu1 %414 }
 0x365   :  { %3113 = vrcp.f32 %v415_v3 }
 0x366   :  { %v630_v8 = vpop.permute.xlu0 %629 }
 0x368   :  { %v628_v9 = vpop.permute.xlu1 %627 }
 0x370   :  { %v3112_v4 = vpop.eup %3111 }
 0x371   :  { %v446_v7 = vmul.f32 %v3112_v4, %v3430_v29 }
 0x372   :  { %v3114_v5 = vpop.eup %3113 }
 0x373   :  { %v445_v6 = vmul.f32 %v3114_v5, %v3434_v31  ;;  %v779_v5 = vld [vmem:[#allocation2 + $0x50] sm:$0xff] }
 0x375   :  { %2829 = vmatprep.mubr.msk.f32.mxu0 %vm364_vm2, %v445_v6 }
 0x376   :  { %2830 = vmatmul.mubr.msk.f32.vlgmr.msra.gmra.mxu0 %vm364_vm2, %v446_v7 }
 0x377   :  { %2842 = vmatpush3.xpose.msk.msra.mxu0 %vm210_vm1, %v3395_v41 }
 0x378   :  { %2843 = vmatprep.subr.msk.mxu0 %vm210_vm1, %v3428_v14 }
 0x37b   :  { %2844 = vmatpush3.xpose.msk.msra.mxu0 %vm210_vm1, %v3428_v14 }
 0x37c   :  { %2845 = vmatprep.subr.msk.mxu0 %vm210_vm1, %v634_v0 }
 0x37f   :  { %2846 = vmatpush3.xpose.msk.msra.mxu0 %vm210_vm1, %v634_v0 }
 0x380   :  { %2847 = vmatprep.subr.msk.mxu0 %vm210_vm1, %v632_v1 }
 0x383   :  { %2848 = vmatpush3.xpose.msk.msra.mxu0 %vm210_vm1, %v632_v1 }
 0x384   :  { %2849 = vmatprep.subr.msk.mxu0 %vm210_vm1, %v630_v8 }
 0x387   :  { %2850 = vmatpush3.xpose.msk.msra.mxu0 %vm210_vm1, %v630_v8 }
 0x388   :  { %2851 = vmatprep.subr.msk.mxu0 %vm210_vm1, %v628_v9 }
 0x38b   :  { %2852 = vmatpush3.xpose.msk.msra.mxu0 %vm210_vm1, %v628_v9  ;;  %v782_v9 = vld [vmem:[#allocation2 + $0x68] sm:$0xff] }
 0x397   :  { %v421_v41 = vpop.xlane.xlu0 %420 }
 0x398   :  { %3115 = vrcp.f32 %v421_v41 }
 0x399   :  { %v424_v10 = vpop.xlane.xlu1 %423 }
 0x39a   :  { %3117 = vrcp.f32 %v424_v10 }
 0x39b   :  { %v427_v11 = vpop.xlane.xlu0 %426 }
 0x39c   :  { %3119 = vrcp.f32 %v427_v11 }
 0x39d   :  { %v430_v12 = vpop.xlane.xlu1 %429 }
 0x39e   :  { %3121 = vrcp.f32 %v430_v12 }
 0x39f   :  { %v433_v13 = vpop.xlane.xlu0 %432 }
 0x3a0   :  { %3123 = vrcp.f32 %v433_v13  ;;  %v784_v13 = vld [vmem:[#allocation2 + $0x78] sm:$0xff] }
 0x3a1   :  { %v436_v14 = vpop.xlane.xlu1 %435 }
 0x3a2   :  { %3125 = vrcp.f32 %v436_v14 }
 0x3a3   :  { %v626_v16 = vpop.permute.xlu0 %625 }
 0x3a4   :  { %2853 = vmatprep.subr.msk.mxu0 %vm210_vm1, %v626_v16 }
 0x3a5   :  { %v3116_v17 = vpop.eup %3115  ;;  %2854 = vmatpush3.xpose.msk.msra.mxu0 %vm210_vm1, %v626_v16  ;;  %v624_v18 = vpop.permute.xlu1 %623 }
 0x3a6   :  { %2855 = vmatprep.subr.msk.mxu0 %vm210_vm1, %v624_v18  ;;  %v447_v20 = vmul.f32 %v3116_v17, %v3442_v52 }
 0x3a7   :  { %v3118_v21 = vpop.eup %3117  ;;  %v608_v24 = vpop.permute.xlu0 %607 }
 0x3a8   :  { %2832 = vmatprep.mubr.msk.f32.mxu0 %vm364_vm2, %v447_v20  ;;  %v448_v29 = vmul.f32 %v3118_v21, %v3444_v53 }
 0x3a9   :  { %v3120_v30 = vpop.eup %3119  ;;  %2856 = vmatpush3.xpose.msk.msra.mxu0 %vm210_vm1, %v624_v18  ;;  %v610_v31 = vpop.permute.xlu1 %609  ;;  %v781_v18 = vld [vmem:[#allocation2 + $0x60] sm:$0xff] }
 0x3aa   :  { %2833 = vmatmul.mubr.msk.f32.gmra.mxu0 %vm364_vm2, %v448_v29  ;;  %v449_v32 = vmul.f32 %v3120_v30, %v3448_v55  ;;  %2911 = vmatprep.subr.mxu0 %v606_v46 }
 0x3ab   :  { %v3122_v33 = vpop.eup %3121  ;;  %v612_v34 = vpop.permute.xlu0 %611 }
 0x3ac   :  { %2835 = vmatprep.mubr.msk.f32.mxu0 %vm364_vm2, %v449_v32  ;;  %v450_v35 = vmul.f32 %v3122_v33, %v3452_v57  ;;  %v778_v57 = vld [vmem:[#allocation2 + $0x48] sm:$0xff] }
 0x3ad   :  { %v3124_v36 = vpop.eup %3123  ;;  %v614_v37 = vpop.permute.xlu1 %613 }
 0x3ae   :  { %2836 = vmatmul.mubr.msk.f32.gmra.mxu0 %vm364_vm2, %v450_v35  ;;  %v451_v38 = vmul.f32 %v3124_v36, %v3456_v59  ;;  %v777_v59 = vld [vmem:[#allocation2 + $0x40] sm:$0xff] }
 0x3af   :  { %v3126_v39 = vpop.eup %3125  ;;  %v616_v40 = vpop.permute.xlu0 %615 }
 0x3b0   :  { %2838 = vmatprep.mubr.msk.f32.mxu0 %vm364_vm2, %v451_v38  ;;  %v452_v42 = vmul.f32 %v3126_v39, %v3460_v61 }
 0x3b1   :  { %v618_v43 = vpop.permute.xlu1 %617 }
 0x3b2   :  { %2839 = vmatmul.mubr.msk.f32.gmra.mxu0 %vm364_vm2, %v452_v42 }
 0x3b3   :  { %2857 = vmatprep.mubr.msk.f32.mxu0 %vm210_vm1, %v608_v24  ;;  %v620_v44 = vpop.permute.xlu0 %619  ;;  %v783_v24 = vld [vmem:[#allocation2 + $0x70] sm:$0xff] }
 0x3b5   :  { %v622_v45 = vpop.permute.xlu1 %621 }
 0x3b6   :  { %2858 = vmatmul.mubr.msk.f32.vlgmr.msra.gmra.mxu0 %vm210_vm1, %v610_v31 }
 0x3b7   :  { %2860 = vmatprep.mubr.msk.f32.mxu0 %vm210_vm1, %v612_v34  ;;  %v894_v48 = vpop.permute.xlu0 %893  ;;  %2912 = vmatpush3.msra.mxu0 %v606_v46 }
 0x3b9   :  { %v896_v47 = vpop.permute.xlu1 %895 }
 0x3ba   :  { %2861 = vmatmul.mubr.msk.f32.gmra.mxu0 %vm210_vm1, %v614_v37  ;;  %2869 = vmatprep.subr.mxu1 %v896_v47 }
 0x3bb   :  { %2863 = vmatprep.mubr.msk.f32.mxu0 %vm210_vm1, %v616_v40  ;;  %2870 = vmatpush3.msra.mxu1 %v896_v47  ;;  %v890_v32 = vpop.permute.xlu0 %889 }
 0x3bc   :  { %2871 = vmatprep.subr.mxu1 %v894_v48 }
 0x3bd   :  { %2872 = vmatpush3.msra.mxu1 %v894_v48 }
 0x3be   :  { %2864 = vmatmul.mubr.msk.f32.gmra.mxu0 %vm210_vm1, %v618_v43 }
 0x3bf   :  { %2866 = vmatprep.mubr.msk.f32.mxu0 %vm210_vm1, %v620_v44 }
 0x3c2   :  { %2867 = vmatmul.mubr.msk.f32.gmra.mxu0 %vm210_vm1, %v622_v45 }
 0x436   :  { %v2831_v49 = vpop.f32.mrf.mxu0 }
 0x438   :  { %v567_v50 = vpop.f32.mrf.mxu0 }
 0x439   :  { %2913 = vmatprep.mubr.msk.f32.mxu0 %vm210_vm1, %v567_v50 }
 0x43a   :  { %2914 = vmatmul.mubr.msk.f32.vlgmr.msra.gmra.mxu0 %vm210_vm1, %v2831_v49 }
 0x46a   :  { %v2834_v51 = vpop.f32.mrf.mxu0 }
 0x46c   :  { %v577_v52 = vpop.f32.mrf.mxu0 }
 0x46d   :  { %2916 = vmatprep.mubr.msk.f32.mxu0 %vm210_vm1, %v577_v52 }
 0x46e   :  { %v2837_v53 = vpop.f32.mrf.mxu0  ;;  %2917 = vmatmul.mubr.msk.f32.gmra.mxu0 %vm210_vm1, %v2834_v51 }
 0x470   :  { %v587_v54 = vpop.f32.mrf.mxu0 }
 0x471   :  { %2919 = vmatprep.mubr.msk.f32.mxu0 %vm210_vm1, %v587_v54 }
 0x472   :  { %v2840_v55 = vpop.f32.mrf.mxu0  ;;  %2920 = vmatmul.mubr.msk.f32.gmra.mxu0 %vm210_vm1, %v2837_v53 }
 0x474   :  { %v597_v56 = vpop.f32.mrf.mxu0 }
 0x475   :  { %2922 = vmatprep.mubr.msk.f32.mxu0 %vm210_vm1, %v597_v56 }
 0x476   :  { %v2859_v58 = vpop.f32.mrf.mxu0  ;;  %2923 = vmatmul.mubr.msk.f32.gmra.mxu0 %vm210_vm1, %v2840_v55 }
 0x477   :  { %v786_v60 = vadd.f32 %v2859_v58, %v778_v57 }
 0x478   :  { %v737_v61 = vpop.f32.mrf.mxu0 }
 0x479   :  { %v785_v63 = vadd.f32 %v777_v59, %v737_v61  ;;  %v796_v0 = vsel %vm364_vm2, %v786_v60, -inf }
 0x47a   :  { %797 = vmax.xlane.f32.xlu1 %v796_v0  ;;  %v2862_v1 = vpop.f32.mrf.mxu0 }
 0x47b   :  { %v3538_v2 = vadd.f32 %v2862_v1, %v780_v62  ;;  %v793_v3 = vsel %vm364_vm2, %v785_v63, -inf }
 0x47c   :  { %794 = vmax.xlane.f32.xlu0 %v793_v3  ;;  %v747_v4 = vpop.f32.mrf.mxu0 }
 0x47d   :  { %v787_v7 = vadd.f32 %v779_v5, %v747_v4  ;;  %v802_v8 = vsel %vm364_vm2, %v3538_v2, -inf }
 0x47e   :  { %v2865_v6 = vpop.f32.mrf.mxu0 }
 0x47f   :  { %v790_v10 = vadd.f32 %v2865_v6, %v782_v9  ;;  %v799_v11 = vsel %vm364_vm2, %v787_v7, -inf }
 0x480   :  { %803 = vmax.xlane.f32.xlu0 %v802_v8  ;;  %v757_v41 = vpop.f32.mrf.mxu0 }
 0x481   :  { %v808_v16 = vsel %vm364_vm2, %v790_v10, -inf  ;;  %v789_v20 = vadd.f32 %v781_v18, %v757_v41 }
 0x482   :  { %v2868_v12 = vpop.f32.mrf.mxu0 }
 0x483   :  { %v3544_v14 = vadd.f32 %v2868_v12, %v784_v13  ;;  %v805_v30 = vsel %vm364_vm2, %v789_v20, -inf }
 0x484   :  { %800 = vmax.xlane.f32.xlu0 %v799_v11  ;;  %v767_v21 = vpop.f32.mrf.mxu0 }
 0x485   :  { %v814_v17 = vsel %vm364_vm2, %v3544_v14, -inf  ;;  %v791_v29 = vadd.f32 %v783_v24, %v767_v21 }
 0x487   :  { %v811_v31 = vsel %vm364_vm2, %v791_v29, -inf }
 0x488   :  { %809 = vmax.xlane.f32.xlu0 %v808_v16 }
 0x48b   :  { %891 = vrot.lane.b32.xlu1 %v3348_v19, %s3252_s30 }
 0x48c   :  { %815 = vmax.xlane.f32.xlu0 %v814_v17 }
 0x4a2   :  { %885 = vrot.lane.b32.xlu0 %v3357_v25, %s3252_s30 }
 0x4af   :  { %806 = vmax.xlane.f32.xlu1 %v805_v30 }
 0x4b3   :  { %812 = vmax.xlane.f32.xlu1 %v811_v31 }
 0x4c4   :  { %887 = vrot.lane.b32.xlu1 %v3363_v27, %s3252_s30 }
 0x503   :  { %v798_v33 = vpop.xlane.xlu1 %797 }
 0x504   :  { %v818_v34 = vsub.f32 %v786_v60, %v798_v33 }
 0x505   :  { %v795_v35 = vpop.xlane.xlu0 %794 }
 0x506   :  { %v827_v36 = vmul.f32 1.442695, %v818_v34  ;;  %v817_v37 = vsub.f32 %v785_v63, %v795_v35 }
 0x507   :  { %v892_v38 = vpop.permute.xlu1 %891 }
 0x508   :  { %3127 = vpow2.f32 %v827_v36  ;;  %v825_v39 = vmul.f32 1.442695, %v817_v37  ;;  %2873 = vmatprep.subr.mxu1 %v892_v38 }
 0x509   :  { %v804_v40 = vpop.xlane.xlu0 %803  ;;  %2874 = vmatpush3.msra.mxu1 %v892_v38 }
 0x50a   :  { %3129 = vpow2.f32 %v825_v39  ;;  %2875 = vmatprep.subr.mxu1 %v890_v32  ;;  %v820_v56 = vsub.f32 %v3538_v2, %v804_v40 }
 0x50b   :  { %2876 = vmatpush3.msra.mxu1 %v890_v32 }
 0x50c   :  { %v831_v57 = vmul.f32 1.442695, %v820_v56 }
 0x50d   :  { %v801_v42 = vpop.xlane.xlu0 %800 }
 0x50e   :  { %v819_v43 = vsub.f32 %v787_v7, %v801_v42 }
 0x510   :  { %v829_v44 = vmul.f32 1.442695, %v819_v43 }
 0x511   :  { %v810_v45 = vpop.xlane.xlu0 %809 }
 0x512   :  { %3131 = vpow2.f32 %v829_v44  ;;  %v822_v46 = vsub.f32 %v790_v10, %v810_v45 }
 0x514   :  { %v835_v47 = vmul.f32 1.442695, %v822_v46 }
 0x515   :  { %v3557_v48 = vpop.eup %3127  ;;  %v816_v61 = vpop.xlane.xlu0 %815 }
 0x516   :  { %3133 = vpow2.f32 %v835_v47  ;;  %v844_v49 = vsel %vm364_vm2, %v3557_v48, 0.0  ;;  %v824_v0 = vsub.f32 %v3544_v14, %v816_v61 }
 0x517   :  { %v3561_v50 = vpop.eup %3129  ;;  %845 = vadd.xlane.f32.xlu0 %v844_v49  ;;  %3135 = vpow2.f32 %v831_v57 }
 0x518   :  { %v841_v51 = vsel %vm364_vm2, %v3561_v50, 0.0  ;;  %v839_v4 = vmul.f32 1.442695, %v824_v0 }
 0x519   :  { %842 = vadd.xlane.f32.xlu1 %v841_v51  ;;  %v886_v3 = vpop.permute.xlu0 %885 }
 0x51f   :  { %v3565_v52 = vpop.eup %3131 }
 0x520   :  { %v847_v53 = vsel %vm364_vm2, %v3565_v52, 0.0 }
 0x521   :  { %848 = vadd.xlane.f32.xlu1 %v847_v53 }
 0x523   :  { %v3569_v54 = vpop.eup %3133 }
 0x524   :  { %v856_v55 = vsel %vm364_vm2, %v3569_v54, 0.0  ;;  %v3587_v5 = vpop.eup %3135 }
 0x525   :  { %857 = vadd.xlane.f32.xlu1 %v856_v55  ;;  %v850_v6 = vsel %vm364_vm2, %v3587_v5, 0.0 }
 0x52d   :  { %883 = vrot.lane.b32.xlu0 %v3367_v28, %s3252_s30 }
 0x536   :  { %881 = vrot.lane.b32.xlu1 %v3344_v15, %s3252_s30 }
 0x538   :  { %v807_v58 = vpop.xlane.xlu1 %806 }
 0x539   :  { %v821_v59 = vsub.f32 %v789_v20, %v807_v58 }
 0x53a   :  { %1321 = vrot.lane.b32.xlu1 %v3359_v26, %s3253_s9 }
 0x53b   :  { %v833_v60 = vmul.f32 1.442695, %v821_v59 }
 0x53c   :  { %v813_v62 = vpop.xlane.xlu1 %812 }
 0x53d   :  { %v823_v63 = vsub.f32 %v791_v29, %v813_v62  ;;  %3137 = vpow2.f32 %v833_v60  ;;  %v1034_v29 = vld [vmem:[%s3999_s4 + $0x8] sm:$0xff] }
 0x53e   :  { %1319 = vrot.lane.b32.xlu1 %v3348_v19, %s3253_s9 }
 0x53f   :  { %v837_v1 = vmul.f32 1.442695, %v823_v63 }
 0x540   :  { %v888_v2 = vpop.permute.xlu1 %887 }
 0x541   :  { %2877 = vmatprep.subr.mxu1 %v888_v2  ;;  %3139 = vpow2.f32 %v837_v1 }
 0x542   :  { %1317 = vrot.lane.b32.xlu1 %v3351_v22, %s3253_s9  ;;  %2878 = vmatpush3.msra.mxu1 %v888_v2  ;;  %3141 = vpow2.f32 %v839_v4 }
 0x543   :  { %2879 = vmatprep.subr.mxu1 %v886_v3 }
 0x544   :  { %2880 = vmatpush3.msra.mxu1 %v886_v3 }
 0x546   :  { %1315 = vrot.lane.b32.xlu1 %v3363_v27, %s3253_s9 }
 0x54a   :  { %1313 = vrot.lane.b32.xlu1 %v3357_v25, %s3253_s9  ;;  %v3593_v7 = vpop.eup %3137 }
 0x54b   :  { %v853_v8 = vsel %vm364_vm2, %v3593_v7, 0.0 }
 0x54c   :  { %851 = vadd.xlane.f32.xlu0 %v850_v6 }
 0x54e   :  { %1309 = vrot.lane.b32.xlu1 %v3344_v15, %s3253_s9  ;;  %v3599_v9 = vpop.eup %3139 }
 0x54f   :  { %v859_v41 = vsel %vm364_vm2, %v3599_v9, 0.0  ;;  %v3604_v10 = vpop.eup %3141 }
 0x550   :  { %854 = vadd.xlane.f32.xlu0 %v853_v8  ;;  %v862_v11 = vsel %vm364_vm2, %v3604_v10, 0.0 }
 0x552   :  { %1295 = vrot.lane.b32.xlu1 %v3367_v28, %s3254_s10 }
 0x554   :  { %860 = vadd.xlane.f32.xlu0 %v859_v41 }
 0x556   :  { %1299 = vrot.lane.b32.xlu1 %v3363_v27, %s3254_s10 }
 0x558   :  { %863 = vadd.xlane.f32.xlu0 %v862_v11 }
 0x55a   :  { %1303 = vrot.lane.b32.xlu1 %v3348_v19, %s3254_s10 }
 0x55e   :  { %1307 = vrot.lane.b32.xlu1 %v3353_v23, %s3254_s10 }
 0x562   :  { %1886 = vrot.lane.b32.xlu1 %v3359_v26, %s3255_s11 }
 0x566   :  { %1882 = vrot.lane.b32.xlu1 %v3351_v22, %s3255_s11 }
 0x56a   :  { %1878 = vrot.lane.b32.xlu1 %v3357_v25, %s3255_s11 }
 0x56e   :  { %1874 = vrot.lane.b32.xlu1 %v3344_v15, %s3255_s11  ;;  %1323 = vrot.lane.b32.xlu0 %v3353_v23, %s3253_s9 }
 0x572   :  { %1860 = vrot.lane.b32.xlu1 %v3367_v28, %s3256_s3  ;;  %1311 = vrot.lane.b32.xlu0 %v3367_v28, %s3253_s9 }
 0x576   :  { %1864 = vrot.lane.b32.xlu1 %v3363_v27, %s3256_s3  ;;  %1293 = vrot.lane.b32.xlu0 %v3344_v15, %s3254_s10 }
 0x57a   :  { %1868 = vrot.lane.b32.xlu1 %v3348_v19, %s3256_s3  ;;  %1297 = vrot.lane.b32.xlu0 %v3357_v25, %s3254_s10 }
 0x57e   :  { %1872 = vrot.lane.b32.xlu1 %v3353_v23, %s3256_s3  ;;  %1301 = vrot.lane.b32.xlu0 %v3351_v22, %s3254_s10 }
 0x582   :  { %1305 = vrot.lane.b32.xlu0 %v3359_v26, %s3254_s10 }
 0x586   :  { %1888 = vrot.lane.b32.xlu0 %v3353_v23, %s3255_s11 }
 0x58a   :  { %1884 = vrot.lane.b32.xlu0 %v3348_v19, %s3255_s11 }
 0x58e   :  { %1880 = vrot.lane.b32.xlu0 %v3363_v27, %s3255_s11 }
 0x592   :  { %1876 = vrot.lane.b32.xlu0 %v3367_v28, %s3255_s11 }
 0x596   :  { %1858 = vrot.lane.b32.xlu0 %v3344_v15, %s3256_s3 }
 0x59a   :  { %1862 = vrot.lane.b32.xlu0 %v3357_v25, %s3256_s3 }
 0x59e   :  { %1866 = vrot.lane.b32.xlu0 %v3351_v22, %s3256_s3 }
 0x5a0   :  { %v846_v12 = vpop.xlane.xlu0 %845 }
 0x5a1   :  { %3143 = vrcp.f32 %v846_v12 }
 0x5a2   :  { %1870 = vrot.lane.b32.xlu0 %v3359_v26, %s3256_s3  ;;  %v843_v13 = vpop.xlane.xlu1 %842 }
 0x5a3   :  { %3145 = vrcp.f32 %v843_v13 }
 0x5a4   :  { %v884_v14 = vpop.permute.xlu0 %883 }
 0x5a5   :  { %2881 = vmatprep.subr.mxu1 %v884_v14 }
 0x5a6   :  { %2882 = vmatpush3.msra.mxu1 %v884_v14 }
 0x5aa   :  { %v849_v16 = vpop.xlane.xlu1 %848 }
 0x5ab   :  { %3147 = vrcp.f32 %v849_v16 }
 0x5ae   :  { %v858_v17 = vpop.xlane.xlu1 %857  ;;  %v3144_v18 = vpop.eup %3143 }
 0x5af   :  { %v874_v30 = vmul.f32 %v3144_v18, %v3557_v48 }
 0x5b0   :  { %v3146_v20 = vpop.eup %3145 }
 0x5b1   :  { %v873_v21 = vmul.f32 %v3146_v20, %v3561_v50 }
 0x5b2   :  { %v882_v24 = vpop.permute.xlu1 %881 }
 0x5b3   :  { %2883 = vmatprep.subr.mxu1 %v882_v24  ;;  %2885 = vmatprep.mubr.msk.f32.mxu1 %vm364_vm2, %v873_v21 }
 0x5b4   :  { %2884 = vmatpush3.msra.mxu1 %v882_v24 }
 0x5b5   :  { %2886 = vmatmul.mubr.msk.f32.vlgmr.msra.gmra.mxu1 %vm364_vm2, %v874_v30  ;;  %2897 = vmatprep.subr.mxu1 %v1034_v29 }
 0x5b6   :  { %2898 = vmatpush3.msra.mxu1 %v1034_v29  ;;  %v1322_v49 = vpop.permute.xlu1 %1321 }
 0x5b8   :  { %v3148_v31 = vpop.eup %3147 }
 0x5b9   :  { %v875_v32 = vmul.f32 %v3148_v31, %v3565_v52 }
 0x5ba   :  { %v1320_v52 = vpop.permute.xlu1 %1319 }
 0x5bb   :  { %2888 = vmatprep.mubr.msk.f32.mxu1 %vm364_vm2, %v875_v32 }
 0x5d5   :  { %v852_v33 = vpop.xlane.xlu0 %851 }
 0x5d6   :  { %3149 = vrcp.f32 %v852_v33 }
 0x5d7   :  { %3151 = vrcp.f32 %v858_v17 }
 0x5d9   :  { %v855_v34 = vpop.xlane.xlu0 %854 }
 0x5da   :  { %3153 = vrcp.f32 %v855_v34 }
 0x5dd   :  { %v861_v35 = vpop.xlane.xlu0 %860 }
 0x5de   :  { %3155 = vrcp.f32 %v861_v35 }
 0x5e1   :  { %v864_v36 = vpop.xlane.xlu0 %863 }
 0x5e2   :  { %3157 = vrcp.f32 %v864_v36 }
 0x5e3   :  { %v3150_v37 = vpop.eup %3149 }
 0x5e4   :  { %v876_v38 = vmul.f32 %v3150_v37, %v3587_v5  ;;  %v3152_v40 = vpop.eup %3151 }
 0x5e5   :  { %v1324_v39 = vpop.permute.xlu0 %1323  ;;  %v878_v44 = vmul.f32 %v3152_v40, %v3569_v54  ;;  %v1318_v54 = vpop.permute.xlu1 %1317 }
 0x5e6   :  { %2889 = vmatmul.mubr.msk.f32.gmra.mxu1 %vm364_vm2, %v876_v38  ;;  %2925 = vmatprep.subr.msk.mxu1 %vm210_vm1, %v1324_v39 }
 0x5e7   :  { %v3154_v42 = vpop.eup %3153 }
 0x5e8   :  { %v877_v43 = vmul.f32 %v3154_v42, %v3593_v7  ;;  %v1463_v42 = vld [vmem:[#allocation2 + $0x80] sm:$0xff] }
 0x5e9   :  { %v1312_v53 = vpop.permute.xlu0 %1311  ;;  %v1316_v56 = vpop.permute.xlu1 %1315 }
 0x5ea   :  { %2891 = vmatprep.mubr.msk.f32.mxu1 %vm364_vm2, %v877_v43 }
 0x5eb   :  { %v3156_v45 = vpop.eup %3155  ;;  %2892 = vmatmul.mubr.msk.f32.gmra.mxu1 %vm364_vm2, %v878_v44 }
 0x5ec   :  { %v879_v46 = vmul.f32 %v3156_v45, %v3599_v9 }
 0x5ed   :  { %v1294_v55 = vpop.permute.xlu0 %1293  ;;  %v1314_v58 = vpop.permute.xlu1 %1313 }
 0x5ee   :  { %2894 = vmatprep.mubr.msk.f32.mxu1 %vm364_vm2, %v879_v46 }
 0x5ef   :  { %v3158_v47 = vpop.eup %3157 }
 0x5f0   :  { %v880_v48 = vmul.f32 %v3158_v47, %v3604_v10 }
 0x5f1   :  { %v1298_v57 = vpop.permute.xlu0 %1297  ;;  %v1310_v61 = vpop.permute.xlu1 %1309 }
 0x5f2   :  { %2895 = vmatmul.mubr.msk.f32.gmra.mxu1 %vm364_vm2, %v880_v48  ;;  %v1465_v48 = vld [vmem:[#allocation2 + $0x90] sm:$0xff] }
 0x5f5   :  { %v1302_v59 = vpop.permute.xlu0 %1301  ;;  %v1296_v63 = vpop.permute.xlu1 %1295 }
 0x5f9   :  { %v1306_v60 = vpop.permute.xlu0 %1305  ;;  %v1300_v2 = vpop.permute.xlu1 %1299 }
 0x5fd   :  { %v1889_v62 = vpop.permute.xlu0 %1888  ;;  %v1304_v5 = vpop.permute.xlu1 %1303 }
 0x601   :  { %v1885_v7 = vpop.permute.xlu0 %1884  ;;  %v1308_v9 = vpop.permute.xlu1 %1307 }
 0x605   :  { %v1881_v41 = vpop.permute.xlu0 %1880  ;;  %v1887_v10 = vpop.permute.xlu1 %1886 }
 0x609   :  { %v1877_v11 = vpop.permute.xlu0 %1876  ;;  %v1883_v12 = vpop.permute.xlu1 %1882 }
 0x60d   :  { %v1859_v13 = vpop.permute.xlu0 %1858  ;;  %v1879_v14 = vpop.permute.xlu1 %1878 }
 0x611   :  { %v1875_v16 = vpop.permute.xlu1 %1874  ;;  %v1863_v18 = vpop.permute.xlu0 %1862 }
 0x615   :  { %v1861_v17 = vpop.permute.xlu1 %1860  ;;  %v1867_v21 = vpop.permute.xlu0 %1866 }
 0x619   :  { %v1865_v20 = vpop.permute.xlu1 %1864  ;;  %v1871_v29 = vpop.permute.xlu0 %1870 }
 0x61d   :  { %v1869_v24 = vpop.permute.xlu1 %1868 }
 0x621   :  { %v1873_v30 = vpop.permute.xlu1 %1872 }
 0x675   :  { %v2887_v50 = vpop.f32.mrf.mxu1 }
 0x677   :  { %v995_v51 = vpop.f32.mrf.mxu1 }
 0x678   :  { %2899 = vmatprep.mubr.msk.f32.mxu1 %vm210_vm1, %v995_v51 }
 0x679   :  { %2900 = vmatmul.mubr.msk.f32.vlgmr.msra.gmra.mxu1 %vm210_vm1, %v2887_v50  ;;  %v1466_v50 = vld [vmem:[#allocation2 + $0x98] sm:$0xff] }
 0x67a   :  { %2926 = vmatpush3.xpose.msk.msra.mxu1 %vm210_vm1, %v1324_v39  ;;  %v1464_v39 = vld [vmem:[#allocation2 + $0x88] sm:$0xff] }
 0x67b   :  { %2927 = vmatprep.subr.msk.mxu1 %vm210_vm1, %v1322_v49 }
 0x67e   :  { %2928 = vmatpush3.xpose.msk.msra.mxu1 %vm210_vm1, %v1322_v49 }
 0x67f   :  { %2929 = vmatprep.subr.msk.mxu1 %vm210_vm1, %v1320_v52 }
 0x682   :  { %2930 = vmatpush3.xpose.msk.msra.mxu1 %vm210_vm1, %v1320_v52 }
 0x683   :  { %2931 = vmatprep.subr.msk.mxu1 %vm210_vm1, %v1318_v54 }
 0x686   :  { %2932 = vmatpush3.xpose.msk.msra.mxu1 %vm210_vm1, %v1318_v54  ;;  %v1467_v54 = vld [vmem:[#allocation2 + $0xa0] sm:$0xff] }
 0x687   :  { %2933 = vmatprep.subr.msk.mxu1 %vm210_vm1, %v1316_v56 }
 0x68a   :  { %2934 = vmatpush3.xpose.msk.msra.mxu1 %vm210_vm1, %v1316_v56 }
 0x68b   :  { %2935 = vmatprep.subr.msk.mxu1 %vm210_vm1, %v1314_v58 }
 0x68e   :  { %2936 = vmatpush3.xpose.msk.msra.mxu1 %vm210_vm1, %v1314_v58 }
 0x68f   :  { %2937 = vmatprep.subr.msk.mxu1 %vm210_vm1, %v1312_v53 }
 0x692   :  { %2938 = vmatpush3.xpose.msk.msra.mxu1 %vm210_vm1, %v1312_v53 }
 0x693   :  { %2939 = vmatprep.subr.msk.mxu1 %vm210_vm1, %v1310_v61 }
 0x696   :  { %2940 = vmatpush3.xpose.msk.msra.mxu1 %vm210_vm1, %v1310_v61 }
 0x697   :  { %2995 = vmatprep.subr.msk.mxu1 %vm210_vm1, %v1889_v62 }
 0x6a6   :  { %v2890_v0 = vpop.f32.mrf.mxu1 }
 0x6a8   :  { %v1005_v1 = vpop.f32.mrf.mxu1 }
 0x6a9   :  { %2902 = vmatprep.mubr.msk.f32.mxu1 %vm210_vm1, %v1005_v1 }
 0x6aa   :  { %2903 = vmatmul.mubr.msk.f32.gmra.mxu1 %vm210_vm1, %v2890_v0  ;;  %v1470_v0 = vld [vmem:[#allocation2 + $0xb8] sm:$0xff] }
 0x6ab   :  { %v2893_v3 = vpop.f32.mrf.mxu1 }
 0x6ad   :  { %v1015_v4 = vpop.f32.mrf.mxu1 }
 0x6ae   :  { %2905 = vmatprep.mubr.msk.f32.mxu1 %vm210_vm1, %v1015_v4 }
 0x6af   :  { %2906 = vmatmul.mubr.msk.f32.gmra.mxu1 %vm210_vm1, %v2893_v3 }
 0x6b2   :  { %v2896_v6 = vpop.f32.mrf.mxu1 }
 0x6b4   :  { %v1025_v8 = vpop.f32.mrf.mxu1 }
 0x6b5   :  { %2908 = vmatprep.mubr.msk.f32.mxu1 %vm210_vm1, %v1025_v8 }
 0x6b6   :  { %2909 = vmatmul.mubr.msk.f32.gmra.mxu1 %vm210_vm1, %v2896_v6 }
 0x6b7   :  { %2941 = vmatprep.mubr.msk.f32.mxu1 %vm210_vm1, %v1294_v55 }
 0x6ba   :  { %2942 = vmatmul.mubr.msk.f32.vlgmr.msra.gmra.mxu1 %vm210_vm1, %v1296_v63 }
 0x6bb   :  { %2996 = vmatpush3.xpose.msk.msra.mxu1 %vm210_vm1, %v1889_v62  ;;  %2944 = vmatprep.mubr.msk.f32.mxu1 %vm210_vm1, %v1298_v57  ;;  %v1468_v57 = vld [vmem:[#allocation2 + $0xa8] sm:$0xff] }
 0x6bc   :  { %2997 = vmatprep.subr.msk.mxu1 %vm210_vm1, %v1887_v10 }
 0x6be   :  { %2945 = vmatmul.mubr.msk.f32.gmra.mxu1 %vm210_vm1, %v1300_v2 }
 0x6bf   :  { %2998 = vmatpush3.xpose.msk.msra.mxu1 %vm210_vm1, %v1887_v10  ;;  %2947 = vmatprep.mubr.msk.f32.mxu1 %vm210_vm1, %v1302_v59 }
 0x6c0   :  { %2999 = vmatprep.subr.msk.mxu1 %vm210_vm1, %v1885_v7 }
 0x6c2   :  { %2948 = vmatmul.mubr.msk.f32.gmra.mxu1 %vm210_vm1, %v1304_v5  ;;  %v1469_v5 = vld [vmem:[#allocation2 + $0xb0] sm:$0xff] }
 0x6c3   :  { %3000 = vmatpush3.xpose.msk.msra.mxu1 %vm210_vm1, %v1885_v7  ;;  %2950 = vmatprep.mubr.msk.f32.mxu1 %vm210_vm1, %v1306_v60 }
 0x6c4   :  { %3001 = vmatprep.subr.msk.mxu1 %vm210_vm1, %v1883_v12 }
 0x6c6   :  { %2951 = vmatmul.mubr.msk.f32.gmra.mxu1 %vm210_vm1, %v1308_v9 }
 0x6c7   :  { %3002 = vmatpush3.xpose.msk.msra.mxu1 %vm210_vm1, %v1883_v12  ;;  %3011 = vmatprep.mubr.msk.f32.mxu1 %vm210_vm1, %v1859_v13 }
 0x6c8   :  { %3003 = vmatprep.subr.msk.mxu1 %vm210_vm1, %v1881_v41 }
 0x6cb   :  { %3004 = vmatpush3.xpose.msk.msra.mxu1 %vm210_vm1, %v1881_v41 }
 0x6cc   :  { %3005 = vmatprep.subr.msk.mxu1 %vm210_vm1, %v1879_v14 }
 0x6cf   :  { %3006 = vmatpush3.xpose.msk.msra.mxu1 %vm210_vm1, %v1879_v14 }
 0x6d0   :  { %3007 = vmatprep.subr.msk.mxu1 %vm210_vm1, %v1877_v11 }
 0x6d3   :  { %3008 = vmatpush3.xpose.msk.msra.mxu1 %vm210_vm1, %v1877_v11 }
 0x6d4   :  { %3009 = vmatprep.subr.msk.mxu1 %vm210_vm1, %v1875_v16 }
 0x6d7   :  { %3010 = vmatpush3.xpose.msk.msra.mxu1 %vm210_vm1, %v1875_v16 }
 0x6da   :  { %3012 = vmatmul.mubr.msk.f32.vlgmr.msra.gmra.mxu1 %vm210_vm1, %v1861_v17 }
 0x6db   :  { %3014 = vmatprep.mubr.msk.f32.mxu1 %vm210_vm1, %v1863_v18 }
 0x6de   :  { %3015 = vmatmul.mubr.msk.f32.gmra.mxu1 %vm210_vm1, %v1865_v20 }
 0x6df   :  { %3017 = vmatprep.mubr.msk.f32.mxu1 %vm210_vm1, %v1867_v21 }
 0x6e2   :  { %3018 = vmatmul.mubr.msk.f32.gmra.mxu1 %vm210_vm1, %v1869_v24 }
 0x6e3   :  { %3020 = vmatprep.mubr.msk.f32.mxu1 %vm210_vm1, %v1871_v29 }
 0x6e6   :  { %3021 = vmatmul.mubr.msk.f32.gmra.mxu1 %vm210_vm1, %v1873_v30 }
 0x739   :  { %v3710_v31 = vpop.f32.mrf.mxu1 }
 0x73b   :  { %v3712_v32 = vpop.f32.mrf.mxu1 }
 0x76a   :  { %v3714_v33 = vpop.f32.mrf.mxu1 }
 0x76c   :  { %v3716_v34 = vpop.f32.mrf.mxu1 }
 0x76f   :  { %v3718_v35 = vpop.f32.mrf.mxu1 }
 0x771   :  { %v3720_v36 = vpop.f32.mrf.mxu1 }
 0x776   :  { %v3722_v37 = vpop.f32.mrf.mxu1 }
 0x778   :  { %v3724_v38 = vpop.f32.mrf.mxu1 }
 0x77a   :  { %v2943_v40 = vpop.f32.mrf.mxu1 }
 0x77b   :  { %v1472_v43 = vadd.f32 %v2943_v40, %v1464_v39 }
 0x77c   :  { %v1423_v44 = vpop.f32.mrf.mxu1 }
 0x77d   :  { %v1471_v45 = vadd.f32 %v1463_v42, %v1423_v44  ;;  %v1482_v46 = vsel %vm364_vm2, %v1472_v43, -inf }
 0x77e   :  { %1483 = vmax.xlane.f32.xlu1 %v1482_v46  ;;  %v2946_v47 = vpop.f32.mrf.mxu1 }
 0x77f   :  { %v1479_v49 = vsel %vm364_vm2, %v1471_v45, -inf  ;;  %v1474_v55 = vadd.f32 %v2946_v47, %v1466_v50 }
 0x780   :  { %1480 = vmax.xlane.f32.xlu0 %v1479_v49  ;;  %v1433_v51 = vpop.f32.mrf.mxu1 }
 0x781   :  { %v1473_v52 = vadd.f32 %v1465_v48, %v1433_v51  ;;  %v1488_v61 = vsel %vm364_vm2, %v1474_v55, -inf }
 0x782   :  { %v2949_v53 = vpop.f32.mrf.mxu1 }
 0x783   :  { %v1485_v56 = vsel %vm364_vm2, %v1473_v52, -inf  ;;  %v1476_v60 = vadd.f32 %v2949_v53, %v1468_v57 }
 0x784   :  { %1486 = vmax.xlane.f32.xlu0 %v1485_v56  ;;  %v1443_v58 = vpop.f32.mrf.mxu1 }
 0x785   :  { %v1475_v59 = vadd.f32 %v1467_v54, %v1443_v58  ;;  %v1494_v2 = vsel %vm364_vm2, %v1476_v60, -inf }
 0x786   :  { %v2952_v63 = vpop.f32.mrf.mxu1 }
 0x787   :  { %v1491_v62 = vsel %vm364_vm2, %v1475_v59, -inf  ;;  %v1478_v1 = vadd.f32 %v2952_v63, %v1470_v0 }
 0x788   :  { %1489 = vmax.xlane.f32.xlu0 %v1488_v61  ;;  %1492 = vmax.xlane.f32.xlu1 %v1491_v62  ;;  %v1453_v4 = vpop.f32.mrf.mxu1 }
 0x789   :  { %v1500_v3 = vsel %vm364_vm2, %v1478_v1, -inf  ;;  %v3741_v6 = vadd.f32 %v1469_v5, %v1453_v4 }
 0x78b   :  { %v1497_v7 = vsel %vm364_vm2, %v3741_v6, -inf }
 0x78c   :  { %1495 = vmax.xlane.f32.xlu0 %v1494_v2 }
 0x790   :  { %1501 = vmax.xlane.f32.xlu0 %v1500_v3 }
 0x799   :  { %1581 = vrot.lane.b32.xlu1 %v3353_v23, %s3257_s14 }
 0x79a   :  { %v3013_v3 = vpop.f32.mrf.mxu1 }
 0x79c   :  { %v1988_v5 = vpop.f32.mrf.mxu1 }
 0x79d   :  { %1577 = vrot.lane.b32.xlu1 %v3348_v19, %s3257_s14 }
 0x7a6   :  { %1579 = vrot.lane.b32.xlu0 %v3359_v26, %s3257_s14 }
 0x7aa   :  { %1573 = vrot.lane.b32.xlu0 %v3363_v27, %s3257_s14 }
 0x7c1   :  { %1498 = vmax.xlane.f32.xlu1 %v1497_v7  ;;  %v2028_v7 = vld [vmem:[#allocation2 + $0xc0] sm:$0xff] }
 0x7d2   :  { %1575 = vrot.lane.b32.xlu1 %v3351_v22, %s3257_s14 }
 0x7d6   :  { %1571 = vrot.lane.b32.xlu1 %v3357_v25, %s3257_s14 }
 0x807   :  { %v1484_v8 = vpop.xlane.xlu1 %1483 }
 0x808   :  { %v1504_v9 = vsub.f32 %v1472_v43, %v1484_v8  ;;  %v3016_v8 = vpop.f32.mrf.mxu1 }
 0x809   :  { %v1481_v41 = vpop.xlane.xlu0 %1480 }
 0x80a   :  { %v1513_v10 = vmul.f32 1.442695, %v1504_v9  ;;  %v1503_v11 = vsub.f32 %v1471_v45, %v1481_v41  ;;  %v3782_v41 = vadd.f32 %v2028_v7, %v1988_v5 }
 0x80c   :  { %3159 = vpow2.f32 %v1513_v10  ;;  %v1511_v12 = vmul.f32 1.442695, %v1503_v11  ;;  %v1998_v10 = vpop.f32.mrf.mxu1  ;;  %v2030_v11 = vld [vmem:[#allocation2 + $0xd0] sm:$0xff] }
 0x80d   :  { %v1487_v13 = vpop.xlane.xlu0 %1486 }
 0x80e   :  { %3161 = vpow2.f32 %v1511_v12  ;;  %v1505_v14 = vsub.f32 %v1473_v52, %v1487_v13  ;;  %v3786_v12 = vadd.f32 %v2030_v11, %v1998_v10  ;;  %v2044_v13 = vsel %vm364_vm2, %v3782_v41, -inf }
 0x810   :  { %v1515_v16 = vmul.f32 1.442695, %v1505_v14  ;;  %v2031_v14 = vld [vmem:[#allocation2 + $0xd8] sm:$0xff] }
 0x811   :  { %v1490_v17 = vpop.xlane.xlu0 %1489  ;;  %v1493_v18 = vpop.xlane.xlu1 %1492 }
 0x812   :  { %3163 = vpow2.f32 %v1515_v16  ;;  %v1506_v20 = vsub.f32 %v1474_v55, %v1490_v17  ;;  %v1507_v21 = vsub.f32 %v1475_v59, %v1493_v18  ;;  %v3019_v16 = vpop.f32.mrf.mxu1  ;;  %v3790_v17 = vadd.f32 %v3016_v8, %v2031_v14 }
 0x813   :  { %v2050_v18 = vsel %vm364_vm2, %v3786_v12, -inf }
 0x814   :  { %v1517_v24 = vmul.f32 1.442695, %v1506_v20  ;;  %v1519_v29 = vmul.f32 1.442695, %v1507_v21  ;;  %v2033_v20 = vld [vmem:[#allocation2 + $0xe8] sm:$0xff]  ;;  %v2008_v21 = vpop.f32.mrf.mxu1 }
 0x815   :  { %v1496_v30 = vpop.xlane.xlu0 %1495  ;;  %v1582_v39 = vpop.permute.xlu1 %1581 }
 0x816   :  { %3165 = vpow2.f32 %v1517_v24  ;;  %v1508_v40 = vsub.f32 %v1476_v60, %v1496_v30  ;;  %2953 = vmatprep.subr.mxu0 %v1582_v39  ;;  %v3794_v24 = vadd.f32 %v3019_v16, %v2033_v20  ;;  %v3022_v30 = vpop.f32.mrf.mxu1 }
 0x817   :  { %3167 = vpow2.f32 %v1519_v29  ;;  %2954 = vmatpush3.msra.mxu0 %v1582_v39  ;;  %v2053_v29 = vsel %vm364_vm2, %v3790_v17, -inf  ;;  %v2035_v39 = vld [vmem:[#allocation2 + $0xf8] sm:$0xff] }
 0x818   :  { %v1521_v42 = vmul.f32 1.442695, %v1508_v40  ;;  %v3798_v40 = vadd.f32 %v3022_v30, %v2035_v39 }
 0x819   :  { %v3749_v43 = vpop.eup %3159  ;;  %v1502_v44 = vpop.xlane.xlu0 %1501 }
 0x81a   :  { %3169 = vpow2.f32 %v1521_v42  ;;  %v1510_v45 = vsub.f32 %v1478_v1, %v1502_v44  ;;  %v1530_v46 = vsel %vm364_vm2, %v3749_v43, 0.0  ;;  %v1578_v52 = vpop.permute.xlu1 %1577  ;;  %v2059_v42 = vsel %vm364_vm2, %v3794_v24, -inf }
 0x81b   :  { %v3753_v47 = vpop.eup %3161  ;;  %1531 = vadd.xlane.f32.xlu0 %v1530_v46  ;;  %v2065_v44 = vsel %vm364_vm2, %v3798_v40, -inf }
 0x81c   :  { %v1525_v48 = vmul.f32 1.442695, %v1510_v45  ;;  %v1527_v49 = vsel %vm364_vm2, %v3753_v47, 0.0  ;;  %v2029_v45 = vld [vmem:[#allocation2 + $0xc8] sm:$0xff] }
 0x81d   :  { %v1580_v50 = vpop.permute.xlu0 %1579  ;;  %1528 = vadd.xlane.f32.xlu1 %v1527_v49  ;;  %v3810_v46 = vadd.f32 %v3013_v3, %v2029_v45 }
 0x81e   :  { %3171 = vpow2.f32 %v1525_v48  ;;  %2955 = vmatprep.subr.mxu0 %v1580_v50  ;;  %v2032_v48 = vld [vmem:[#allocation2 + $0xe0] sm:$0xff] }
 0x81f   :  { %v3757_v51 = vpop.eup %3163  ;;  %2956 = vmatpush3.msra.mxu0 %v1580_v50  ;;  %v3812_v49 = vadd.f32 %v2032_v48, %v2008_v21  ;;  %v2047_v50 = vsel %vm364_vm2, %v3810_v46, -inf }
 0x820   :  { %2957 = vmatprep.subr.mxu0 %v1578_v52  ;;  %v1533_v53 = vsel %vm364_vm2, %v3757_v51, 0.0 }
 0x821   :  { %1534 = vadd.xlane.f32.xlu1 %v1533_v53  ;;  %2958 = vmatpush3.msra.mxu0 %v1578_v52  ;;  %v1574_v2 = vpop.permute.xlu0 %1573  ;;  %v2018_v52 = vpop.f32.mrf.mxu1  ;;  %v2034_v53 = vld [vmem:[#allocation2 + $0xf0] sm:$0xff] }
 0x823   :  { %v3761_v54 = vpop.eup %3165 }
 0x824   :  { %v3763_v55 = vpop.eup %3167  ;;  %v1536_v56 = vsel %vm364_vm2, %v3761_v54, 0.0 }
 0x825   :  { %1537 = vadd.xlane.f32.xlu0 %v1536_v56  ;;  %v1539_v57 = vsel %vm364_vm2, %v3763_v55, 0.0  ;;  %v3816_v56 = vadd.f32 %v2034_v53, %v2018_v52 }
 0x826   :  { %1540 = vadd.xlane.f32.xlu1 %v1539_v57 }
 0x827   :  { %v3769_v58 = vpop.eup %3169 }
 0x828   :  { %v1542_v59 = vsel %vm364_vm2, %v3769_v58, 0.0 }
 0x829   :  { %1543 = vadd.xlane.f32.xlu0 %v1542_v59 }
 0x82b   :  { %v3773_v60 = vpop.eup %3171 }
 0x82c   :  { %v1548_v61 = vsel %vm364_vm2, %v3773_v60, 0.0 }
 0x82d   :  { %1549 = vadd.xlane.f32.xlu0 %v1548_v61 }
 0x843   :  { %1569 = vrot.lane.b32.xlu0 %v3367_v28, %s3257_s14 }
 0x84a   :  { %v1499_v62 = vpop.xlane.xlu1 %1498 }
 0x84b   :  { %v1509_v63 = vsub.f32 %v3741_v6, %v1499_v62 }
 0x84d   :  { %v1523_v0 = vmul.f32 1.442695, %v1509_v63 }
 0x84e   :  { %v1576_v1 = vpop.permute.xlu1 %1575 }
 0x84f   :  { %3173 = vpow2.f32 %v1523_v0  ;;  %2959 = vmatprep.subr.mxu0 %v1576_v1 }
 0x850   :  { %2960 = vmatpush3.msra.mxu0 %v1576_v1 }
 0x851   :  { %2961 = vmatprep.subr.mxu0 %v1574_v2 }
 0x852   :  { %2962 = vmatpush3.msra.mxu0 %v1574_v2  ;;  %v1572_v4 = vpop.permute.xlu1 %1571 }
 0x853   :  { %2963 = vmatprep.subr.mxu0 %v1572_v4 }
 0x854   :  { %2964 = vmatpush3.msra.mxu0 %v1572_v4 }
 0x85c   :  { %v3780_v9 = vpop.eup %3173 }
 0x85d   :  { %v1545_v6 = vsel %vm364_vm2, %v3780_v9, 0.0 }
 0x85e   :  { %1546 = vadd.xlane.f32.xlu1 %v1545_v6 }
 0x862   :  { %2045 = vmax.xlane.f32.xlu0 %v2044_v13 }
 0x866   :  { %2051 = vmax.xlane.f32.xlu0 %v2050_v18 }
 0x86a   :  { %2054 = vmax.xlane.f32.xlu0 %v2053_v29 }
 0x86e   :  { %2060 = vmax.xlane.f32.xlu0 %v2059_v42 }
 0x86f   :  { %1567 = vrot.lane.b32.xlu1 %v3344_v15, %s3257_s14 }
 0x872   :  { %2066 = vmax.xlane.f32.xlu0 %v2065_v44 }
 0x888   :  { %2144 = vrot.lane.b32.xlu0 %v3359_v26, %s3258_s15  ;;  %v2056_v26 = vsel %vm364_vm2, %v3812_v49, -inf }
 0x88c   :  { %2138 = vrot.lane.b32.xlu0 %v3363_v27, %s3258_s15  ;;  %v2062_v27 = vsel %vm364_vm2, %v3816_v56, -inf }
 0x893   :  { %2048 = vmax.xlane.f32.xlu1 %v2047_v50 }
 0x897   :  { %2057 = vmax.xlane.f32.xlu1 %v2056_v26 }
 0x89b   :  { %2063 = vmax.xlane.f32.xlu1 %v2062_v27 }
 0x8a4   :  { %v1532_v59 = vpop.xlane.xlu0 %1531 }
 0x8a6   :  { %v1529_v57 = vpop.xlane.xlu1 %1528 }
 0x8a7   :  { %3175 = vrcp.f32 %v1529_v57 }
 0x8a8   :  { %3177 = vrcp.f32 %v1532_v59 }
 0x8ac   :  { %2146 = vrot.lane.b32.xlu1 %v3353_v23, %s3258_s15  ;;  %v1535_v23 = vpop.xlane.xlu1 %1534 }
 0x8ad   :  { %3179 = vrcp.f32 %v1535_v23 }
 0x8ae   :  { %v1538_v61 = vpop.xlane.xlu0 %1537 }
 0x8af   :  { %3181 = vrcp.f32 %v1538_v61 }
 0x8b0   :  { %2142 = vrot.lane.b32.xlu1 %v3348_v19, %s3258_s15  ;;  %v1541_v19 = vpop.xlane.xlu1 %1540 }
 0x8b1   :  { %3183 = vrcp.f32 %v1541_v19 }
 0x8b2   :  { %v1544_v62 = vpop.xlane.xlu0 %1543 }
 0x8b3   :  { %3185 = vrcp.f32 %v1544_v62 }
 0x8b4   :  { %v3176_v63 = vpop.eup %3175  ;;  %2140 = vrot.lane.b32.xlu1 %v3351_v22, %s3258_s15 }
 0x8b5   :  { %v1559_v0 = vmul.f32 %v3176_v63, %v3753_v47  ;;  %v3178_v47 = vpop.eup %3177 }
 0x8b6   :  { %v1550_v1 = vpop.xlane.xlu0 %1549  ;;  %v1560_v7 = vmul.f32 %v3178_v47, %v3749_v43 }
 0x8b7   :  { %2969 = vmatprep.mubr.msk.f32.mxu0 %vm364_vm2, %v1559_v0  ;;  %3187 = vrcp.f32 %v1550_v1 }
 0x8b8   :  { %2136 = vrot.lane.b32.xlu1 %v3357_v25, %s3258_s15  ;;  %v1720_v25 = vld [vmem:[%s3999_s4 + $0x10] sm:$0xff] }
 0x8ba   :  { %v1570_v2 = vpop.permute.xlu0 %1569  ;;  %v3180_v3 = vpop.eup %3179 }
 0x8bb   :  { %2965 = vmatprep.subr.mxu0 %v1570_v2  ;;  %v1561_v10 = vmul.f32 %v3180_v3, %v3757_v51 }
 0x8bc   :  { %2966 = vmatpush3.msra.mxu0 %v1570_v2  ;;  %v3182_v6 = vpop.eup %3181 }
 0x8bd   :  { %v1562_v43 = vmul.f32 %v3182_v6, %v3761_v54 }
 0x8be   :  { %v3184_v11 = vpop.eup %3183 }
 0x8bf   :  { %v1563_v18 = vmul.f32 %v3184_v11, %v3763_v55 }
 0x8e7   :  { %v1547_v22 = vpop.xlane.xlu1 %1546 }
 0x8e8   :  { %3189 = vrcp.f32 %v1547_v22 }
 0x8eb   :  { %v2046_v4 = vpop.xlane.xlu0 %2045  ;;  %v1568_v5 = vpop.permute.xlu1 %1567 }
 0x8ec   :  { %v2068_v8 = vsub.f32 %v3782_v41, %v2046_v4  ;;  %2967 = vmatprep.subr.mxu0 %v1568_v5  ;;  %v3186_v41 = vpop.eup %3185 }
 0x8ed   :  { %2968 = vmatpush3.msra.mxu0 %v1568_v5  ;;  %v3188_v51 = vpop.eup %3187  ;;  %v1564_v21 = vmul.f32 %v3186_v41, %v3769_v58 }
 0x8ee   :  { %v2076_v13 = vmul.f32 1.442695, %v2068_v8  ;;  %2970 = vmatmul.mubr.msk.f32.vlgmr.msra.gmra.mxu0 %vm364_vm2, %v1560_v7  ;;  %2981 = vmatprep.subr.mxu0 %v1720_v25  ;;  %v1566_v54 = vmul.f32 %v3188_v51, %v3773_v60 }
 0x8ef   :  { %v2052_v14 = vpop.xlane.xlu0 %2051  ;;  %2972 = vmatprep.mubr.msk.f32.mxu0 %vm364_vm2, %v1561_v10  ;;  %2982 = vmatpush3.msra.mxu0 %v1720_v25  ;;  %v3893_v10 = vpop.f32.mrf.mxu0 }
 0x8f0   :  { %3191 = vpow2.f32 %v2076_v13  ;;  %v2070_v16 = vsub.f32 %v3786_v12, %v2052_v14 }
 0x8f1   :  { %v3895_v11 = vpop.f32.mrf.mxu0 }
 0x8f2   :  { %v2080_v20 = vmul.f32 1.442695, %v2070_v16  ;;  %2973 = vmatmul.mubr.msk.f32.gmra.mxu0 %vm364_vm2, %v1562_v43 }
 0x8f3   :  { %2975 = vmatprep.mubr.msk.f32.mxu0 %vm364_vm2, %v1563_v18  ;;  %v2055_v42 = vpop.xlane.xlu0 %2054  ;;  %v3897_v13 = vpop.f32.mrf.mxu0 }
 0x8f4   :  { %3193 = vpow2.f32 %v2080_v20  ;;  %v2071_v44 = vsub.f32 %v3790_v17, %v2055_v42 }
 0x8f5   :  { %v3190_v29 = vpop.eup %3189  ;;  %v3899_v14 = vpop.f32.mrf.mxu0 }
 0x8f6   :  { %2976 = vmatmul.mubr.msk.f32.gmra.mxu0 %vm364_vm2, %v1564_v21  ;;  %v1565_v30 = vmul.f32 %v3190_v29, %v3780_v9  ;;  %v2082_v48 = vmul.f32 1.442695, %v2071_v44 }
 0x8f7   :  { %v2061_v9 = vpop.xlane.xlu0 %2060  ;;  %v3901_v16 = vpop.f32.mrf.mxu0 }
 0x8f8   :  { %2978 = vmatprep.mubr.msk.f32.mxu0 %vm364_vm2, %v1565_v30  ;;  %v2073_v50 = vsub.f32 %v3794_v24, %v2061_v9 }
 0x8f9   :  { %v3903_v43 = vpop.f32.mrf.mxu0 }
 0x8fa   :  { %2979 = vmatmul.mubr.msk.f32.gmra.mxu0 %vm364_vm2, %v1566_v54  ;;  %v2086_v57 = vmul.f32 1.442695, %v2073_v50 }
 0x8fb   :  { %v2067_v53 = vpop.xlane.xlu0 %2066  ;;  %v3905_v41 = vpop.f32.mrf.mxu0 }
 0x8fc   :  { %v2075_v59 = vsub.f32 %v3798_v40, %v2067_v53 }
 0x8fd   :  { %v3851_v55 = vpop.eup %3191  ;;  %v3907_v20 = vpop.f32.mrf.mxu0 }
 0x8fe   :  { %v2092_v12 = vsel %vm364_vm2, %v3851_v55, 0.0 }
 0x8ff   :  { %2093 = vadd.xlane.f32.xlu1 %v2092_v12  ;;  %v2145_v24 = vpop.permute.xlu0 %2144 }
 0x901   :  { %v3855_v39 = vpop.eup %3193 }
 0x902   :  { %v2098_v58 = vsel %vm364_vm2, %v3855_v39, 0.0 }
 0x903   :  { %2099 = vadd.xlane.f32.xlu1 %v2098_v58  ;;  %v2139_v19 = vpop.permute.xlu0 %2138 }
 0x91c   :  { %v2049_v45 = vpop.xlane.xlu1 %2048 }
 0x91d   :  { %v2069_v60 = vsub.f32 %v3810_v46, %v2049_v45  ;;  %v2090_v46 = vmul.f32 1.442695, %v2075_v59 }
 0x91f   :  { %v2078_v52 = vmul.f32 1.442695, %v2069_v60 }
 0x920   :  { %v2058_v26 = vpop.xlane.xlu1 %2057 }
 0x921   :  { %3195 = vpow2.f32 %v2078_v52  ;;  %v2072_v27 = vsub.f32 %v3812_v49, %v2058_v26 }
 0x922   :  { %3197 = vpow2.f32 %v2082_v48 }
 0x923   :  { %v2084_v61 = vmul.f32 1.442695, %v2072_v27 }
 0x924   :  { %v2064_v62 = vpop.xlane.xlu1 %2063 }
 0x925   :  { %3199 = vpow2.f32 %v2084_v61  ;;  %v2074_v17 = vsub.f32 %v3816_v56, %v2064_v62 }
 0x926   :  { %3201 = vpow2.f32 %v2086_v57 }
 0x927   :  { %v2088_v63 = vmul.f32 1.442695, %v2074_v17 }
 0x928   :  { %v2147_v0 = vpop.permute.xlu1 %2146 }
 0x929   :  { %3203 = vpow2.f32 %v2088_v63  ;;  %3023 = vmatprep.subr.mxu0 %v2147_v0  ;;  %3065 = vmatprep.subr.mxu1 %v2147_v0 }
 0x92a   :  { %3073 = vmatpush3.msra.mxu1 %v2147_v0  ;;  %3205 = vpow2.f32 %v2090_v46 }
 0x92b   :  { %3066 = vmatprep.subr.mxu1 %v2145_v24 }
 0x92c   :  { %3074 = vmatpush3.msra.mxu1 %v2145_v24  ;;  %v2143_v49 = vpop.permute.xlu1 %2142 }
 0x92d   :  { %3067 = vmatprep.subr.mxu1 %v2143_v49 }
 0x92e   :  { %v3865_v40 = vpop.eup %3195  ;;  %3075 = vmatpush3.msra.mxu1 %v2143_v49 }
 0x92f   :  { %v2095_v56 = vsel %vm364_vm2, %v3865_v40, 0.0  ;;  %v3869_v1 = vpop.eup %3197 }
 0x930   :  { %2096 = vadd.xlane.f32.xlu0 %v2095_v56  ;;  %v2141_v2 = vpop.permute.xlu1 %2140  ;;  %v2101_v22 = vsel %vm364_vm2, %v3869_v1, 0.0  ;;  %v2285_v56 = vld [vmem:[%s3999_s4 + $0x18] sm:$0xff] }
 0x931   :  { %3068 = vmatprep.subr.mxu1 %v2141_v2 }
 0x932   :  { %v3871_v23 = vpop.eup %3199  ;;  %3076 = vmatpush3.msra.mxu1 %v2141_v2 }
 0x933   :  { %3069 = vmatprep.subr.mxu1 %v2139_v19  ;;  %v2104_v47 = vsel %vm364_vm2, %v3871_v23, 0.0  ;;  %v3877_v3 = vpop.eup %3201 }
 0x934   :  { %2102 = vadd.xlane.f32.xlu0 %v2101_v22  ;;  %2105 = vadd.xlane.f32.xlu1 %v2104_v47  ;;  %v2137_v4 = vpop.permute.xlu1 %2136  ;;  %v2107_v25 = vsel %vm364_vm2, %v3877_v3, 0.0  ;;  %v1270_v47 = vadd.f32 %v3897_v13, %v3714_v33  ;;  %v1290_v33 = vadd.f32 %v3905_v41, %v3722_v37 }
 0x935   :  { %3077 = vmatpush3.msra.mxu1 %v2139_v19 }
 0x936   :  { %v3879_v5 = vpop.eup %3203  ;;  %3070 = vmatprep.subr.mxu1 %v2137_v4 }
 0x937   :  { %3078 = vmatpush3.msra.mxu1 %v2137_v4  ;;  %v2110_v7 = vsel %vm364_vm2, %v3879_v5, 0.0  ;;  %v3885_v8 = vpop.eup %3205 }
 0x938   :  { %2108 = vadd.xlane.f32.xlu0 %v2107_v25  ;;  %2111 = vadd.xlane.f32.xlu1 %v2110_v7  ;;  %v2113_v6 = vsel %vm364_vm2, %v3885_v8, 0.0 }
 0x93c   :  { %2114 = vadd.xlane.f32.xlu0 %v2113_v6 }
 0x949   :  { %2132 = vrot.lane.b32.xlu1 %v3344_v15, %s3258_s15 }
 0x952   :  { %2134 = vrot.lane.b32.xlu0 %v3367_v28, %s3258_s15 }
 0x988   :  { %v2094_v18 = vpop.xlane.xlu1 %2093 }
 0x989   :  { %3207 = vrcp.f32 %v2094_v18 }
 0x98c   :  { %v2100_v54 = vpop.xlane.xlu1 %2099 }
 0x996   :  { %v3208_v58 = vpop.eup %3207 }
 0x997   :  { %v2124_v60 = vmul.f32 %v3208_v58, %v3851_v55 }
 0x9ae   :  { %v2971_v15 = vpop.f32.mrf.mxu0 }
 0x9b0   :  { %v1681_v28 = vpop.f32.mrf.mxu0 }
 0x9b1   :  { %2983 = vmatprep.mubr.msk.f32.mxu0 %vm210_vm1, %v1681_v28 }
 0x9b2   :  { %v2974_v51 = vpop.f32.mrf.mxu0  ;;  %2984 = vmatmul.mubr.msk.f32.vlgmr.msra.gmra.mxu0 %vm210_vm1, %v2971_v15 }
 0x9b3   :  { %3024 = vmatpush3.msra.mxu0 %v2147_v0 }
 0x9b4   :  { %3025 = vmatprep.subr.mxu0 %v2145_v24  ;;  %v1691_v21 = vpop.f32.mrf.mxu0 }
 0x9b5   :  { %3026 = vmatpush3.msra.mxu0 %v2145_v24  ;;  %2986 = vmatprep.mubr.msk.f32.mxu0 %vm210_vm1, %v1691_v21  ;;  %v2588_v21 = vld [vmem:[%s4000_s5] ss:$0 sm:$0xff] }
 0x9b6   :  { %3027 = vmatprep.subr.mxu0 %v2143_v49  ;;  %v2977_v29 = vpop.f32.mrf.mxu0  ;;  %2987 = vmatmul.mubr.msk.f32.gmra.mxu0 %vm210_vm1, %v2974_v51 }
 0x9b7   :  { %3028 = vmatpush3.msra.mxu0 %v2143_v49 }
 0x9b8   :  { %3029 = vmatprep.subr.mxu0 %v2141_v2  ;;  %v1701_v30 = vpop.f32.mrf.mxu0 }
 0x9b9   :  { %3030 = vmatpush3.msra.mxu0 %v2141_v2  ;;  %2989 = vmatprep.mubr.msk.f32.mxu0 %vm210_vm1, %v1701_v30  ;;  %v2097_v12 = vpop.xlane.xlu0 %2096 }
 0x9ba   :  { %3031 = vmatprep.subr.mxu0 %v2139_v19  ;;  %v2980_v42 = vpop.f32.mrf.mxu0  ;;  %2990 = vmatmul.mubr.msk.f32.gmra.mxu0 %vm210_vm1, %v2977_v29  ;;  %3209 = vrcp.f32 %v2097_v12 }
 0x9bb   :  { %3032 = vmatpush3.msra.mxu0 %v2139_v19  ;;  %3211 = vrcp.f32 %v2100_v54 }
 0x9bc   :  { %3033 = vmatprep.subr.mxu0 %v2137_v4  ;;  %v1711_v9 = vpop.f32.mrf.mxu0 }
 0x9bd   :  { %3034 = vmatpush3.msra.mxu0 %v2137_v4  ;;  %2992 = vmatprep.mubr.msk.f32.mxu0 %vm210_vm1, %v1711_v9  ;;  %v2103_v44 = vpop.xlane.xlu0 %2102  ;;  %v2106_v45 = vpop.xlane.xlu1 %2105 }
 0x9be   :  { %2993 = vmatmul.mubr.msk.f32.gmra.mxu0 %vm210_vm1, %v2980_v42  ;;  %3213 = vrcp.f32 %v2103_v44 }
 0x9bf   :  { %3039 = vmatprep.mubr.msk.f32.mxu0 %vm364_vm2, %v2124_v60  ;;  %3215 = vrcp.f32 %v2106_v45 }
 0x9c1   :  { %v2109_v48 = vpop.xlane.xlu0 %2108  ;;  %v2112_v50 = vpop.xlane.xlu1 %2111 }
 0x9c2   :  { %3217 = vrcp.f32 %v2112_v50 }
 0x9c3   :  { %3219 = vrcp.f32 %v2109_v48 }
 0x9c5   :  { %v2115_v52 = vpop.xlane.xlu0 %2114  ;;  %v2133_v57 = vpop.permute.xlu1 %2132 }
 0x9c6   :  { %3221 = vrcp.f32 %v2115_v52 }
 0x9c7   :  { %v3210_v53 = vpop.eup %3209 }
 0x9c8   :  { %v3212_v27 = vpop.eup %3211  ;;  %v2125_v55 = vmul.f32 %v3210_v53, %v3865_v40 }
 0x9c9   :  { %v2135_v26 = vpop.permute.xlu0 %2134  ;;  %v2126_v61 = vmul.f32 %v3212_v27, %v3855_v39 }
 0x9ca   :  { %3035 = vmatprep.subr.mxu0 %v2135_v26  ;;  %3071 = vmatprep.subr.mxu1 %v2135_v26 }
 0x9cb   :  { %3036 = vmatpush3.msra.mxu0 %v2135_v26  ;;  %3079 = vmatpush3.msra.mxu1 %v2135_v26  ;;  %v3214_v59 = vpop.eup %3213 }
 0x9cc   :  { %3037 = vmatprep.subr.mxu0 %v2133_v57  ;;  %3072 = vmatprep.subr.mxu1 %v2133_v57  ;;  %v3216_v62 = vpop.eup %3215  ;;  %v2127_v46 = vmul.f32 %v3214_v59, %v3869_v1  ;;  %v1260_v1 = vadd.f32 %v3893_v10, %v3710_v31 }
 0x9cd   :  { %3038 = vmatpush3.msra.mxu0 %v2133_v57  ;;  %3080 = vmatpush3.msra.mxu1 %v2133_v57  ;;  %v2128_v24 = vmul.f32 %v3216_v62, %v3871_v23  ;;  %v1255_v23 = vadd.f32 %v3895_v11, %v3712_v32  ;;  %v1275_v32 = vadd.f32 %v3903_v43, %v3720_v36 }
 0x9ce   :  { %3040 = vmatmul.mubr.msk.f32.vlgmr.msra.gmra.mxu0 %vm364_vm2, %v2125_v55  ;;  %3051 = vmatprep.subr.mxu0 %v2285_v56 }
 0x9cf   :  { %3042 = vmatprep.mubr.msk.f32.mxu0 %vm364_vm2, %v2126_v61  ;;  %v3218_v17 = vpop.eup %3217  ;;  %3052 = vmatpush3.msra.mxu0 %v2285_v56 }
 0x9d0   :  { %v3220_v63 = vpop.eup %3219  ;;  %v2130_v0 = vmul.f32 %v3218_v17, %v3879_v5  ;;  %v1265_v5 = vadd.f32 %v3899_v14, %v3716_v34  ;;  %v1285_v34 = vadd.f32 %v3907_v20, %v3724_v38 }
 0x9d1   :  { %v2129_v40 = vmul.f32 %v3220_v63, %v3877_v3 }
 0x9d2   :  { %3043 = vmatmul.mubr.msk.f32.gmra.mxu0 %vm364_vm2, %v2127_v46  ;;  %3048 = vmatprep.mubr.msk.f32.mxu1 %vm364_vm2, %v2130_v0 }
 0x9d3   :  { %v3222_v49 = vpop.eup %3221  ;;  %3045 = vmatprep.mubr.msk.f32.mxu0 %vm364_vm2, %v2128_v24 }
 0x9d4   :  { %v2131_v39 = vmul.f32 %v3222_v49, %v3885_v8  ;;  %v1280_v8 = vadd.f32 %v3901_v16, %v3718_v35 }
 0x9d6   :  { %3046 = vmatmul.mubr.msk.f32.gmra.mxu0 %vm364_vm2, %v2129_v40  ;;  %3049 = vmatmul.mubr.msk.f32.vlgmr.msra.gmra.mxu1 %vm364_vm2, %v2131_v39 }
 0xa72   :  { %v2985_v2 = vpop.f32.mrf.mxu0 }
 0xa73   :  { %v1851_v19 = vadd.f32 %v2985_v2, %v1260_v1 }
 0xa74   :  { %v1811_v22 = vpop.f32.mrf.mxu0 }
 0xa75   :  { %v1850_v3 = vadd.f32 %v1811_v22, %v1255_v23 }
 0xa76   :  { %v2988_v4 = vpop.f32.mrf.mxu0 }
 0xa77   :  { %v1853_v25 = vadd.f32 %v2988_v4, %v1270_v47 }
 0xa78   :  { %v1821_v7 = vpop.f32.mrf.mxu0 }
 0xa79   :  { %v1852_v31 = vadd.f32 %v1821_v7, %v1265_v5 }
 0xa7a   :  { %v2991_v6 = vpop.f32.mrf.mxu0 }
 0xa7b   :  { %v1855_v10 = vadd.f32 %v2991_v6, %v1280_v8 }
 0xa7c   :  { %v1831_v11 = vpop.f32.mrf.mxu0 }
 0xa7d   :  { %v1854_v13 = vadd.f32 %v1831_v11, %v1275_v32 }
 0xa7e   :  { %v2994_v18 = vpop.f32.mrf.mxu0 }
 0xa7f   :  { %v1857_v14 = vadd.f32 %v2994_v18, %v1290_v33 }
 0xa80   :  { %v1841_v15 = vpop.f32.mrf.mxu0 }
 0xa81   :  { %v1856_v28 = vadd.f32 %v1841_v15, %v1285_v34 }
 0xa8e   :  { %v3041_v51 = vpop.f32.mrf.mxu0 }
 0xa90   :  { %v2246_v35 = vpop.f32.mrf.mxu0 }
 0xa91   :  { %3053 = vmatprep.mubr.msk.f32.mxu0 %vm210_vm1, %v2246_v35 }
 0xa92   :  { %v3044_v16 = vpop.f32.mrf.mxu0  ;;  %3054 = vmatmul.mubr.msk.f32.vlgmr.msra.gmra.mxu0 %vm210_vm1, %v3041_v51 }
 0xa94   :  { %v2256_v36 = vpop.f32.mrf.mxu0 }
 0xa95   :  { %3056 = vmatprep.mubr.msk.f32.mxu0 %vm210_vm1, %v2256_v36 }
 0xa96   :  { %v3047_v43 = vpop.f32.mrf.mxu0  ;;  %v3050_v37 = vpop.f32.mrf.mxu1  ;;  %3057 = vmatmul.mubr.msk.f32.gmra.mxu0 %vm210_vm1, %v3044_v16 }
 0xa98   :  { %v2266_v41 = vpop.f32.mrf.mxu0  ;;  %v2276_v38 = vpop.f32.mrf.mxu1 }
 0xa99   :  { %3059 = vmatprep.mubr.msk.f32.mxu0 %vm210_vm1, %v2266_v41 }
 0xa9a   :  { %3060 = vmatmul.mubr.msk.f32.gmra.mxu0 %vm210_vm1, %v3047_v43 }
 0xa9b   :  { %3062 = vmatprep.mubr.msk.f32.mxu0 %vm210_vm1, %v2276_v38 }
 0xa9e   :  { %3063 = vmatmul.mubr.msk.f32.gmra.mxu0 %vm210_vm1, %v3050_v37 }
 0xb52   :  { %v3055_v20 = vpop.f32.mrf.mxu0 }
 0xb53   :  { %v2416_v29 = vadd.f32 %v3055_v20, %v1851_v19 }
 0xb54   :  { %v2376_v30 = vpop.f32.mrf.mxu0 }
 0xb55   :  { %v2431_v54 = vadd.f32 %v2588_v21, %v2416_v29  ;;  %v2415_v12 = vadd.f32 %v2376_v30, %v1850_v3 }
 0xb56   :  { %v3058_v58 = vpop.f32.mrf.mxu0 }
 0xb57   :  { %2439 = vst.msk [vmem:[%s4001_s6 + $0x8] sm:$0xff] %vm56_vm0, %v2431_v54  ;;  %v2430_v42 = vadd.f32 %v2588_v21, %v2415_v12  ;;  %v2418_v9 = vadd.f32 %v3058_v58, %v1853_v25 }
 0xb58   :  { %v2386_v44 = vpop.f32.mrf.mxu0 }
 0xb59   :  { %2438 = vst.msk [vmem:[%s4001_s6] sm:$0xff] %vm56_vm0, %v2430_v42  ;;  %v2433_v45 = vadd.f32 %v2588_v21, %v2418_v9  ;;  %v2417_v60 = vadd.f32 %v2386_v44, %v1852_v31 }
 0xb5a   :  { %v3061_v48 = vpop.f32.mrf.mxu0 }
 0xb5b   :  { %2441 = vst.msk [vmem:[%s4001_s6 + $0x18] sm:$0xff] %vm56_vm0, %v2433_v45  ;;  %v2432_v50 = vadd.f32 %v2588_v21, %v2417_v60  ;;  %v2420_v52 = vadd.f32 %v3061_v48, %v1855_v10 }
 0xb5c   :  { %v2396_v53 = vpop.f32.mrf.mxu0 }
 0xb5d   :  { %2440 = vst.msk [vmem:[%s4001_s6 + $0x10] sm:$0xff] %vm56_vm0, %v2432_v50  ;;  %v2435_v26 = vadd.f32 %v2588_v21, %v2420_v52  ;;  %v2419_v27 = vadd.f32 %v2396_v53, %v1854_v13 }
 0xb5e   :  { %v3064_v57 = vpop.f32.mrf.mxu0 }
 0xb5f   :  { %2443 = vst.msk [vmem:[%s4001_s6 + $0x28] sm:$0xff] %vm56_vm0, %v2435_v26  ;;  %v2434_v55 = vadd.f32 %v2588_v21, %v2419_v27  ;;  %v2422_v59 = vadd.f32 %v3064_v57, %v1857_v14 }
 0xb60   :  { %v2406_v61 = vpop.f32.mrf.mxu0 }
 0xb61   :  { %2442 = vst.msk [vmem:[%s4001_s6 + $0x20] sm:$0xff] %vm56_vm0, %v2434_v55  ;;  %v2437_v62 = vadd.f32 %v2588_v21, %v2422_v59  ;;  %v2421_v17 = vadd.f32 %v2406_v61, %v1856_v28 }
 0xb63   :  { %2445 = vst.msk [vmem:[%s4001_s6 + $0x38] sm:$0xff] %vm56_vm0, %v2437_v62  ;;  %v2436_v46 = vadd.f32 %v2588_v21, %v2421_v17 }
 0xb65   :  { %2444 = vst.msk [vmem:[%s4001_s6 + $0x30] sm:$0xff] %vm56_vm0, %v2436_v46 }
 0xb66   :  { %2450 = vsyncpa [#allocation3], 1 }

// kernel: tpu_custom_call.1
= control target key start
LH: loop header
LB: loop body
LE: loop exit
PB: predicated region body
PF: predicated region fallthrough
CT: control target
= control target key end

     0   :  { %11 = vsyncpa [#allocation3], 0  ;;  %s3245_s21 = smov [#allocation2]   ;;  %s3995_s0 = inlined_call_operand.vmem [shape: f32[1,64,32], index: 0, kind: input, shape index: {}]   ;;  %s3996_s1 = inlined_call_operand.vmem [shape: f32[32,96], index: 1, kind: input, shape index: {}]   ;;  %s3997_s2 = inlined_call_operand.vmem [shape: f32[1,96], index: 2, kind: input, shape index: {}]   ;;  %s3998_s3 = inlined_call_operand.hbm [shape: f32[4,1,64,64], index: 3, kind: input, shape index: {}]   ;;  %s3999_s4 = inlined_call_operand.vmem [shape: f32[32,32], index: 4, kind: input, shape index: {}]   ;;  %s4000_s5 = inlined_call_operand.vmem [shape: f32[1,32], index: 5, kind: input, shape index: {}]   ;;  %s4001_s6 = inlined_call_operand.vmem [shape: f32[1,64,32], index: 6, kind: output, shape index: {}]  }
   0x1   :  { %s23_s22 = sshll.u32 %s3245_s21, 4  ;;  %s24_s22 = int_to_ptr.vmem [resolvable:$true] %s23_s22 }
   0x2   :  { %s3231_s23 = scalar_lea.vmem %s24_s22, 4096  ;;  %p3236_p1 = scmp.lt.s32.totalorder %s24_s22, %s24_s22 }
   0x3   :  { %p3232_p0 = scmp.ne.s32.totalorder %s24_s22, %s3231_s23  ;;  %p3237_p2 = scmp.lt.s32.totalorder %s3231_s23, %s3231_s23 }
   0x5   :  { %p3238_p3 = por %p3237_p2, %p3236_p1 }
   0x7   :  { %p3239_p4 = pnand %p3238_p3, %p3232_p0 }
   0x9   :  { %3242 = shalt.err (!%p3239_p4)
}
   0xa   :  { %s3246_s24 = smov 128   ;;  %s3247_s25 = smov 8  }
   0xb   :  { %29 = dma.hbm_to_vmem [thread:$0]  %s3998_s3, 4096, %s24_s22, [#allocation3], %s3246_s24, %s3246_s24, %s3247_s25  }
   0xc   :  { %3243 = dma.done.wait [#allocation3], 4096  }
   0xd   :  { %3244 = vsyncadd [#allocation3], 4294963200  ;;  %vm56_vm0 = vcmask 261120   ;;  %v48_v0 = vld [vmem:[%s3996_s1 + $0x18] sm:$0xff]  ;;  %v47_v1 = vld [vmem:[%s3996_s1 + $0x10] sm:$0xff]  ;;  %vm210_vm1 = vcmask 64512  }
   0xe   :  { %2765 = vmatprep.subr.mxu0 %v48_v0  ;;  %v37_v2 = vld [vmem:[%s3995_s0] sm:$0xff]  ;;  %v46_v3 = vld [vmem:[%s3996_s1 + $0x8] sm:$0xff]  ;;  %v39_v6 = vld [vmem:[%s3995_s0 + $0x10] sm:$0xff]  ;;  %s3250_s28 = smov 88   ;;  %vm364_vm2 = vcmask 523264   ;;  %s3251_s29 = smov 120  }
   0xf   :  { %2766 = vmatpush3.msra.mxu0 %v48_v0  ;;  %2773 = vmatprep.mubr.msk.f32.mxu0 %vm56_vm0, %v37_v2  ;;  %v45_v4 = vld [vmem:[%s3996_s1] sm:$0xff]  ;;  %v38_v5 = vld [vmem:[%s3995_s0 + $0x8] sm:$0xff]  ;;  %v40_v7 = vld [vmem:[%s3995_s0 + $0x18] sm:$0xff]  ;;  %s3252_s30 = smov 56   ;;  %s3253_s9 = smov 80  }
  0x10   :  { %2767 = vmatprep.subr.mxu0 %v47_v1  ;;  %v41_v8 = vld [vmem:[%s3995_s0 + $0x20] sm:$0xff]  ;;  %v42_v9 = vld [vmem:[%s3995_s0 + $0x28] sm:$0xff]  ;;  %v43_v10 = vld [vmem:[%s3995_s0 + $0x30] sm:$0xff]  ;;  %s3254_s10 = smov 112   ;;  %s3255_s11 = smov 72  }
  0x11   :  { %2768 = vmatpush3.msra.mxu0 %v47_v1  ;;  %v44_v11 = vld [vmem:[%s3995_s0 + $0x38] sm:$0xff]  ;;  %v2451_v13 = vld [vmem:[%s3997_s2] ss:$0 sm:$0xff]  ;;  %s3248_s0 = smov 96   ;;  %s3249_s2 = smov 64   ;;  %v349_v46 = vld [vmem:[#allocation2 + $0x8] sm:$0xff] }
  0x12   :  { %2769 = vmatprep.subr.mxu0 %v46_v3  ;;  %v348_v48 = vld [vmem:[#allocation2] sm:$0xff]  ;;  %v351_v51 = vld [vmem:[#allocation2 + $0x18] sm:$0xff]  ;;  %v350_v58 = vld [vmem:[#allocation2 + $0x10] sm:$0xff]  ;;  %s3256_s3 = smov 104   ;;  %s3257_s14 = smov 48  }
  0x13   :  { %2770 = vmatpush3.msra.mxu0 %v46_v3  ;;  %v352_v60 = vld [vmem:[#allocation2 + $0x20] sm:$0xff]  ;;  %v353_v63 = vld [vmem:[#allocation2 + $0x28] sm:$0xff]  ;;  %v354_v3 = vld [vmem:[#allocation2 + $0x30] sm:$0xff]  ;;  %s3258_s15 = smov 40  }
  0x14   :  { %2771 = vmatprep.subr.mxu0 %v45_v4 }
  0x15   :  { %2772 = vmatpush3.msra.mxu0 %v45_v4 }
  0x16   :  { %2774 = vmatmul.mubr.msk.f32.vlgmr.msra.gmra.mxu0 %vm56_vm0, %v38_v5 }
  0x17   :  { %2776 = vmatprep.mubr.msk.f32.mxu0 %vm56_vm0, %v39_v6 }
  0x1a   :  { %2777 = vmatmul.mubr.msk.f32.gmra.mxu0 %vm56_vm0, %v40_v7  ;;  %v355_v7 = vld [vmem:[#allocation2 + $0x38] sm:$0xff] }
  0x1b   :  { %2779 = vmatprep.mubr.msk.f32.mxu0 %vm56_vm0, %v41_v8 }
  0x1e   :  { %2780 = vmatmul.mubr.msk.f32.gmra.mxu0 %vm56_vm0, %v42_v9 }
  0x1f   :  { %2782 = vmatprep.mubr.msk.f32.mxu0 %vm56_vm0, %v43_v10 }
  0x22   :  { %2783 = vmatmul.mubr.msk.f32.gmra.mxu0 %vm56_vm0, %v44_v11 }
  0xd6   :  { %v2775_v12 = vpop.f32.mrf.mxu0 }
  0xd7   :  { %v3367_v28 = vadd.f32 %v2775_v12, %v2451_v13 }
  0xd8   :  { %v147_v14 = vpop.f32.mrf.mxu0 }
  0xd9   :  { %v3344_v15 = vadd.f32 %v2451_v13, %v147_v14 }
  0xda   :  { %v2778_v16 = vpop.f32.mrf.mxu0 }
  0xdb   :  { %2801 = vmatprep.mubr.msk.f32.mxu1 %vm210_vm1, %v3344_v15  ;;  %v3363_v27 = vadd.f32 %v2778_v16, %v2451_v13 }
  0xdc   :  { %v157_v17 = vpop.f32.mrf.mxu0 }
  0xdd   :  { %v3357_v25 = vadd.f32 %v2451_v13, %v157_v17 }
  0xde   :  { %v2781_v18 = vpop.f32.mrf.mxu0 }
  0xdf   :  { %v3348_v19 = vadd.f32 %v2781_v18, %v2451_v13 }
  0xe0   :  { %v167_v20 = vpop.f32.mrf.mxu0 }
  0xe1   :  { %204 = vrot.lane.b32.xlu1 %v3348_v19, %s3248_s0  ;;  %v3351_v22 = vadd.f32 %v2451_v13, %v167_v20 }
  0xe2   :  { %v2784_v21 = vpop.f32.mrf.mxu0 }
  0xe3   :  { %v3353_v23 = vadd.f32 %v2784_v21, %v2451_v13 }
  0xe4   :  { %v177_v24 = vpop.f32.mrf.mxu0 }
  0xe5   :  { %208 = vrot.lane.b32.xlu0 %v3353_v23, %s3248_s0  ;;  %202 = vrot.lane.b32.xlu1 %v3351_v22, %s3248_s0  ;;  %v3359_v26 = vadd.f32 %v2451_v13, %v177_v24 }
  0xe9   :  { %206 = vrot.lane.b32.xlu0 %v3359_v26, %s3248_s0  ;;  %198 = vrot.lane.b32.xlu1 %v3357_v25, %s3248_s0 }
  0xed   :  { %200 = vrot.lane.b32.xlu0 %v3363_v27, %s3248_s0  ;;  %194 = vrot.lane.b32.xlu1 %v3344_v15, %s3248_s0 }
  0xf1   :  { %196 = vrot.lane.b32.xlu0 %v3367_v28, %s3248_s0  ;;  %467 = vrot.lane.b32.xlu1 %v3353_v23, %s3249_s2 }
  0xf5   :  { %459 = vrot.lane.b32.xlu0 %v3363_v27, %s3249_s2  ;;  %463 = vrot.lane.b32.xlu1 %v3348_v19, %s3249_s2 }
  0xf9   :  { %455 = vrot.lane.b32.xlu0 %v3367_v28, %s3249_s2  ;;  %461 = vrot.lane.b32.xlu1 %v3351_v22, %s3249_s2 }
  0xfd   :  { %637 = vrot.lane.b32.xlu0 %v3353_v23, %s3250_s28  ;;  %457 = vrot.lane.b32.xlu1 %v3357_v25, %s3249_s2 }
 0x101   :  { %465 = vrot.lane.b32.xlu0 %v3359_v26, %s3249_s2  ;;  %453 = vrot.lane.b32.xlu1 %v3344_v15, %s3249_s2 }
 0x105   :  { %635 = vrot.lane.b32.xlu1 %v3359_v26, %s3250_s28 }
 0x153   :  { %v205_v29 = vpop.permute.xlu1 %204 }
 0x157   :  { %v209_v30 = vpop.permute.xlu0 %208  ;;  %v203_v31 = vpop.permute.xlu1 %202 }
 0x158   :  { %2785 = vmatprep.subr.msk.mxu1 %vm210_vm1, %v209_v30 }
 0x159   :  { %2786 = vmatpush3.xpose.msk.msra.mxu1 %vm210_vm1, %v209_v30 }
 0x15b   :  { %v207_v32 = vpop.permute.xlu0 %206  ;;  %v199_v33 = vpop.permute.xlu1 %198 }
 0x15c   :  { %2787 = vmatprep.subr.msk.mxu1 %vm210_vm1, %v207_v32 }
 0x15d   :  { %2788 = vmatpush3.xpose.msk.msra.mxu1 %vm210_vm1, %v207_v32 }
 0x15e   :  { %2789 = vmatprep.subr.msk.mxu1 %vm210_vm1, %v205_v29 }
 0x15f   :  { %v201_v34 = vpop.permute.xlu0 %200  ;;  %v195_v35 = vpop.permute.xlu1 %194 }
 0x161   :  { %2790 = vmatpush3.xpose.msk.msra.mxu1 %vm210_vm1, %v205_v29 }
 0x162   :  { %2791 = vmatprep.subr.msk.mxu1 %vm210_vm1, %v203_v31 }
 0x163   :  { %v197_v36 = vpop.permute.xlu0 %196  ;;  %v468_v37 = vpop.permute.xlu1 %467 }
 0x164   :  { %2813 = vmatprep.subr.mxu0 %v468_v37 }
 0x165   :  { %2792 = vmatpush3.xpose.msk.msra.mxu1 %vm210_vm1, %v203_v31  ;;  %2814 = vmatpush3.msra.mxu0 %v468_v37 }
 0x166   :  { %2793 = vmatprep.subr.msk.mxu1 %vm210_vm1, %v201_v34 }
 0x167   :  { %v460_v38 = vpop.permute.xlu0 %459  ;;  %v464_v40 = vpop.permute.xlu1 %463 }
 0x169   :  { %2794 = vmatpush3.xpose.msk.msra.mxu1 %vm210_vm1, %v201_v34 }
 0x16a   :  { %2795 = vmatprep.subr.msk.mxu1 %vm210_vm1, %v199_v33 }
 0x16b   :  { %v456_v39 = vpop.permute.xlu0 %455  ;;  %v462_v42 = vpop.permute.xlu1 %461 }
 0x16d   :  { %2796 = vmatpush3.xpose.msk.msra.mxu1 %vm210_vm1, %v199_v33 }
 0x16e   :  { %2797 = vmatprep.subr.msk.mxu1 %vm210_vm1, %v197_v36 }
 0x16f   :  { %v3395_v41 = vpop.permute.xlu0 %637  ;;  %v458_v44 = vpop.permute.xlu1 %457 }
 0x171   :  { %2798 = vmatpush3.xpose.msk.msra.mxu1 %vm210_vm1, %v197_v36 }
 0x172   :  { %2799 = vmatprep.subr.msk.mxu1 %vm210_vm1, %v195_v35 }
 0x173   :  { %v466_v43 = vpop.permute.xlu0 %465  ;;  %v454_v45 = vpop.permute.xlu1 %453 }
 0x174   :  { %2815 = vmatprep.subr.mxu0 %v466_v43 }
 0x175   :  { %2800 = vmatpush3.xpose.msk.msra.mxu1 %vm210_vm1, %v195_v35  ;;  %2816 = vmatpush3.msra.mxu0 %v466_v43 }
 0x176   :  { %2817 = vmatprep.subr.mxu0 %v464_v40 }
 0x177   :  { %2818 = vmatpush3.msra.mxu0 %v464_v40  ;;  %v3428_v14 = vpop.permute.xlu1 %635 }
 0x178   :  { %2802 = vmatmul.mubr.msk.f32.vlgmr.msra.gmra.mxu1 %vm210_vm1, %v3367_v28  ;;  %2819 = vmatprep.subr.mxu0 %v462_v42 }
 0x179   :  { %2804 = vmatprep.mubr.msk.f32.mxu1 %vm210_vm1, %v3357_v25  ;;  %2820 = vmatpush3.msra.mxu0 %v462_v42 }
 0x17a   :  { %2821 = vmatprep.subr.mxu0 %v460_v38 }
 0x17b   :  { %2822 = vmatpush3.msra.mxu0 %v460_v38 }
 0x17c   :  { %2805 = vmatmul.mubr.msk.f32.gmra.mxu1 %vm210_vm1, %v3363_v27  ;;  %2823 = vmatprep.subr.mxu0 %v458_v44 }
 0x17d   :  { %2807 = vmatprep.mubr.msk.f32.mxu1 %vm210_vm1, %v3351_v22  ;;  %2824 = vmatpush3.msra.mxu0 %v458_v44 }
 0x17e   :  { %2825 = vmatprep.subr.mxu0 %v456_v39 }
 0x17f   :  { %2826 = vmatpush3.msra.mxu0 %v456_v39 }
 0x180   :  { %2808 = vmatmul.mubr.msk.f32.gmra.mxu1 %vm210_vm1, %v3348_v19  ;;  %2827 = vmatprep.subr.mxu0 %v454_v45 }
 0x181   :  { %2810 = vmatprep.mubr.msk.f32.mxu1 %vm210_vm1, %v3359_v26  ;;  %2828 = vmatpush3.msra.mxu0 %v454_v45 }
 0x182   :  { %2841 = vmatprep.subr.msk.mxu0 %vm210_vm1, %v3395_v41 }
 0x184   :  { %2811 = vmatmul.mubr.msk.f32.gmra.mxu1 %vm210_vm1, %v3353_v23 }
 0x238   :  { %v2803_v47 = vpop.f32.mrf.mxu1 }
 0x239   :  { %v357_v49 = vadd.f32 %v2803_v47, %v349_v46 }
 0x23a   :  { %v309_v50 = vpop.f32.mrf.mxu1 }
 0x23b   :  { %v356_v52 = vadd.f32 %v348_v48, %v309_v50  ;;  %v368_v53 = vsel %vm364_vm2, %v357_v49, -inf }
 0x23c   :  { %369 = vmax.xlane.f32.xlu1 %v368_v53  ;;  %v2806_v54 = vpop.f32.mrf.mxu1 }
 0x23d   :  { %v359_v55 = vadd.f32 %v2806_v54, %v351_v51  ;;  %v365_v56 = vsel %vm364_vm2, %v356_v52, -inf }
 0x23e   :  { %366 = vmax.xlane.f32.xlu0 %v365_v56  ;;  %v319_v57 = vpop.f32.mrf.mxu1 }
 0x23f   :  { %v358_v61 = vadd.f32 %v350_v58, %v319_v57  ;;  %v374_v62 = vsel %vm364_vm2, %v359_v55, -inf }
 0x240   :  { %v2809_v59 = vpop.f32.mrf.mxu1 }
 0x241   :  { %v361_v4 = vadd.f32 %v2809_v59, %v353_v63  ;;  %v371_v5 = vsel %vm364_vm2, %v358_v61, -inf }
 0x242   :  { %375 = vmax.xlane.f32.xlu0 %v374_v62  ;;  %v329_v0 = vpop.f32.mrf.mxu1 }
 0x243   :  { %v360_v1 = vadd.f32 %v352_v60, %v329_v0  ;;  %v380_v11 = vsel %vm364_vm2, %v361_v4, -inf }
 0x244   :  { %v2812_v2 = vpop.f32.mrf.mxu1 }
 0x245   :  { %v377_v6 = vsel %vm364_vm2, %v360_v1, -inf  ;;  %v363_v10 = vadd.f32 %v2812_v2, %v355_v7 }
 0x246   :  { %372 = vmax.xlane.f32.xlu0 %v371_v5  ;;  %378 = vmax.xlane.f32.xlu1 %v377_v6  ;;  %v339_v8 = vpop.f32.mrf.mxu1 }
 0x247   :  { %v362_v9 = vadd.f32 %v354_v3, %v339_v8  ;;  %v386_v13 = vsel %vm364_vm2, %v363_v10, -inf }
 0x249   :  { %v383_v12 = vsel %vm364_vm2, %v362_v9, -inf }
 0x24a   :  { %381 = vmax.xlane.f32.xlu0 %v380_v11  ;;  %384 = vmax.xlane.f32.xlu1 %v383_v12 }
 0x24e   :  { %387 = vmax.xlane.f32.xlu0 %v386_v13 }
 0x25b   :  { %631 = vrot.lane.b32.xlu1 %v3351_v22, %s3250_s28 }
 0x264   :  { %633 = vrot.lane.b32.xlu0 %v3348_v19, %s3250_s28 }
 0x2c5   :  { %v370_v16 = vpop.xlane.xlu1 %369 }
 0x2c6   :  { %v390_v17 = vsub.f32 %v357_v49, %v370_v16 }
 0x2c7   :  { %v367_v18 = vpop.xlane.xlu0 %366 }
 0x2c8   :  { %v399_v20 = vmul.f32 1.442695, %v390_v17  ;;  %v389_v21 = vsub.f32 %v356_v52, %v367_v18 }
 0x2ca   :  { %3095 = vpow2.f32 %v399_v20  ;;  %v397_v24 = vmul.f32 1.442695, %v389_v21 }
 0x2cb   :  { %v376_v33 = vpop.xlane.xlu0 %375 }
 0x2cc   :  { %3097 = vpow2.f32 %v397_v24  ;;  %v392_v38 = vsub.f32 %v359_v55, %v376_v33 }
 0x2ce   :  { %v403_v43 = vmul.f32 1.442695, %v392_v38 }
 0x2cf   :  { %v373_v34 = vpop.xlane.xlu0 %372  ;;  %v379_v35 = vpop.xlane.xlu1 %378 }
 0x2d0   :  { %v391_v36 = vsub.f32 %v358_v61, %v373_v34  ;;  %v393_v40 = vsub.f32 %v360_v1, %v379_v35 }
 0x2d2   :  { %v401_v39 = vmul.f32 1.442695, %v391_v36  ;;  %v405_v46 = vmul.f32 1.442695, %v393_v40 }
 0x2d3   :  { %v382_v37 = vpop.xlane.xlu0 %381  ;;  %v385_v42 = vpop.xlane.xlu1 %384 }
 0x2d4   :  { %v394_v44 = vsub.f32 %v361_v4, %v382_v37  ;;  %3099 = vpow2.f32 %v401_v39  ;;  %v395_v47 = vsub.f32 %v362_v9, %v385_v42 }
 0x2d5   :  { %3101 = vpow2.f32 %v403_v43 }
 0x2d6   :  { %v407_v48 = vmul.f32 1.442695, %v394_v44  ;;  %3103 = vpow2.f32 %v405_v46  ;;  %v409_v50 = vmul.f32 1.442695, %v395_v47  ;;  %v606_v46 = vld [vmem:[%s3999_s4] sm:$0xff] }
 0x2d7   :  { %v3430_v29 = vpop.eup %3095  ;;  %v388_v45 = vpop.xlane.xlu0 %387 }
 0x2d8   :  { %v416_v30 = vsel %vm364_vm2, %v3430_v29, 0.0  ;;  %v396_v49 = vsub.f32 %v363_v10, %v388_v45  ;;  %3105 = vpow2.f32 %v407_v48  ;;  %v632_v1 = vpop.permute.xlu1 %631 }
 0x2d9   :  { %v3434_v31 = vpop.eup %3097  ;;  %417 = vadd.xlane.f32.xlu0 %v416_v30  ;;  %3107 = vpow2.f32 %v409_v50 }
 0x2da   :  { %v413_v32 = vsel %vm364_vm2, %v3434_v31, 0.0  ;;  %v411_v51 = vmul.f32 1.442695, %v396_v49 }
 0x2db   :  { %414 = vadd.xlane.f32.xlu1 %v413_v32  ;;  %v634_v0 = vpop.permute.xlu0 %633 }
 0x2dc   :  { %3109 = vpow2.f32 %v411_v51 }
 0x2e1   :  { %v3442_v52 = vpop.eup %3099 }
 0x2e2   :  { %v3444_v53 = vpop.eup %3101  ;;  %v419_v54 = vsel %vm364_vm2, %v3442_v52, 0.0 }
 0x2e3   :  { %v3448_v55 = vpop.eup %3103  ;;  %v422_v56 = vsel %vm364_vm2, %v3444_v53, 0.0 }
 0x2e4   :  { %v425_v58 = vsel %vm364_vm2, %v3448_v55, 0.0 }
 0x2e5   :  { %v3452_v57 = vpop.eup %3105 }
 0x2e6   :  { %v3456_v59 = vpop.eup %3107  ;;  %v428_v60 = vsel %vm364_vm2, %v3452_v57, 0.0 }
 0x2e7   :  { %v431_v62 = vsel %vm364_vm2, %v3456_v59, 0.0 }
 0x2e9   :  { %v3460_v61 = vpop.eup %3109 }
 0x2ea   :  { %v434_v63 = vsel %vm364_vm2, %v3460_v61, 0.0 }
 0x2ec   :  { %627 = vrot.lane.b32.xlu1 %v3357_v25, %s3250_s28 }
 0x2ef   :  { %629 = vrot.lane.b32.xlu0 %v3363_v27, %s3250_s28 }
 0x30e   :  { %420 = vadd.xlane.f32.xlu0 %v419_v54 }
 0x310   :  { %423 = vadd.xlane.f32.xlu1 %v422_v56 }
 0x312   :  { %426 = vadd.xlane.f32.xlu0 %v425_v58 }
 0x314   :  { %429 = vadd.xlane.f32.xlu1 %v428_v60 }
 0x316   :  { %432 = vadd.xlane.f32.xlu0 %v431_v62  ;;  %v780_v62 = vld [vmem:[#allocation2 + $0x58] sm:$0xff] }
 0x318   :  { %435 = vadd.xlane.f32.xlu1 %v434_v63 }
 0x329   :  { %623 = vrot.lane.b32.xlu1 %v3344_v15, %s3250_s28 }
 0x32c   :  { %625 = vrot.lane.b32.xlu0 %v3367_v28, %s3250_s28 }
 0x32d   :  { %609 = vrot.lane.b32.xlu1 %v3367_v28, %s3251_s29 }
 0x330   :  { %607 = vrot.lane.b32.xlu0 %v3344_v15, %s3251_s29 }
 0x331   :  { %613 = vrot.lane.b32.xlu1 %v3363_v27, %s3251_s29 }
 0x334   :  { %611 = vrot.lane.b32.xlu0 %v3357_v25, %s3251_s29 }
 0x335   :  { %617 = vrot.lane.b32.xlu1 %v3348_v19, %s3251_s29 }
 0x338   :  { %615 = vrot.lane.b32.xlu0 %v3351_v22, %s3251_s29 }
 0x339   :  { %621 = vrot.lane.b32.xlu1 %v3353_v23, %s3251_s29 }
 0x33c   :  { %619 = vrot.lane.b32.xlu0 %v3359_v26, %s3251_s29 }
 0x33d   :  { %895 = vrot.lane.b32.xlu1 %v3353_v23, %s3252_s30 }
 0x340   :  { %893 = vrot.lane.b32.xlu0 %v3359_v26, %s3252_s30 }
 0x344   :  { %889 = vrot.lane.b32.xlu0 %v3351_v22, %s3252_s30 }
 0x362   :  { %v418_v2 = vpop.xlane.xlu0 %417 }
 0x363   :  { %3111 = vrcp.f32 %v418_v2 }
 0x364   :  { %v415_v3 = vpop.xlane.xlu1 %414 }
 0x365   :  { %3113 = vrcp.f32 %v415_v3 }
 0x366   :  { %v630_v8 = vpop.permute.xlu0 %629 }
 0x368   :  { %v628_v9 = vpop.permute.xlu1 %627 }
 0x370   :  { %v3112_v4 = vpop.eup %3111 }
 0x371   :  { %v446_v7 = vmul.f32 %v3112_v4, %v3430_v29 }
 0x372   :  { %v3114_v5 = vpop.eup %3113 }
 0x373   :  { %v445_v6 = vmul.f32 %v3114_v5, %v3434_v31  ;;  %v779_v5 = vld [vmem:[#allocation2 + $0x50] sm:$0xff] }
 0x375   :  { %2829 = vmatprep.mubr.msk.f32.mxu0 %vm364_vm2, %v445_v6 }
 0x376   :  { %2830 = vmatmul.mubr.msk.f32.vlgmr.msra.gmra.mxu0 %vm364_vm2, %v446_v7 }
 0x377   :  { %2842 = vmatpush3.xpose.msk.msra.mxu0 %vm210_vm1, %v3395_v41 }
 0x378   :  { %2843 = vmatprep.subr.msk.mxu0 %vm210_vm1, %v3428_v14 }
 0x37b   :  { %2844 = vmatpush3.xpose.msk.msra.mxu0 %vm210_vm1, %v3428_v14 }
 0x37c   :  { %2845 = vmatprep.subr.msk.mxu0 %vm210_vm1, %v634_v0 }
 0x37f   :  { %2846 = vmatpush3.xpose.msk.msra.mxu0 %vm210_vm1, %v634_v0 }
 0x380   :  { %2847 = vmatprep.subr.msk.mxu0 %vm210_vm1, %v632_v1 }
 0x383   :  { %2848 = vmatpush3.xpose.msk.msra.mxu0 %vm210_vm1, %v632_v1 }
 0x384   :  { %2849 = vmatprep.subr.msk.mxu0 %vm210_vm1, %v630_v8 }
 0x387   :  { %2850 = vmatpush3.xpose.msk.msra.mxu0 %vm210_vm1, %v630_v8 }
 0x388   :  { %2851 = vmatprep.subr.msk.mxu0 %vm210_vm1, %v628_v9 }
 0x38b   :  { %2852 = vmatpush3.xpose.msk.msra.mxu0 %vm210_vm1, %v628_v9  ;;  %v782_v9 = vld [vmem:[#allocation2 + $0x68] sm:$0xff] }
 0x397   :  { %v421_v41 = vpop.xlane.xlu0 %420 }
 0x398   :  { %3115 = vrcp.f32 %v421_v41 }
 0x399   :  { %v424_v10 = vpop.xlane.xlu1 %423 }
 0x39a   :  { %3117 = vrcp.f32 %v424_v10 }
 0x39b   :  { %v427_v11 = vpop.xlane.xlu0 %426 }
 0x39c   :  { %3119 = vrcp.f32 %v427_v11 }
 0x39d   :  { %v430_v12 = vpop.xlane.xlu1 %429 }
 0x39e   :  { %3121 = vrcp.f32 %v430_v12 }
 0x39f   :  { %v433_v13 = vpop.xlane.xlu0 %432 }
 0x3a0   :  { %3123 = vrcp.f32 %v433_v13  ;;  %v784_v13 = vld [vmem:[#allocation2 + $0x78] sm:$0xff] }
 0x3a1   :  { %v436_v14 = vpop.xlane.xlu1 %435 }
 0x3a2   :  { %3125 = vrcp.f32 %v436_v14 }
 0x3a3   :  { %v626_v16 = vpop.permute.xlu0 %625 }
 0x3a4   :  { %2853 = vmatprep.subr.msk.mxu0 %vm210_vm1, %v626_v16 }
 0x3a5   :  { %v3116_v17 = vpop.eup %3115  ;;  %2854 = vmatpush3.xpose.msk.msra.mxu0 %vm210_vm1, %v626_v16  ;;  %v624_v18 = vpop.permute.xlu1 %623 }
 0x3a6   :  { %2855 = vmatprep.subr.msk.mxu0 %vm210_vm1, %v624_v18  ;;  %v447_v20 = vmul.f32 %v3116_v17, %v3442_v52 }
 0x3a7   :  { %v3118_v21 = vpop.eup %3117  ;;  %v608_v24 = vpop.permute.xlu0 %607 }
 0x3a8   :  { %2832 = vmatprep.mubr.msk.f32.mxu0 %vm364_vm2, %v447_v20  ;;  %v448_v29 = vmul.f32 %v3118_v21, %v3444_v53 }
 0x3a9   :  { %v3120_v30 = vpop.eup %3119  ;;  %2856 = vmatpush3.xpose.msk.msra.mxu0 %vm210_vm1, %v624_v18  ;;  %v610_v31 = vpop.permute.xlu1 %609  ;;  %v781_v18 = vld [vmem:[#allocation2 + $0x60] sm:$0xff] }
 0x3aa   :  { %2833 = vmatmul.mubr.msk.f32.gmra.mxu0 %vm364_vm2, %v448_v29  ;;  %v449_v32 = vmul.f32 %v3120_v30, %v3448_v55  ;;  %2911 = vmatprep.subr.mxu0 %v606_v46 }
 0x3ab   :  { %v3122_v33 = vpop.eup %3121  ;;  %v612_v34 = vpop.permute.xlu0 %611 }
 0x3ac   :  { %2835 = vmatprep.mubr.msk.f32.mxu0 %vm364_vm2, %v449_v32  ;;  %v450_v35 = vmul.f32 %v3122_v33, %v3452_v57  ;;  %v778_v57 = vld [vmem:[#allocation2 + $0x48] sm:$0xff] }
 0x3ad   :  { %v3124_v36 = vpop.eup %3123  ;;  %v614_v37 = vpop.permute.xlu1 %613 }
 0x3ae   :  { %2836 = vmatmul.mubr.msk.f32.gmra.mxu0 %vm364_vm2, %v450_v35  ;;  %v451_v38 = vmul.f32 %v3124_v36, %v3456_v59  ;;  %v777_v59 = vld [vmem:[#allocation2 + $0x40] sm:$0xff] }
 0x3af   :  { %v3126_v39 = vpop.eup %3125  ;;  %v616_v40 = vpop.permute.xlu0 %615 }
 0x3b0   :  { %2838 = vmatprep.mubr.msk.f32.mxu0 %vm364_vm2, %v451_v38  ;;  %v452_v42 = vmul.f32 %v3126_v39, %v3460_v61 }
 0x3b1   :  { %v618_v43 = vpop.permute.xlu1 %617 }
 0x3b2   :  { %2839 = vmatmul.mubr.msk.f32.gmra.mxu0 %vm364_vm2, %v452_v42 }
 0x3b3   :  { %2857 = vmatprep.mubr.msk.f32.mxu0 %vm210_vm1, %v608_v24  ;;  %v620_v44 = vpop.permute.xlu0 %619  ;;  %v783_v24 = vld [vmem:[#allocation2 + $0x70] sm:$0xff] }
 0x3b5   :  { %v622_v45 = vpop.permute.xlu1 %621 }
 0x3b6   :  { %2858 = vmatmul.mubr.msk.f32.vlgmr.msra.gmra.mxu0 %vm210_vm1, %v610_v31 }
 0x3b7   :  { %2860 = vmatprep.mubr.msk.f32.mxu0 %vm210_vm1, %v612_v34  ;;  %v894_v48 = vpop.permute.xlu0 %893  ;;  %2912 = vmatpush3.msra.mxu0 %v606_v46 }
 0x3b9   :  { %v896_v47 = vpop.permute.xlu1 %895 }
 0x3ba   :  { %2861 = vmatmul.mubr.msk.f32.gmra.mxu0 %vm210_vm1, %v614_v37  ;;  %2869 = vmatprep.subr.mxu1 %v896_v47 }
 0x3bb   :  { %2863 = vmatprep.mubr.msk.f32.mxu0 %vm210_vm1, %v616_v40  ;;  %2870 = vmatpush3.msra.mxu1 %v896_v47  ;;  %v890_v32 = vpop.permute.xlu0 %889 }
 0x3bc   :  { %2871 = vmatprep.subr.mxu1 %v894_v48 }
 0x3bd   :  { %2872 = vmatpush3.msra.mxu1 %v894_v48 }
 0x3be   :  { %2864 = vmatmul.mubr.msk.f32.gmra.mxu0 %vm210_vm1, %v618_v43 }
 0x3bf   :  { %2866 = vmatprep.mubr.msk.f32.mxu0 %vm210_vm1, %v620_v44 }
 0x3c2   :  { %2867 = vmatmul.mubr.msk.f32.gmra.mxu0 %vm210_vm1, %v622_v45 }
 0x436   :  { %v2831_v49 = vpop.f32.mrf.mxu0 }
 0x438   :  { %v567_v50 = vpop.f32.mrf.mxu0 }
 0x439   :  { %2913 = vmatprep.mubr.msk.f32.mxu0 %vm210_vm1, %v567_v50 }
 0x43a   :  { %2914 = vmatmul.mubr.msk.f32.vlgmr.msra.gmra.mxu0 %vm210_vm1, %v2831_v49 }
 0x46a   :  { %v2834_v51 = vpop.f32.mrf.mxu0 }
 0x46c   :  { %v577_v52 = vpop.f32.mrf.mxu0 }
 0x46d   :  { %2916 = vmatprep.mubr.msk.f32.mxu0 %vm210_vm1, %v577_v52 }
 0x46e   :  { %v2837_v53 = vpop.f32.mrf.mxu0  ;;  %2917 = vmatmul.mubr.msk.f32.gmra.mxu0 %vm210_vm1, %v2834_v51 }
 0x470   :  { %v587_v54 = vpop.f32.mrf.mxu0 }
 0x471   :  { %2919 = vmatprep.mubr.msk.f32.mxu0 %vm210_vm1, %v587_v54 }
 0x472   :  { %v2840_v55 = vpop.f32.mrf.mxu0  ;;  %2920 = vmatmul.mubr.msk.f32.gmra.mxu0 %vm210_vm1, %v2837_v53 }
 0x474   :  { %v597_v56 = vpop.f32.mrf.mxu0 }
 0x475   :  { %2922 = vmatprep.mubr.msk.f32.mxu0 %vm210_vm1, %v597_v56 }
 0x476   :  { %v2859_v58 = vpop.f32.mrf.mxu0  ;;  %2923 = vmatmul.mubr.msk.f32.gmra.mxu0 %vm210_vm1, %v2840_v55 }
 0x477   :  { %v786_v60 = vadd.f32 %v2859_v58, %v778_v57 }
 0x478   :  { %v737_v61 = vpop.f32.mrf.mxu0 }
 0x479   :  { %v785_v63 = vadd.f32 %v777_v59, %v737_v61  ;;  %v796_v0 = vsel %vm364_vm2, %v786_v60, -inf }
 0x47a   :  { %797 = vmax.xlane.f32.xlu1 %v796_v0  ;;  %v2862_v1 = vpop.f32.mrf.mxu0 }
 0x47b   :  { %v3538_v2 = vadd.f32 %v2862_v1, %v780_v62  ;;  %v793_v3 = vsel %vm364_vm2, %v785_v63, -inf }
 0x47c   :  { %794 = vmax.xlane.f32.xlu0 %v793_v3  ;;  %v747_v4 = vpop.f32.mrf.mxu0 }
 0x47d   :  { %v787_v7 = vadd.f32 %v779_v5, %v747_v4  ;;  %v802_v8 = vsel %vm364_vm2, %v3538_v2, -inf }
 0x47e   :  { %v2865_v6 = vpop.f32.mrf.mxu0 }
 0x47f   :  { %v790_v10 = vadd.f32 %v2865_v6, %v782_v9  ;;  %v799_v11 = vsel %vm364_vm2, %v787_v7, -inf }
 0x480   :  { %803 = vmax.xlane.f32.xlu0 %v802_v8  ;;  %v757_v41 = vpop.f32.mrf.mxu0 }
 0x481   :  { %v808_v16 = vsel %vm364_vm2, %v790_v10, -inf  ;;  %v789_v20 = vadd.f32 %v781_v18, %v757_v41 }
 0x482   :  { %v2868_v12 = vpop.f32.mrf.mxu0 }
 0x483   :  { %v3544_v14 = vadd.f32 %v2868_v12, %v784_v13  ;;  %v805_v30 = vsel %vm364_vm2, %v789_v20, -inf }
 0x484   :  { %800 = vmax.xlane.f32.xlu0 %v799_v11  ;;  %v767_v21 = vpop.f32.mrf.mxu0 }
 0x485   :  { %v814_v17 = vsel %vm364_vm2, %v3544_v14, -inf  ;;  %v791_v29 = vadd.f32 %v783_v24, %v767_v21 }
 0x487   :  { %v811_v31 = vsel %vm364_vm2, %v791_v29, -inf }
 0x488   :  { %809 = vmax.xlane.f32.xlu0 %v808_v16 }
 0x48b   :  { %891 = vrot.lane.b32.xlu1 %v3348_v19, %s3252_s30 }
 0x48c   :  { %815 = vmax.xlane.f32.xlu0 %v814_v17 }
 0x4a2   :  { %885 = vrot.lane.b32.xlu0 %v3357_v25, %s3252_s30 }
 0x4af   :  { %806 = vmax.xlane.f32.xlu1 %v805_v30 }
 0x4b3   :  { %812 = vmax.xlane.f32.xlu1 %v811_v31 }
 0x4c4   :  { %887 = vrot.lane.b32.xlu1 %v3363_v27, %s3252_s30 }
 0x503   :  { %v798_v33 = vpop.xlane.xlu1 %797 }
 0x504   :  { %v818_v34 = vsub.f32 %v786_v60, %v798_v33 }
 0x505   :  { %v795_v35 = vpop.xlane.xlu0 %794 }
 0x506   :  { %v827_v36 = vmul.f32 1.442695, %v818_v34  ;;  %v817_v37 = vsub.f32 %v785_v63, %v795_v35 }
 0x507   :  { %v892_v38 = vpop.permute.xlu1 %891 }
 0x508   :  { %3127 = vpow2.f32 %v827_v36  ;;  %v825_v39 = vmul.f32 1.442695, %v817_v37  ;;  %2873 = vmatprep.subr.mxu1 %v892_v38 }
 0x509   :  { %v804_v40 = vpop.xlane.xlu0 %803  ;;  %2874 = vmatpush3.msra.mxu1 %v892_v38 }
 0x50a   :  { %3129 = vpow2.f32 %v825_v39  ;;  %2875 = vmatprep.subr.mxu1 %v890_v32  ;;  %v820_v56 = vsub.f32 %v3538_v2, %v804_v40 }
 0x50b   :  { %2876 = vmatpush3.msra.mxu1 %v890_v32 }
 0x50c   :  { %v831_v57 = vmul.f32 1.442695, %v820_v56 }
 0x50d   :  { %v801_v42 = vpop.xlane.xlu0 %800 }
 0x50e   :  { %v819_v43 = vsub.f32 %v787_v7, %v801_v42 }
 0x510   :  { %v829_v44 = vmul.f32 1.442695, %v819_v43 }
 0x511   :  { %v810_v45 = vpop.xlane.xlu0 %809 }
 0x512   :  { %3131 = vpow2.f32 %v829_v44  ;;  %v822_v46 = vsub.f32 %v790_v10, %v810_v45 }
 0x514   :  { %v835_v47 = vmul.f32 1.442695, %v822_v46 }
 0x515   :  { %v3557_v48 = vpop.eup %3127  ;;  %v816_v61 = vpop.xlane.xlu0 %815 }
 0x516   :  { %3133 = vpow2.f32 %v835_v47  ;;  %v844_v49 = vsel %vm364_vm2, %v3557_v48, 0.0  ;;  %v824_v0 = vsub.f32 %v3544_v14, %v816_v61 }
 0x517   :  { %v3561_v50 = vpop.eup %3129  ;;  %845 = vadd.xlane.f32.xlu0 %v844_v49  ;;  %3135 = vpow2.f32 %v831_v57 }
 0x518   :  { %v841_v51 = vsel %vm364_vm2, %v3561_v50, 0.0  ;;  %v839_v4 = vmul.f32 1.442695, %v824_v0 }
 0x519   :  { %842 = vadd.xlane.f32.xlu1 %v841_v51  ;;  %v886_v3 = vpop.permute.xlu0 %885 }
 0x51f   :  { %v3565_v52 = vpop.eup %3131 }
 0x520   :  { %v847_v53 = vsel %vm364_vm2, %v3565_v52, 0.0 }
 0x521   :  { %848 = vadd.xlane.f32.xlu1 %v847_v53 }
 0x523   :  { %v3569_v54 = vpop.eup %3133 }
 0x524   :  { %v856_v55 = vsel %vm364_vm2, %v3569_v54, 0.0  ;;  %v3587_v5 = vpop.eup %3135 }
 0x525   :  { %857 = vadd.xlane.f32.xlu1 %v856_v55  ;;  %v850_v6 = vsel %vm364_vm2, %v3587_v5, 0.0 }
 0x52d   :  { %883 = vrot.lane.b32.xlu0 %v3367_v28, %s3252_s30 }
 0x536   :  { %881 = vrot.lane.b32.xlu1 %v3344_v15, %s3252_s30 }
 0x538   :  { %v807_v58 = vpop.xlane.xlu1 %806 }
 0x539   :  { %v821_v59 = vsub.f32 %v789_v20, %v807_v58 }
 0x53a   :  { %1321 = vrot.lane.b32.xlu1 %v3359_v26, %s3253_s9 }
 0x53b   :  { %v833_v60 = vmul.f32 1.442695, %v821_v59 }
 0x53c   :  { %v813_v62 = vpop.xlane.xlu1 %812 }
 0x53d   :  { %v823_v63 = vsub.f32 %v791_v29, %v813_v62  ;;  %3137 = vpow2.f32 %v833_v60  ;;  %v1034_v29 = vld [vmem:[%s3999_s4 + $0x8] sm:$0xff] }
 0x53e   :  { %1319 = vrot.lane.b32.xlu1 %v3348_v19, %s3253_s9 }
 0x53f   :  { %v837_v1 = vmul.f32 1.442695, %v823_v63 }
 0x540   :  { %v888_v2 = vpop.permute.xlu1 %887 }
 0x541   :  { %2877 = vmatprep.subr.mxu1 %v888_v2  ;;  %3139 = vpow2.f32 %v837_v1 }
 0x542   :  { %1317 = vrot.lane.b32.xlu1 %v3351_v22, %s3253_s9  ;;  %2878 = vmatpush3.msra.mxu1 %v888_v2  ;;  %3141 = vpow2.f32 %v839_v4 }
 0x543   :  { %2879 = vmatprep.subr.mxu1 %v886_v3 }
 0x544   :  { %2880 = vmatpush3.msra.mxu1 %v886_v3 }
 0x546   :  { %1315 = vrot.lane.b32.xlu1 %v3363_v27, %s3253_s9 }
 0x54a   :  { %1313 = vrot.lane.b32.xlu1 %v3357_v25, %s3253_s9  ;;  %v3593_v7 = vpop.eup %3137 }
 0x54b   :  { %v853_v8 = vsel %vm364_vm2, %v3593_v7, 0.0 }
 0x54c   :  { %851 = vadd.xlane.f32.xlu0 %v850_v6 }
 0x54e   :  { %1309 = vrot.lane.b32.xlu1 %v3344_v15, %s3253_s9  ;;  %v3599_v9 = vpop.eup %3139 }
 0x54f   :  { %v859_v41 = vsel %vm364_vm2, %v3599_v9, 0.0  ;;  %v3604_v10 = vpop.eup %3141 }
 0x550   :  { %854 = vadd.xlane.f32.xlu0 %v853_v8  ;;  %v862_v11 = vsel %vm364_vm2, %v3604_v10, 0.0 }
 0x552   :  { %1295 = vrot.lane.b32.xlu1 %v3367_v28, %s3254_s10 }
 0x554   :  { %860 = vadd.xlane.f32.xlu0 %v859_v41 }
 0x556   :  { %1299 = vrot.lane.b32.xlu1 %v3363_v27, %s3254_s10 }
 0x558   :  { %863 = vadd.xlane.f32.xlu0 %v862_v11 }
 0x55a   :  { %1303 = vrot.lane.b32.xlu1 %v3348_v19, %s3254_s10 }
 0x55e   :  { %1307 = vrot.lane.b32.xlu1 %v3353_v23, %s3254_s10 }
 0x562   :  { %1886 = vrot.lane.b32.xlu1 %v3359_v26, %s3255_s11 }
 0x566   :  { %1882 = vrot.lane.b32.xlu1 %v3351_v22, %s3255_s11 }
 0x56a   :  { %1878 = vrot.lane.b32.xlu1 %v3357_v25, %s3255_s11 }
 0x56e   :  { %1874 = vrot.lane.b32.xlu1 %v3344_v15, %s3255_s11  ;;  %1323 = vrot.lane.b32.xlu0 %v3353_v23, %s3253_s9 }
 0x572   :  { %1860 = vrot.lane.b32.xlu1 %v3367_v28, %s3256_s3  ;;  %1311 = vrot.lane.b32.xlu0 %v3367_v28, %s3253_s9 }
 0x576   :  { %1864 = vrot.lane.b32.xlu1 %v3363_v27, %s3256_s3  ;;  %1293 = vrot.lane.b32.xlu0 %v3344_v15, %s3254_s10 }
 0x57a   :  { %1868 = vrot.lane.b32.xlu1 %v3348_v19, %s3256_s3  ;;  %1297 = vrot.lane.b32.xlu0 %v3357_v25, %s3254_s10 }
 0x57e   :  { %1872 = vrot.lane.b32.xlu1 %v3353_v23, %s3256_s3  ;;  %1301 = vrot.lane.b32.xlu0 %v3351_v22, %s3254_s10 }
 0x582   :  { %1305 = vrot.lane.b32.xlu0 %v3359_v26, %s3254_s10 }
 0x586   :  { %1888 = vrot.lane.b32.xlu0 %v3353_v23, %s3255_s11 }
 0x58a   :  { %1884 = vrot.lane.b32.xlu0 %v3348_v19, %s3255_s11 }
 0x58e   :  { %1880 = vrot.lane.b32.xlu0 %v3363_v27, %s3255_s11 }
 0x592   :  { %1876 = vrot.lane.b32.xlu0 %v3367_v28, %s3255_s11 }
 0x596   :  { %1858 = vrot.lane.b32.xlu0 %v3344_v15, %s3256_s3 }
 0x59a   :  { %1862 = vrot.lane.b32.xlu0 %v3357_v25, %s3256_s3 }
 0x59e   :  { %1866 = vrot.lane.b32.xlu0 %v3351_v22, %s3256_s3 }
 0x5a0   :  { %v846_v12 = vpop.xlane.xlu0 %845 }
 0x5a1   :  { %3143 = vrcp.f32 %v846_v12 }
 0x5a2   :  { %1870 = vrot.lane.b32.xlu0 %v3359_v26, %s3256_s3  ;;  %v843_v13 = vpop.xlane.xlu1 %842 }
 0x5a3   :  { %3145 = vrcp.f32 %v843_v13 }
 0x5a4   :  { %v884_v14 = vpop.permute.xlu0 %883 }
 0x5a5   :  { %2881 = vmatprep.subr.mxu1 %v884_v14 }
 0x5a6   :  { %2882 = vmatpush3.msra.mxu1 %v884_v14 }
 0x5aa   :  { %v849_v16 = vpop.xlane.xlu1 %848 }
 0x5ab   :  { %3147 = vrcp.f32 %v849_v16 }
 0x5ae   :  { %v858_v17 = vpop.xlane.xlu1 %857  ;;  %v3144_v18 = vpop.eup %3143 }
 0x5af   :  { %v874_v30 = vmul.f32 %v3144_v18, %v3557_v48 }
 0x5b0   :  { %v3146_v20 = vpop.eup %3145 }
 0x5b1   :  { %v873_v21 = vmul.f32 %v3146_v20, %v3561_v50 }
 0x5b2   :  { %v882_v24 = vpop.permute.xlu1 %881 }
 0x5b3   :  { %2883 = vmatprep.subr.mxu1 %v882_v24  ;;  %2885 = vmatprep.mubr.msk.f32.mxu1 %vm364_vm2, %v873_v21 }
 0x5b4   :  { %2884 = vmatpush3.msra.mxu1 %v882_v24 }
 0x5b5   :  { %2886 = vmatmul.mubr.msk.f32.vlgmr.msra.gmra.mxu1 %vm364_vm2, %v874_v30  ;;  %2897 = vmatprep.subr.mxu1 %v1034_v29 }
 0x5b6   :  { %2898 = vmatpush3.msra.mxu1 %v1034_v29  ;;  %v1322_v49 = vpop.permute.xlu1 %1321 }
 0x5b8   :  { %v3148_v31 = vpop.eup %3147 }
 0x5b9   :  { %v875_v32 = vmul.f32 %v3148_v31, %v3565_v52 }
 0x5ba   :  { %v1320_v52 = vpop.permute.xlu1 %1319 }
 0x5bb   :  { %2888 = vmatprep.mubr.msk.f32.mxu1 %vm364_vm2, %v875_v32 }
 0x5d5   :  { %v852_v33 = vpop.xlane.xlu0 %851 }
 0x5d6   :  { %3149 = vrcp.f32 %v852_v33 }
 0x5d7   :  { %3151 = vrcp.f32 %v858_v17 }
 0x5d9   :  { %v855_v34 = vpop.xlane.xlu0 %854 }
 0x5da   :  { %3153 = vrcp.f32 %v855_v34 }
 0x5dd   :  { %v861_v35 = vpop.xlane.xlu0 %860 }
 0x5de   :  { %3155 = vrcp.f32 %v861_v35 }
 0x5e1   :  { %v864_v36 = vpop.xlane.xlu0 %863 }
 0x5e2   :  { %3157 = vrcp.f32 %v864_v36 }
 0x5e3   :  { %v3150_v37 = vpop.eup %3149 }
 0x5e4   :  { %v876_v38 = vmul.f32 %v3150_v37, %v3587_v5  ;;  %v3152_v40 = vpop.eup %3151 }
 0x5e5   :  { %v1324_v39 = vpop.permute.xlu0 %1323  ;;  %v878_v44 = vmul.f32 %v3152_v40, %v3569_v54  ;;  %v1318_v54 = vpop.permute.xlu1 %1317 }
 0x5e6   :  { %2889 = vmatmul.mubr.msk.f32.gmra.mxu1 %vm364_vm2, %v876_v38  ;;  %2925 = vmatprep.subr.msk.mxu1 %vm210_vm1, %v1324_v39 }
 0x5e7   :  { %v3154_v42 = vpop.eup %3153 }
 0x5e8   :  { %v877_v43 = vmul.f32 %v3154_v42, %v3593_v7  ;;  %v1463_v42 = vld [vmem:[#allocation2 + $0x80] sm:$0xff] }
 0x5e9   :  { %v1312_v53 = vpop.permute.xlu0 %1311  ;;  %v1316_v56 = vpop.permute.xlu1 %1315 }
 0x5ea   :  { %2891 = vmatprep.mubr.msk.f32.mxu1 %vm364_vm2, %v877_v43 }
 0x5eb   :  { %v3156_v45 = vpop.eup %3155  ;;  %2892 = vmatmul.mubr.msk.f32.gmra.mxu1 %vm364_vm2, %v878_v44 }
 0x5ec   :  { %v879_v46 = vmul.f32 %v3156_v45, %v3599_v9 }
 0x5ed   :  { %v1294_v55 = vpop.permute.xlu0 %1293  ;;  %v1314_v58 = vpop.permute.xlu1 %1313 }
 0x5ee   :  { %2894 = vmatprep.mubr.msk.f32.mxu1 %vm364_vm2, %v879_v46 }
 0x5ef   :  { %v3158_v47 = vpop.eup %3157 }
 0x5f0   :  { %v880_v48 = vmul.f32 %v3158_v47, %v3604_v10 }
 0x5f1   :  { %v1298_v57 = vpop.permute.xlu0 %1297  ;;  %v1310_v61 = vpop.permute.xlu1 %1309 }
 0x5f2   :  { %2895 = vmatmul.mubr.msk.f32.gmra.mxu1 %vm364_vm2, %v880_v48  ;;  %v1465_v48 = vld [vmem:[#allocation2 + $0x90] sm:$0xff] }
 0x5f5   :  { %v1302_v59 = vpop.permute.xlu0 %1301  ;;  %v1296_v63 = vpop.permute.xlu1 %1295 }
 0x5f9   :  { %v1306_v60 = vpop.permute.xlu0 %1305  ;;  %v1300_v2 = vpop.permute.xlu1 %1299 }
 0x5fd   :  { %v1889_v62 = vpop.permute.xlu0 %1888  ;;  %v1304_v5 = vpop.permute.xlu1 %1303 }
 0x601   :  { %v1885_v7 = vpop.permute.xlu0 %1884  ;;  %v1308_v9 = vpop.permute.xlu1 %1307 }
 0x605   :  { %v1881_v41 = vpop.permute.xlu0 %1880  ;;  %v1887_v10 = vpop.permute.xlu1 %1886 }
 0x609   :  { %v1877_v11 = vpop.permute.xlu0 %1876  ;;  %v1883_v12 = vpop.permute.xlu1 %1882 }
 0x60d   :  { %v1859_v13 = vpop.permute.xlu0 %1858  ;;  %v1879_v14 = vpop.permute.xlu1 %1878 }
 0x611   :  { %v1875_v16 = vpop.permute.xlu1 %1874  ;;  %v1863_v18 = vpop.permute.xlu0 %1862 }
 0x615   :  { %v1861_v17 = vpop.permute.xlu1 %1860  ;;  %v1867_v21 = vpop.permute.xlu0 %1866 }
 0x619   :  { %v1865_v20 = vpop.permute.xlu1 %1864  ;;  %v1871_v29 = vpop.permute.xlu0 %1870 }
 0x61d   :  { %v1869_v24 = vpop.permute.xlu1 %1868 }
 0x621   :  { %v1873_v30 = vpop.permute.xlu1 %1872 }
 0x675   :  { %v2887_v50 = vpop.f32.mrf.mxu1 }
 0x677   :  { %v995_v51 = vpop.f32.mrf.mxu1 }
 0x678   :  { %2899 = vmatprep.mubr.msk.f32.mxu1 %vm210_vm1, %v995_v51 }
 0x679   :  { %2900 = vmatmul.mubr.msk.f32.vlgmr.msra.gmra.mxu1 %vm210_vm1, %v2887_v50  ;;  %v1466_v50 = vld [vmem:[#allocation2 + $0x98] sm:$0xff] }
 0x67a   :  { %2926 = vmatpush3.xpose.msk.msra.mxu1 %vm210_vm1, %v1324_v39  ;;  %v1464_v39 = vld [vmem:[#allocation2 + $0x88] sm:$0xff] }
 0x67b   :  { %2927 = vmatprep.subr.msk.mxu1 %vm210_vm1, %v1322_v49 }
 0x67e   :  { %2928 = vmatpush3.xpose.msk.msra.mxu1 %vm210_vm1, %v1322_v49 }
 0x67f   :  { %2929 = vmatprep.subr.msk.mxu1 %vm210_vm1, %v1320_v52 }
 0x682   :  { %2930 = vmatpush3.xpose.msk.msra.mxu1 %vm210_vm1, %v1320_v52 }
 0x683   :  { %2931 = vmatprep.subr.msk.mxu1 %vm210_vm1, %v1318_v54 }
 0x686   :  { %2932 = vmatpush3.xpose.msk.msra.mxu1 %vm210_vm1, %v1318_v54  ;;  %v1467_v54 = vld [vmem:[#allocation2 + $0xa0] sm:$0xff] }
 0x687   :  { %2933 = vmatprep.subr.msk.mxu1 %vm210_vm1, %v1316_v56 }
 0x68a   :  { %2934 = vmatpush3.xpose.msk.msra.mxu1 %vm210_vm1, %v1316_v56 }
 0x68b   :  { %2935 = vmatprep.subr.msk.mxu1 %vm210_vm1, %v1314_v58 }
 0x68e   :  { %2936 = vmatpush3.xpose.msk.msra.mxu1 %vm210_vm1, %v1314_v58 }
 0x68f   :  { %2937 = vmatprep.subr.msk.mxu1 %vm210_vm1, %v1312_v53 }
 0x692   :  { %2938 = vmatpush3.xpose.msk.msra.mxu1 %vm210_vm1, %v1312_v53 }
 0x693   :  { %2939 = vmatprep.subr.msk.mxu1 %vm210_vm1, %v1310_v61 }
 0x696   :  { %2940 = vmatpush3.xpose.msk.msra.mxu1 %vm210_vm1, %v1310_v61 }
 0x697   :  { %2995 = vmatprep.subr.msk.mxu1 %vm210_vm1, %v1889_v62 }
 0x6a6   :  { %v2890_v0 = vpop.f32.mrf.mxu1 }
 0x6a8   :  { %v1005_v1 = vpop.f32.mrf.mxu1 }
 0x6a9   :  { %2902 = vmatprep.mubr.msk.f32.mxu1 %vm210_vm1, %v1005_v1 }
 0x6aa   :  { %2903 = vmatmul.mubr.msk.f32.gmra.mxu1 %vm210_vm1, %v2890_v0  ;;  %v1470_v0 = vld [vmem:[#allocation2 + $0xb8] sm:$0xff] }
 0x6ab   :  { %v2893_v3 = vpop.f32.mrf.mxu1 }
 0x6ad   :  { %v1015_v4 = vpop.f32.mrf.mxu1 }
 0x6ae   :  { %2905 = vmatprep.mubr.msk.f32.mxu1 %vm210_vm1, %v1015_v4 }
 0x6af   :  { %2906 = vmatmul.mubr.msk.f32.gmra.mxu1 %vm210_vm1, %v2893_v3 }
 0x6b2   :  { %v2896_v6 = vpop.f32.mrf.mxu1 }
 0x6b4   :  { %v1025_v8 = vpop.f32.mrf.mxu1 }
 0x6b5   :  { %2908 = vmatprep.mubr.msk.f32.mxu1 %vm210_vm1, %v1025_v8 }
 0x6b6   :  { %2909 = vmatmul.mubr.msk.f32.gmra.mxu1 %vm210_vm1, %v2896_v6 }
 0x6b7   :  { %2941 = vmatprep.mubr.msk.f32.mxu1 %vm210_vm1, %v1294_v55 }
 0x6ba   :  { %2942 = vmatmul.mubr.msk.f32.vlgmr.msra.gmra.mxu1 %vm210_vm1, %v1296_v63 }
 0x6bb   :  { %2996 = vmatpush3.xpose.msk.msra.mxu1 %vm210_vm1, %v1889_v62  ;;  %2944 = vmatprep.mubr.msk.f32.mxu1 %vm210_vm1, %v1298_v57  ;;  %v1468_v57 = vld [vmem:[#allocation2 + $0xa8] sm:$0xff] }
 0x6bc   :  { %2997 = vmatprep.subr.msk.mxu1 %vm210_vm1, %v1887_v10 }
 0x6be   :  { %2945 = vmatmul.mubr.msk.f32.gmra.mxu1 %vm210_vm1, %v1300_v2 }
 0x6bf   :  { %2998 = vmatpush3.xpose.msk.msra.mxu1 %vm210_vm1, %v1887_v10  ;;  %2947 = vmatprep.mubr.msk.f32.mxu1 %vm210_vm1, %v1302_v59 }
 0x6c0   :  { %2999 = vmatprep.subr.msk.mxu1 %vm210_vm1, %v1885_v7 }
 0x6c2   :  { %2948 = vmatmul.mubr.msk.f32.gmra.mxu1 %vm210_vm1, %v1304_v5  ;;  %v1469_v5 = vld [vmem:[#allocation2 + $0xb0] sm:$0xff] }
 0x6c3   :  { %3000 = vmatpush3.xpose.msk.msra.mxu1 %vm210_vm1, %v1885_v7  ;;  %2950 = vmatprep.mubr.msk.f32.mxu1 %vm210_vm1, %v1306_v60 }
 0x6c4   :  { %3001 = vmatprep.subr.msk.mxu1 %vm210_vm1, %v1883_v12 }
 0x6c6   :  { %2951 = vmatmul.mubr.msk.f32.gmra.mxu1 %vm210_vm1, %v1308_v9 }
 0x6c7   :  { %3002 = vmatpush3.xpose.msk.msra.mxu1 %vm210_vm1, %v1883_v12  ;;  %3011 = vmatprep.mubr.msk.f32.mxu1 %vm210_vm1, %v1859_v13 }
 0x6c8   :  { %3003 = vmatprep.subr.msk.mxu1 %vm210_vm1, %v1881_v41 }
 0x6cb   :  { %3004 = vmatpush3.xpose.msk.msra.mxu1 %vm210_vm1, %v1881_v41 }
 0x6cc   :  { %3005 = vmatprep.subr.msk.mxu1 %vm210_vm1, %v1879_v14 }
 0x6cf   :  { %3006 = vmatpush3.xpose.msk.msra.mxu1 %vm210_vm1, %v1879_v14 }
 0x6d0   :  { %3007 = vmatprep.subr.msk.mxu1 %vm210_vm1, %v1877_v11 }
 0x6d3   :  { %3008 = vmatpush3.xpose.msk.msra.mxu1 %vm210_vm1, %v1877_v11 }
 0x6d4   :  { %3009 = vmatprep.subr.msk.mxu1 %vm210_vm1, %v1875_v16 }
 0x6d7   :  { %3010 = vmatpush3.xpose.msk.msra.mxu1 %vm210_vm1, %v1875_v16 }
 0x6da   :  { %3012 = vmatmul.mubr.msk.f32.vlgmr.msra.gmra.mxu1 %vm210_vm1, %v1861_v17 }
 0x6db   :  { %3014 = vmatprep.mubr.msk.f32.mxu1 %vm210_vm1, %v1863_v18 }
 0x6de   :  { %3015 = vmatmul.mubr.msk.f32.gmra.mxu1 %vm210_vm1, %v1865_v20 }
 0x6df   :  { %3017 = vmatprep.mubr.msk.f32.mxu1 %vm210_vm1, %v1867_v21 }
 0x6e2   :  { %3018 = vmatmul.mubr.msk.f32.gmra.mxu1 %vm210_vm1, %v1869_v24 }
 0x6e3   :  { %3020 = vmatprep.mubr.msk.f32.mxu1 %vm210_vm1, %v1871_v29 }
 0x6e6   :  { %3021 = vmatmul.mubr.msk.f32.gmra.mxu1 %vm210_vm1, %v1873_v30 }
 0x739   :  { %v3710_v31 = vpop.f32.mrf.mxu1 }
 0x73b   :  { %v3712_v32 = vpop.f32.mrf.mxu1 }
 0x76a   :  { %v3714_v33 = vpop.f32.mrf.mxu1 }
 0x76c   :  { %v3716_v34 = vpop.f32.mrf.mxu1 }
 0x76f   :  { %v3718_v35 = vpop.f32.mrf.mxu1 }
 0x771   :  { %v3720_v36 = vpop.f32.mrf.mxu1 }
 0x776   :  { %v3722_v37 = vpop.f32.mrf.mxu1 }
 0x778   :  { %v3724_v38 = vpop.f32.mrf.mxu1 }
 0x77a   :  { %v2943_v40 = vpop.f32.mrf.mxu1 }
 0x77b   :  { %v1472_v43 = vadd.f32 %v2943_v40, %v1464_v39 }
 0x77c   :  { %v1423_v44 = vpop.f32.mrf.mxu1 }
 0x77d   :  { %v1471_v45 = vadd.f32 %v1463_v42, %v1423_v44  ;;  %v1482_v46 = vsel %vm364_vm2, %v1472_v43, -inf }
 0x77e   :  { %1483 = vmax.xlane.f32.xlu1 %v1482_v46  ;;  %v2946_v47 = vpop.f32.mrf.mxu1 }
 0x77f   :  { %v1479_v49 = vsel %vm364_vm2, %v1471_v45, -inf  ;;  %v1474_v55 = vadd.f32 %v2946_v47, %v1466_v50 }
 0x780   :  { %1480 = vmax.xlane.f32.xlu0 %v1479_v49  ;;  %v1433_v51 = vpop.f32.mrf.mxu1 }
 0x781   :  { %v1473_v52 = vadd.f32 %v1465_v48, %v1433_v51  ;;  %v1488_v61 = vsel %vm364_vm2, %v1474_v55, -inf }
 0x782   :  { %v2949_v53 = vpop.f32.mrf.mxu1 }
 0x783   :  { %v1485_v56 = vsel %vm364_vm2, %v1473_v52, -inf  ;;  %v1476_v60 = vadd.f32 %v2949_v53, %v1468_v57 }
 0x784   :  { %1486 = vmax.xlane.f32.xlu0 %v1485_v56  ;;  %v1443_v58 = vpop.f32.mrf.mxu1 }
 0x785   :  { %v1475_v59 = vadd.f32 %v1467_v54, %v1443_v58  ;;  %v1494_v2 = vsel %vm364_vm2, %v1476_v60, -inf }
 0x786   :  { %v2952_v63 = vpop.f32.mrf.mxu1 }
 0x787   :  { %v1491_v62 = vsel %vm364_vm2, %v1475_v59, -inf  ;;  %v1478_v1 = vadd.f32 %v2952_v63, %v1470_v0 }
 0x788   :  { %1489 = vmax.xlane.f32.xlu0 %v1488_v61  ;;  %1492 = vmax.xlane.f32.xlu1 %v1491_v62  ;;  %v1453_v4 = vpop.f32.mrf.mxu1 }
 0x789   :  { %v1500_v3 = vsel %vm364_vm2, %v1478_v1, -inf  ;;  %v3741_v6 = vadd.f32 %v1469_v5, %v1453_v4 }
 0x78b   :  { %v1497_v7 = vsel %vm364_vm2, %v3741_v6, -inf }
 0x78c   :  { %1495 = vmax.xlane.f32.xlu0 %v1494_v2 }
 0x790   :  { %1501 = vmax.xlane.f32.xlu0 %v1500_v3 }
 0x799   :  { %1581 = vrot.lane.b32.xlu1 %v3353_v23, %s3257_s14 }
 0x79a   :  { %v3013_v3 = vpop.f32.mrf.mxu1 }
 0x79c   :  { %v1988_v5 = vpop.f32.mrf.mxu1 }
 0x79d   :  { %1577 = vrot.lane.b32.xlu1 %v3348_v19, %s3257_s14 }
 0x7a6   :  { %1579 = vrot.lane.b32.xlu0 %v3359_v26, %s3257_s14 }
 0x7aa   :  { %1573 = vrot.lane.b32.xlu0 %v3363_v27, %s3257_s14 }
 0x7c1   :  { %1498 = vmax.xlane.f32.xlu1 %v1497_v7  ;;  %v2028_v7 = vld [vmem:[#allocation2 + $0xc0] sm:$0xff] }
 0x7d2   :  { %1575 = vrot.lane.b32.xlu1 %v3351_v22, %s3257_s14 }
 0x7d6   :  { %1571 = vrot.lane.b32.xlu1 %v3357_v25, %s3257_s14 }
 0x807   :  { %v1484_v8 = vpop.xlane.xlu1 %1483 }
 0x808   :  { %v1504_v9 = vsub.f32 %v1472_v43, %v1484_v8  ;;  %v3016_v8 = vpop.f32.mrf.mxu1 }
 0x809   :  { %v1481_v41 = vpop.xlane.xlu0 %1480 }
 0x80a   :  { %v1513_v10 = vmul.f32 1.442695, %v1504_v9  ;;  %v1503_v11 = vsub.f32 %v1471_v45, %v1481_v41  ;;  %v3782_v41 = vadd.f32 %v2028_v7, %v1988_v5 }
 0x80c   :  { %3159 = vpow2.f32 %v1513_v10  ;;  %v1511_v12 = vmul.f32 1.442695, %v1503_v11  ;;  %v1998_v10 = vpop.f32.mrf.mxu1  ;;  %v2030_v11 = vld [vmem:[#allocation2 + $0xd0] sm:$0xff] }
 0x80d   :  { %v1487_v13 = vpop.xlane.xlu0 %1486 }
 0x80e   :  { %3161 = vpow2.f32 %v1511_v12  ;;  %v1505_v14 = vsub.f32 %v1473_v52, %v1487_v13  ;;  %v3786_v12 = vadd.f32 %v2030_v11, %v1998_v10  ;;  %v2044_v13 = vsel %vm364_vm2, %v3782_v41, -inf }
 0x810   :  { %v1515_v16 = vmul.f32 1.442695, %v1505_v14  ;;  %v2031_v14 = vld [vmem:[#allocation2 + $0xd8] sm:$0xff] }
 0x811   :  { %v1490_v17 = vpop.xlane.xlu0 %1489  ;;  %v1493_v18 = vpop.xlane.xlu1 %1492 }
 0x812   :  { %3163 = vpow2.f32 %v1515_v16  ;;  %v1506_v20 = vsub.f32 %v1474_v55, %v1490_v17  ;;  %v1507_v21 = vsub.f32 %v1475_v59, %v1493_v18  ;;  %v3019_v16 = vpop.f32.mrf.mxu1  ;;  %v3790_v17 = vadd.f32 %v3016_v8, %v2031_v14 }
 0x813   :  { %v2050_v18 = vsel %vm364_vm2, %v3786_v12, -inf }
 0x814   :  { %v1517_v24 = vmul.f32 1.442695, %v1506_v20  ;;  %v1519_v29 = vmul.f32 1.442695, %v1507_v21  ;;  %v2033_v20 = vld [vmem:[#allocation2 + $0xe8] sm:$0xff]  ;;  %v2008_v21 = vpop.f32.mrf.mxu1 }
 0x815   :  { %v1496_v30 = vpop.xlane.xlu0 %1495  ;;  %v1582_v39 = vpop.permute.xlu1 %1581 }
 0x816   :  { %3165 = vpow2.f32 %v1517_v24  ;;  %v1508_v40 = vsub.f32 %v1476_v60, %v1496_v30  ;;  %2953 = vmatprep.subr.mxu0 %v1582_v39  ;;  %v3794_v24 = vadd.f32 %v3019_v16, %v2033_v20  ;;  %v3022_v30 = vpop.f32.mrf.mxu1 }
 0x817   :  { %3167 = vpow2.f32 %v1519_v29  ;;  %2954 = vmatpush3.msra.mxu0 %v1582_v39  ;;  %v2053_v29 = vsel %vm364_vm2, %v3790_v17, -inf  ;;  %v2035_v39 = vld [vmem:[#allocation2 + $0xf8] sm:$0xff] }
 0x818   :  { %v1521_v42 = vmul.f32 1.442695, %v1508_v40  ;;  %v3798_v40 = vadd.f32 %v3022_v30, %v2035_v39 }
 0x819   :  { %v3749_v43 = vpop.eup %3159  ;;  %v1502_v44 = vpop.xlane.xlu0 %1501 }
 0x81a   :  { %3169 = vpow2.f32 %v1521_v42  ;;  %v1510_v45 = vsub.f32 %v1478_v1, %v1502_v44  ;;  %v1530_v46 = vsel %vm364_vm2, %v3749_v43, 0.0  ;;  %v1578_v52 = vpop.permute.xlu1 %1577  ;;  %v2059_v42 = vsel %vm364_vm2, %v3794_v24, -inf }
 0x81b   :  { %v3753_v47 = vpop.eup %3161  ;;  %1531 = vadd.xlane.f32.xlu0 %v1530_v46  ;;  %v2065_v44 = vsel %vm364_vm2, %v3798_v40, -inf }
 0x81c   :  { %v1525_v48 = vmul.f32 1.442695, %v1510_v45  ;;  %v1527_v49 = vsel %vm364_vm2, %v3753_v47, 0.0  ;;  %v2029_v45 = vld [vmem:[#allocation2 + $0xc8] sm:$0xff] }
 0x81d   :  { %v1580_v50 = vpop.permute.xlu0 %1579  ;;  %1528 = vadd.xlane.f32.xlu1 %v1527_v49  ;;  %v3810_v46 = vadd.f32 %v3013_v3, %v2029_v45 }
 0x81e   :  { %3171 = vpow2.f32 %v1525_v48  ;;  %2955 = vmatprep.subr.mxu0 %v1580_v50  ;;  %v2032_v48 = vld [vmem:[#allocation2 + $0xe0] sm:$0xff] }
 0x81f   :  { %v3757_v51 = vpop.eup %3163  ;;  %2956 = vmatpush3.msra.mxu0 %v1580_v50  ;;  %v3812_v49 = vadd.f32 %v2032_v48, %v2008_v21  ;;  %v2047_v50 = vsel %vm364_vm2, %v3810_v46, -inf }
 0x820   :  { %2957 = vmatprep.subr.mxu0 %v1578_v52  ;;  %v1533_v53 = vsel %vm364_vm2, %v3757_v51, 0.0 }
 0x821   :  { %1534 = vadd.xlane.f32.xlu1 %v1533_v53  ;;  %2958 = vmatpush3.msra.mxu0 %v1578_v52  ;;  %v1574_v2 = vpop.permute.xlu0 %1573  ;;  %v2018_v52 = vpop.f32.mrf.mxu1  ;;  %v2034_v53 = vld [vmem:[#allocation2 + $0xf0] sm:$0xff] }
 0x823   :  { %v3761_v54 = vpop.eup %3165 }
 0x824   :  { %v3763_v55 = vpop.eup %3167  ;;  %v1536_v56 = vsel %vm364_vm2, %v3761_v54, 0.0 }
 0x825   :  { %1537 = vadd.xlane.f32.xlu0 %v1536_v56  ;;  %v1539_v57 = vsel %vm364_vm2, %v3763_v55, 0.0  ;;  %v3816_v56 = vadd.f32 %v2034_v53, %v2018_v52 }
 0x826   :  { %1540 = vadd.xlane.f32.xlu1 %v1539_v57 }
 0x827   :  { %v3769_v58 = vpop.eup %3169 }
 0x828   :  { %v1542_v59 = vsel %vm364_vm2, %v3769_v58, 0.0 }
 0x829   :  { %1543 = vadd.xlane.f32.xlu0 %v1542_v59 }
 0x82b   :  { %v3773_v60 = vpop.eup %3171 }
 0x82c   :  { %v1548_v61 = vsel %vm364_vm2, %v3773_v60, 0.0 }
 0x82d   :  { %1549 = vadd.xlane.f32.xlu0 %v1548_v61 }
 0x843   :  { %1569 = vrot.lane.b32.xlu0 %v3367_v28, %s3257_s14 }
 0x84a   :  { %v1499_v62 = vpop.xlane.xlu1 %1498 }
 0x84b   :  { %v1509_v63 = vsub.f32 %v3741_v6, %v1499_v62 }
 0x84d   :  { %v1523_v0 = vmul.f32 1.442695, %v1509_v63 }
 0x84e   :  { %v1576_v1 = vpop.permute.xlu1 %1575 }
 0x84f   :  { %3173 = vpow2.f32 %v1523_v0  ;;  %2959 = vmatprep.subr.mxu0 %v1576_v1 }
 0x850   :  { %2960 = vmatpush3.msra.mxu0 %v1576_v1 }
 0x851   :  { %2961 = vmatprep.subr.mxu0 %v1574_v2 }
 0x852   :  { %2962 = vmatpush3.msra.mxu0 %v1574_v2  ;;  %v1572_v4 = vpop.permute.xlu1 %1571 }
 0x853   :  { %2963 = vmatprep.subr.mxu0 %v1572_v4 }
 0x854   :  { %2964 = vmatpush3.msra.mxu0 %v1572_v4 }
 0x85c   :  { %v3780_v9 = vpop.eup %3173 }
 0x85d   :  { %v1545_v6 = vsel %vm364_vm2, %v3780_v9, 0.0 }
 0x85e   :  { %1546 = vadd.xlane.f32.xlu1 %v1545_v6 }
 0x862   :  { %2045 = vmax.xlane.f32.xlu0 %v2044_v13 }
 0x866   :  { %2051 = vmax.xlane.f32.xlu0 %v2050_v18 }
 0x86a   :  { %2054 = vmax.xlane.f32.xlu0 %v2053_v29 }
 0x86e   :  { %2060 = vmax.xlane.f32.xlu0 %v2059_v42 }
 0x86f   :  { %1567 = vrot.lane.b32.xlu1 %v3344_v15, %s3257_s14 }
 0x872   :  { %2066 = vmax.xlane.f32.xlu0 %v2065_v44 }
 0x888   :  { %2144 = vrot.lane.b32.xlu0 %v3359_v26, %s3258_s15  ;;  %v2056_v26 = vsel %vm364_vm2, %v3812_v49, -inf }
 0x88c   :  { %2138 = vrot.lane.b32.xlu0 %v3363_v27, %s3258_s15  ;;  %v2062_v27 = vsel %vm364_vm2, %v3816_v56, -inf }
 0x893   :  { %2048 = vmax.xlane.f32.xlu1 %v2047_v50 }
 0x897   :  { %2057 = vmax.xlane.f32.xlu1 %v2056_v26 }
 0x89b   :  { %2063 = vmax.xlane.f32.xlu1 %v2062_v27 }
 0x8a4   :  { %v1532_v59 = vpop.xlane.xlu0 %1531 }
 0x8a6   :  { %v1529_v57 = vpop.xlane.xlu1 %1528 }
 0x8a7   :  { %3175 = vrcp.f32 %v1529_v57 }
 0x8a8   :  { %3177 = vrcp.f32 %v1532_v59 }
 0x8ac   :  { %2146 = vrot.lane.b32.xlu1 %v3353_v23, %s3258_s15  ;;  %v1535_v23 = vpop.xlane.xlu1 %1534 }
 0x8ad   :  { %3179 = vrcp.f32 %v1535_v23 }
 0x8ae   :  { %v1538_v61 = vpop.xlane.xlu0 %1537 }
 0x8af   :  { %3181 = vrcp.f32 %v1538_v61 }
 0x8b0   :  { %2142 = vrot.lane.b32.xlu1 %v3348_v19, %s3258_s15  ;;  %v1541_v19 = vpop.xlane.xlu1 %1540 }
 0x8b1   :  { %3183 = vrcp.f32 %v1541_v19 }
 0x8b2   :  { %v1544_v62 = vpop.xlane.xlu0 %1543 }
 0x8b3   :  { %3185 = vrcp.f32 %v1544_v62 }
 0x8b4   :  { %v3176_v63 = vpop.eup %3175  ;;  %2140 = vrot.lane.b32.xlu1 %v3351_v22, %s3258_s15 }
 0x8b5   :  { %v1559_v0 = vmul.f32 %v3176_v63, %v3753_v47  ;;  %v3178_v47 = vpop.eup %3177 }
 0x8b6   :  { %v1550_v1 = vpop.xlane.xlu0 %1549  ;;  %v1560_v7 = vmul.f32 %v3178_v47, %v3749_v43 }
 0x8b7   :  { %2969 = vmatprep.mubr.msk.f32.mxu0 %vm364_vm2, %v1559_v0  ;;  %3187 = vrcp.f32 %v1550_v1 }
 0x8b8   :  { %2136 = vrot.lane.b32.xlu1 %v3357_v25, %s3258_s15  ;;  %v1720_v25 = vld [vmem:[%s3999_s4 + $0x10] sm:$0xff] }
 0x8ba   :  { %v1570_v2 = vpop.permute.xlu0 %1569  ;;  %v3180_v3 = vpop.eup %3179 }
 0x8bb   :  { %2965 = vmatprep.subr.mxu0 %v1570_v2  ;;  %v1561_v10 = vmul.f32 %v3180_v3, %v3757_v51 }
 0x8bc   :  { %2966 = vmatpush3.msra.mxu0 %v1570_v2  ;;  %v3182_v6 = vpop.eup %3181 }
 0x8bd   :  { %v1562_v43 = vmul.f32 %v3182_v6, %v3761_v54 }
 0x8be   :  { %v3184_v11 = vpop.eup %3183 }
 0x8bf   :  { %v1563_v18 = vmul.f32 %v3184_v11, %v3763_v55 }
 0x8e7   :  { %v1547_v22 = vpop.xlane.xlu1 %1546 }
 0x8e8   :  { %3189 = vrcp.f32 %v1547_v22 }
 0x8eb   :  { %v2046_v4 = vpop.xlane.xlu0 %2045  ;;  %v1568_v5 = vpop.permute.xlu1 %1567 }
 0x8ec   :  { %v2068_v8 = vsub.f32 %v3782_v41, %v2046_v4  ;;  %2967 = vmatprep.subr.mxu0 %v1568_v5  ;;  %v3186_v41 = vpop.eup %3185 }
 0x8ed   :  { %2968 = vmatpush3.msra.mxu0 %v1568_v5  ;;  %v3188_v51 = vpop.eup %3187  ;;  %v1564_v21 = vmul.f32 %v3186_v41, %v3769_v58 }
 0x8ee   :  { %v2076_v13 = vmul.f32 1.442695, %v2068_v8  ;;  %2970 = vmatmul.mubr.msk.f32.vlgmr.msra.gmra.mxu0 %vm364_vm2, %v1560_v7  ;;  %2981 = vmatprep.subr.mxu0 %v1720_v25  ;;  %v1566_v54 = vmul.f32 %v3188_v51, %v3773_v60 }
 0x8ef   :  { %v2052_v14 = vpop.xlane.xlu0 %2051  ;;  %2972 = vmatprep.mubr.msk.f32.mxu0 %vm364_vm2, %v1561_v10  ;;  %2982 = vmatpush3.msra.mxu0 %v1720_v25  ;;  %v3893_v10 = vpop.f32.mrf.mxu0 }
 0x8f0   :  { %3191 = vpow2.f32 %v2076_v13  ;;  %v2070_v16 = vsub.f32 %v3786_v12, %v2052_v14 }
 0x8f1   :  { %v3895_v11 = vpop.f32.mrf.mxu0 }
 0x8f2   :  { %v2080_v20 = vmul.f32 1.442695, %v2070_v16  ;;  %2973 = vmatmul.mubr.msk.f32.gmra.mxu0 %vm364_vm2, %v1562_v43 }
 0x8f3   :  { %2975 = vmatprep.mubr.msk.f32.mxu0 %vm364_vm2, %v1563_v18  ;;  %v2055_v42 = vpop.xlane.xlu0 %2054  ;;  %v3897_v13 = vpop.f32.mrf.mxu0 }
 0x8f4   :  { %3193 = vpow2.f32 %v2080_v20  ;;  %v2071_v44 = vsub.f32 %v3790_v17, %v2055_v42 }
 0x8f5   :  { %v3190_v29 = vpop.eup %3189  ;;  %v3899_v14 = vpop.f32.mrf.mxu0 }
 0x8f6   :  { %2976 = vmatmul.mubr.msk.f32.gmra.mxu0 %vm364_vm2, %v1564_v21  ;;  %v1565_v30 = vmul.f32 %v3190_v29, %v3780_v9  ;;  %v2082_v48 = vmul.f32 1.442695, %v2071_v44 }
 0x8f7   :  { %v2061_v9 = vpop.xlane.xlu0 %2060  ;;  %v3901_v16 = vpop.f32.mrf.mxu0 }
 0x8f8   :  { %2978 = vmatprep.mubr.msk.f32.mxu0 %vm364_vm2, %v1565_v30  ;;  %v2073_v50 = vsub.f32 %v3794_v24, %v2061_v9 }
 0x8f9   :  { %v3903_v43 = vpop.f32.mrf.mxu0 }
 0x8fa   :  { %2979 = vmatmul.mubr.msk.f32.gmra.mxu0 %vm364_vm2, %v1566_v54  ;;  %v2086_v57 = vmul.f32 1.442695, %v2073_v50 }
 0x8fb   :  { %v2067_v53 = vpop.xlane.xlu0 %2066  ;;  %v3905_v41 = vpop.f32.mrf.mxu0 }
 0x8fc   :  { %v2075_v59 = vsub.f32 %v3798_v40, %v2067_v53 }
 0x8fd   :  { %v3851_v55 = vpop.eup %3191  ;;  %v3907_v20 = vpop.f32.mrf.mxu0 }
 0x8fe   :  { %v2092_v12 = vsel %vm364_vm2, %v3851_v55, 0.0 }
 0x8ff   :  { %2093 = vadd.xlane.f32.xlu1 %v2092_v12  ;;  %v2145_v24 = vpop.permute.xlu0 %2144 }
 0x901   :  { %v3855_v39 = vpop.eup %3193 }
 0x902   :  { %v2098_v58 = vsel %vm364_vm2, %v3855_v39, 0.0 }
 0x903   :  { %2099 = vadd.xlane.f32.xlu1 %v2098_v58  ;;  %v2139_v19 = vpop.permute.xlu0 %2138 }
 0x91c   :  { %v2049_v45 = vpop.xlane.xlu1 %2048 }
 0x91d   :  { %v2069_v60 = vsub.f32 %v3810_v46, %v2049_v45  ;;  %v2090_v46 = vmul.f32 1.442695, %v2075_v59 }
 0x91f   :  { %v2078_v52 = vmul.f32 1.442695, %v2069_v60 }
 0x920   :  { %v2058_v26 = vpop.xlane.xlu1 %2057 }
 0x921   :  { %3195 = vpow2.f32 %v2078_v52  ;;  %v2072_v27 = vsub.f32 %v3812_v49, %v2058_v26 }
 0x922   :  { %3197 = vpow2.f32 %v2082_v48 }
 0x923   :  { %v2084_v61 = vmul.f32 1.442695, %v2072_v27 }
 0x924   :  { %v2064_v62 = vpop.xlane.xlu1 %2063 }
 0x925   :  { %3199 = vpow2.f32 %v2084_v61  ;;  %v2074_v17 = vsub.f32 %v3816_v56, %v2064_v62 }
 0x926   :  { %3201 = vpow2.f32 %v2086_v57 }
 0x927   :  { %v2088_v63 = vmul.f32 1.442695, %v2074_v17 }
 0x928   :  { %v2147_v0 = vpop.permute.xlu1 %2146 }
 0x929   :  { %3203 = vpow2.f32 %v2088_v63  ;;  %3023 = vmatprep.subr.mxu0 %v2147_v0  ;;  %3065 = vmatprep.subr.mxu1 %v2147_v0 }
 0x92a   :  { %3073 = vmatpush3.msra.mxu1 %v2147_v0  ;;  %3205 = vpow2.f32 %v2090_v46 }
 0x92b   :  { %3066 = vmatprep.subr.mxu1 %v2145_v24 }
 0x92c   :  { %3074 = vmatpush3.msra.mxu1 %v2145_v24  ;;  %v2143_v49 = vpop.permute.xlu1 %2142 }
 0x92d   :  { %3067 = vmatprep.subr.mxu1 %v2143_v49 }
 0x92e   :  { %v3865_v40 = vpop.eup %3195  ;;  %3075 = vmatpush3.msra.mxu1 %v2143_v49 }
 0x92f   :  { %v2095_v56 = vsel %vm364_vm2, %v3865_v40, 0.0  ;;  %v3869_v1 = vpop.eup %3197 }
 0x930   :  { %2096 = vadd.xlane.f32.xlu0 %v2095_v56  ;;  %v2141_v2 = vpop.permute.xlu1 %2140  ;;  %v2101_v22 = vsel %vm364_vm2, %v3869_v1, 0.0  ;;  %v2285_v56 = vld [vmem:[%s3999_s4 + $0x18] sm:$0xff] }
 0x931   :  { %3068 = vmatprep.subr.mxu1 %v2141_v2 }
 0x932   :  { %v3871_v23 = vpop.eup %3199  ;;  %3076 = vmatpush3.msra.mxu1 %v2141_v2 }
 0x933   :  { %3069 = vmatprep.subr.mxu1 %v2139_v19  ;;  %v2104_v47 = vsel %vm364_vm2, %v3871_v23, 0.0  ;;  %v3877_v3 = vpop.eup %3201 }
 0x934   :  { %2102 = vadd.xlane.f32.xlu0 %v2101_v22  ;;  %2105 = vadd.xlane.f32.xlu1 %v2104_v47  ;;  %v2137_v4 = vpop.permute.xlu1 %2136  ;;  %v2107_v25 = vsel %vm364_vm2, %v3877_v3, 0.0  ;;  %v1270_v47 = vadd.f32 %v3897_v13, %v3714_v33  ;;  %v1290_v33 = vadd.f32 %v3905_v41, %v3722_v37 }
 0x935   :  { %3077 = vmatpush3.msra.mxu1 %v2139_v19 }
 0x936   :  { %v3879_v5 = vpop.eup %3203  ;;  %3070 = vmatprep.subr.mxu1 %v2137_v4 }
 0x937   :  { %3078 = vmatpush3.msra.mxu1 %v2137_v4  ;;  %v2110_v7 = vsel %vm364_vm2, %v3879_v5, 0.0  ;;  %v3885_v8 = vpop.eup %3205 }
 0x938   :  { %2108 = vadd.xlane.f32.xlu0 %v2107_v25  ;;  %2111 = vadd.xlane.f32.xlu1 %v2110_v7  ;;  %v2113_v6 = vsel %vm364_vm2, %v3885_v8, 0.0 }
 0x93c   :  { %2114 = vadd.xlane.f32.xlu0 %v2113_v6 }
 0x949   :  { %2132 = vrot.lane.b32.xlu1 %v3344_v15, %s3258_s15 }
 0x952   :  { %2134 = vrot.lane.b32.xlu0 %v3367_v28, %s3258_s15 }
 0x988   :  { %v2094_v18 = vpop.xlane.xlu1 %2093 }
 0x989   :  { %3207 = vrcp.f32 %v2094_v18 }
 0x98c   :  { %v2100_v54 = vpop.xlane.xlu1 %2099 }
 0x996   :  { %v3208_v58 = vpop.eup %3207 }
 0x997   :  { %v2124_v60 = vmul.f32 %v3208_v58, %v3851_v55 }
 0x9ae   :  { %v2971_v15 = vpop.f32.mrf.mxu0 }
 0x9b0   :  { %v1681_v28 = vpop.f32.mrf.mxu0 }
 0x9b1   :  { %2983 = vmatprep.mubr.msk.f32.mxu0 %vm210_vm1, %v1681_v28 }
 0x9b2   :  { %v2974_v51 = vpop.f32.mrf.mxu0  ;;  %2984 = vmatmul.mubr.msk.f32.vlgmr.msra.gmra.mxu0 %vm210_vm1, %v2971_v15 }
 0x9b3   :  { %3024 = vmatpush3.msra.mxu0 %v2147_v0 }
 0x9b4   :  { %3025 = vmatprep.subr.mxu0 %v2145_v24  ;;  %v1691_v21 = vpop.f32.mrf.mxu0 }
 0x9b5   :  { %3026 = vmatpush3.msra.mxu0 %v2145_v24  ;;  %2986 = vmatprep.mubr.msk.f32.mxu0 %vm210_vm1, %v1691_v21  ;;  %v2588_v21 = vld [vmem:[%s4000_s5] ss:$0 sm:$0xff] }
 0x9b6   :  { %3027 = vmatprep.subr.mxu0 %v2143_v49  ;;  %v2977_v29 = vpop.f32.mrf.mxu0  ;;  %2987 = vmatmul.mubr.msk.f32.gmra.mxu0 %vm210_vm1, %v2974_v51 }
 0x9b7   :  { %3028 = vmatpush3.msra.mxu0 %v2143_v49 }
 0x9b8   :  { %3029 = vmatprep.subr.mxu0 %v2141_v2  ;;  %v1701_v30 = vpop.f32.mrf.mxu0 }
 0x9b9   :  { %3030 = vmatpush3.msra.mxu0 %v2141_v2  ;;  %2989 = vmatprep.mubr.msk.f32.mxu0 %vm210_vm1, %v1701_v30  ;;  %v2097_v12 = vpop.xlane.xlu0 %2096 }
 0x9ba   :  { %3031 = vmatprep.subr.mxu0 %v2139_v19  ;;  %v2980_v42 = vpop.f32.mrf.mxu0  ;;  %2990 = vmatmul.mubr.msk.f32.gmra.mxu0 %vm210_vm1, %v2977_v29  ;;  %3209 = vrcp.f32 %v2097_v12 }
 0x9bb   :  { %3032 = vmatpush3.msra.mxu0 %v2139_v19  ;;  %3211 = vrcp.f32 %v2100_v54 }
 0x9bc   :  { %3033 = vmatprep.subr.mxu0 %v2137_v4  ;;  %v1711_v9 = vpop.f32.mrf.mxu0 }
 0x9bd   :  { %3034 = vmatpush3.msra.mxu0 %v2137_v4  ;;  %2992 = vmatprep.mubr.msk.f32.mxu0 %vm210_vm1, %v1711_v9  ;;  %v2103_v44 = vpop.xlane.xlu0 %2102  ;;  %v2106_v45 = vpop.xlane.xlu1 %2105 }
 0x9be   :  { %2993 = vmatmul.mubr.msk.f32.gmra.mxu0 %vm210_vm1, %v2980_v42  ;;  %3213 = vrcp.f32 %v2103_v44 }
 0x9bf   :  { %3039 = vmatprep.mubr.msk.f32.mxu0 %vm364_vm2, %v2124_v60  ;;  %3215 = vrcp.f32 %v2106_v45 }
 0x9c1   :  { %v2109_v48 = vpop.xlane.xlu0 %2108  ;;  %v2112_v50 = vpop.xlane.xlu1 %2111 }
 0x9c2   :  { %3217 = vrcp.f32 %v2112_v50 }
 0x9c3   :  { %3219 = vrcp.f32 %v2109_v48 }
 0x9c5   :  { %v2115_v52 = vpop.xlane.xlu0 %2114  ;;  %v2133_v57 = vpop.permute.xlu1 %2132 }
 0x9c6   :  { %3221 = vrcp.f32 %v2115_v52 }
 0x9c7   :  { %v3210_v53 = vpop.eup %3209 }
 0x9c8   :  { %v3212_v27 = vpop.eup %3211  ;;  %v2125_v55 = vmul.f32 %v3210_v53, %v3865_v40 }
 0x9c9   :  { %v2135_v26 = vpop.permute.xlu0 %2134  ;;  %v2126_v61 = vmul.f32 %v3212_v27, %v3855_v39 }
 0x9ca   :  { %3035 = vmatprep.subr.mxu0 %v2135_v26  ;;  %3071 = vmatprep.subr.mxu1 %v2135_v26 }
 0x9cb   :  { %3036 = vmatpush3.msra.mxu0 %v2135_v26  ;;  %3079 = vmatpush3.msra.mxu1 %v2135_v26  ;;  %v3214_v59 = vpop.eup %3213 }
 0x9cc   :  { %3037 = vmatprep.subr.mxu0 %v2133_v57  ;;  %3072 = vmatprep.subr.mxu1 %v2133_v57  ;;  %v3216_v62 = vpop.eup %3215  ;;  %v2127_v46 = vmul.f32 %v3214_v59, %v3869_v1  ;;  %v1260_v1 = vadd.f32 %v3893_v10, %v3710_v31 }
 0x9cd   :  { %3038 = vmatpush3.msra.mxu0 %v2133_v57  ;;  %3080 = vmatpush3.msra.mxu1 %v2133_v57  ;;  %v2128_v24 = vmul.f32 %v3216_v62, %v3871_v23  ;;  %v1255_v23 = vadd.f32 %v3895_v11, %v3712_v32  ;;  %v1275_v32 = vadd.f32 %v3903_v43, %v3720_v36 }
 0x9ce   :  { %3040 = vmatmul.mubr.msk.f32.vlgmr.msra.gmra.mxu0 %vm364_vm2, %v2125_v55  ;;  %3051 = vmatprep.subr.mxu0 %v2285_v56 }
 0x9cf   :  { %3042 = vmatprep.mubr.msk.f32.mxu0 %vm364_vm2, %v2126_v61  ;;  %v3218_v17 = vpop.eup %3217  ;;  %3052 = vmatpush3.msra.mxu0 %v2285_v56 }
 0x9d0   :  { %v3220_v63 = vpop.eup %3219  ;;  %v2130_v0 = vmul.f32 %v3218_v17, %v3879_v5  ;;  %v1265_v5 = vadd.f32 %v3899_v14, %v3716_v34  ;;  %v1285_v34 = vadd.f32 %v3907_v20, %v3724_v38 }
 0x9d1   :  { %v2129_v40 = vmul.f32 %v3220_v63, %v3877_v3 }
 0x9d2   :  { %3043 = vmatmul.mubr.msk.f32.gmra.mxu0 %vm364_vm2, %v2127_v46  ;;  %3048 = vmatprep.mubr.msk.f32.mxu1 %vm364_vm2, %v2130_v0 }
 0x9d3   :  { %v3222_v49 = vpop.eup %3221  ;;  %3045 = vmatprep.mubr.msk.f32.mxu0 %vm364_vm2, %v2128_v24 }
 0x9d4   :  { %v2131_v39 = vmul.f32 %v3222_v49, %v3885_v8  ;;  %v1280_v8 = vadd.f32 %v3901_v16, %v3718_v35 }
 0x9d6   :  { %3046 = vmatmul.mubr.msk.f32.gmra.mxu0 %vm364_vm2, %v2129_v40  ;;  %3049 = vmatmul.mubr.msk.f32.vlgmr.msra.gmra.mxu1 %vm364_vm2, %v2131_v39 }
 0xa72   :  { %v2985_v2 = vpop.f32.mrf.mxu0 }
 0xa73   :  { %v1851_v19 = vadd.f32 %v2985_v2, %v1260_v1 }
 0xa74   :  { %v1811_v22 = vpop.f32.mrf.mxu0 }
 0xa75   :  { %v1850_v3 = vadd.f32 %v1811_v22, %v1255_v23 }
 0xa76   :  { %v2988_v4 = vpop.f32.mrf.mxu0 }
 0xa77   :  { %v1853_v25 = vadd.f32 %v2988_v4, %v1270_v47 }
 0xa78   :  { %v1821_v7 = vpop.f32.mrf.mxu0 }
 0xa79   :  { %v1852_v31 = vadd.f32 %v1821_v7, %v1265_v5 }
 0xa7a   :  { %v2991_v6 = vpop.f32.mrf.mxu0 }
 0xa7b   :  { %v1855_v10 = vadd.f32 %v2991_v6, %v1280_v8 }
 0xa7c   :  { %v1831_v11 = vpop.f32.mrf.mxu0 }
 0xa7d   :  { %v1854_v13 = vadd.f32 %v1831_v11, %v1275_v32 }
 0xa7e   :  { %v2994_v18 = vpop.f32.mrf.mxu0 }
 0xa7f   :  { %v1857_v14 = vadd.f32 %v2994_v18, %v1290_v33 }
 0xa80   :  { %v1841_v15 = vpop.f32.mrf.mxu0 }
 0xa81   :  { %v1856_v28 = vadd.f32 %v1841_v15, %v1285_v34 }
 0xa8e   :  { %v3041_v51 = vpop.f32.mrf.mxu0 }
 0xa90   :  { %v2246_v35 = vpop.f32.mrf.mxu0 }
 0xa91   :  { %3053 = vmatprep.mubr.msk.f32.mxu0 %vm210_vm1, %v2246_v35 }
 0xa92   :  { %v3044_v16 = vpop.f32.mrf.mxu0  ;;  %3054 = vmatmul.mubr.msk.f32.vlgmr.msra.gmra.mxu0 %vm210_vm1, %v3041_v51 }
 0xa94   :  { %v2256_v36 = vpop.f32.mrf.mxu0 }
 0xa95   :  { %3056 = vmatprep.mubr.msk.f32.mxu0 %vm210_vm1, %v2256_v36 }
 0xa96   :  { %v3047_v43 = vpop.f32.mrf.mxu0  ;;  %v3050_v37 = vpop.f32.mrf.mxu1  ;;  %3057 = vmatmul.mubr.msk.f32.gmra.mxu0 %vm210_vm1, %v3044_v16 }
 0xa98   :  { %v2266_v41 = vpop.f32.mrf.mxu0  ;;  %v2276_v38 = vpop.f32.mrf.mxu1 }
 0xa99   :  { %3059 = vmatprep.mubr.msk.f32.mxu0 %vm210_vm1, %v2266_v41 }
 0xa9a   :  { %3060 = vmatmul.mubr.msk.f32.gmra.mxu0 %vm210_vm1, %v3047_v43 }
 0xa9b   :  { %3062 = vmatprep.mubr.msk.f32.mxu0 %vm210_vm1, %v2276_v38 }
 0xa9e   :  { %3063 = vmatmul.mubr.msk.f32.gmra.mxu0 %vm210_vm1, %v3050_v37 }
 0xb52   :  { %v3055_v20 = vpop.f32.mrf.mxu0 }
 0xb53   :  { %v2416_v29 = vadd.f32 %v3055_v20, %v1851_v19 }
 0xb54   :  { %v2376_v30 = vpop.f32.mrf.mxu0 }
 0xb55   :  { %v2431_v54 = vadd.f32 %v2588_v21, %v2416_v29  ;;  %v2415_v12 = vadd.f32 %v2376_v30, %v1850_v3 }
 0xb56   :  { %v3058_v58 = vpop.f32.mrf.mxu0 }
 0xb57   :  { %2439 = vst.msk [vmem:[%s4001_s6 + $0x8] sm:$0xff] %vm56_vm0, %v2431_v54  ;;  %v2430_v42 = vadd.f32 %v2588_v21, %v2415_v12  ;;  %v2418_v9 = vadd.f32 %v3058_v58, %v1853_v25 }
 0xb58   :  { %v2386_v44 = vpop.f32.mrf.mxu0 }
 0xb59   :  { %2438 = vst.msk [vmem:[%s4001_s6] sm:$0xff] %vm56_vm0, %v2430_v42  ;;  %v2433_v45 = vadd.f32 %v2588_v21, %v2418_v9  ;;  %v2417_v60 = vadd.f32 %v2386_v44, %v1852_v31 }
 0xb5a   :  { %v3061_v48 = vpop.f32.mrf.mxu0 }
 0xb5b   :  { %2441 = vst.msk [vmem:[%s4001_s6 + $0x18] sm:$0xff] %vm56_vm0, %v2433_v45  ;;  %v2432_v50 = vadd.f32 %v2588_v21, %v2417_v60  ;;  %v2420_v52 = vadd.f32 %v3061_v48, %v1855_v10 }
 0xb5c   :  { %v2396_v53 = vpop.f32.mrf.mxu0 }
 0xb5d   :  { %2440 = vst.msk [vmem:[%s4001_s6 + $0x10] sm:$0xff] %vm56_vm0, %v2432_v50  ;;  %v2435_v26 = vadd.f32 %v2588_v21, %v2420_v52  ;;  %v2419_v27 = vadd.f32 %v2396_v53, %v1854_v13 }
 0xb5e   :  { %v3064_v57 = vpop.f32.mrf.mxu0 }
 0xb5f   :  { %2443 = vst.msk [vmem:[%s4001_s6 + $0x28] sm:$0xff] %vm56_vm0, %v2435_v26  ;;  %v2434_v55 = vadd.f32 %v2588_v21, %v2419_v27  ;;  %v2422_v59 = vadd.f32 %v3064_v57, %v1857_v14 }
 0xb60   :  { %v2406_v61 = vpop.f32.mrf.mxu0 }
 0xb61   :  { %2442 = vst.msk [vmem:[%s4001_s6 + $0x20] sm:$0xff] %vm56_vm0, %v2434_v55  ;;  %v2437_v62 = vadd.f32 %v2588_v21, %v2422_v59  ;;  %v2421_v17 = vadd.f32 %v2406_v61, %v1856_v28 }
 0xb63   :  { %2445 = vst.msk [vmem:[%s4001_s6 + $0x38] sm:$0xff] %vm56_vm0, %v2437_v62  ;;  %v2436_v46 = vadd.f32 %v2588_v21, %v2421_v17 }
 0xb65   :  { %2444 = vst.msk [vmem:[%s4001_s6 + $0x30] sm:$0xff] %vm56_vm0, %v2436_v46 }
 0xb66   :  { %2450 = vsyncpa [#allocation3], 1 }

</bundles_post_ra>
